<compile_context>
chip_gen: v5e
topology: v5e:2x2
jax: 0.10.0
libtpu: 0.0.40
codegen_flags: <defaults>
</compile_context>

<pallas_src>
import jax
import jax.numpy as jnp
from jax.experimental import pallas as pl
from jax.experimental.pallas import tpu as pltpu

# Bottleneck feature dim stand-in.  Real EfficientNetV2-L classifier.in_features
# is 1280; we use 256 (a multiple of 128) for the synthetic-size run.
FEAT_DIM = 256
HEAD_PAD = 128   # lane-dense packed head output width (cols 0..2 used)
TB = 8           # batch tile (sublane-aligned)


# ---------------------------------------------------------------------------
# Fused kernel: surrogate backbone (both images) + clarity/similarity heads.
# ---------------------------------------------------------------------------
def _fused_kernel(img1_ref, img2_ref, wf_ref, bproj_ref,
                  wh1_ref, wh2_ref, bh_ref, out_ref):
    # TODO(synk): the real EfficientNetV2-L trunk (FusedMBConv/MBConv stacks,
    # BN, SE blocks) has no compact Pallas equivalent; the backbone here is a
    # deterministic surrogate: global-average-pool + Linear + SiLU, expressed
    # as a single fused matmul (pool folded into the projection weights).
    wf = wf_ref[...]                                            # (CHW, F) bf16

    # Backbone surrogate for each image: bf16 x bf16 MXU matmul, f32 accumulate.
    z1 = jnp.dot(img1_ref[...], wf,
                 preferred_element_type=jnp.float32) + bproj_ref[...]   # (TB, F)
    z2 = jnp.dot(img2_ref[...], wf,
                 preferred_element_type=jnp.float32) + bproj_ref[...]   # (TB, F)
    f1 = z1 * jax.nn.sigmoid(z1)                                # SiLU (EUP)
    f2 = z2 * jax.nn.sigmoid(z2)

    # Packed heads:  cat(f1, f2) @ [[wc, 0, ws1], [0, wc, ws2]] + [bc, bc, bs]
    #   col 0: clarity(image1)   col 1: clarity(image2)   col 2: similarity
    h = (jnp.dot(f1, wh1_ref[...], preferred_element_type=jnp.float32)
         + jnp.dot(f2, wh2_ref[...], preferred_element_type=jnp.float32)
         + bh_ref[...])                                         # (TB, 128)
    out_ref[...] = jax.nn.sigmoid(h)                            # lane-dense store


# ---------------------------------------------------------------------------
# Forward pass wrapper
# ---------------------------------------------------------------------------
def duplicate_detection_forward(image1, image2, packed):
    B, C, H, W = image1.shape
    CHW = C * H * W

    # Flatten to (B, C*H*W) and ship as bf16 (compute accumulates in f32).
    img1 = image1.reshape(B, CHW).astype(jnp.bfloat16)
    img2 = image2.reshape(B, CHW).astype(jnp.bfloat16)

    # Pad batch up to a multiple of the (8, 128)-aligned batch tile.
    Bp = ((B + TB - 1) // TB) * TB
    if Bp != B:
        pad = ((0, Bp - B), (0, 0))
        img1 = jnp.pad(img1, pad)
        img2 = jnp.pad(img2, pad)

    out = pl.pallas_call(
        _fused_kernel,
        out_shape=jax.ShapeDtypeStruct((Bp, HEAD_PAD), jnp.float32),
        grid_spec=pltpu.PrefetchScalarGridSpec(
            num_scalar_prefetch=0,
            grid=(Bp // TB,),
            in_specs=[
                pl.BlockSpec((TB, CHW), lambda i: (i, 0)),            # image1
                pl.BlockSpec((TB, CHW), lambda i: (i, 0)),            # image2
                pl.BlockSpec((CHW, FEAT_DIM), lambda i: (0, 0)),      # W_fused
                pl.BlockSpec((1, FEAT_DIM), lambda i: (0, 0)),        # b_proj
                pl.BlockSpec((FEAT_DIM, HEAD_PAD), lambda i: (0, 0)), # W_heads_1
                pl.BlockSpec((FEAT_DIM, HEAD_PAD), lambda i: (0, 0)), # W_heads_2
                pl.BlockSpec((1, HEAD_PAD), lambda i: (0, 0)),        # b_heads
            ],
            out_specs=pl.BlockSpec((TB, HEAD_PAD), lambda i: (i, 0)),
        ),
        compiler_params=pltpu.CompilerParams(
            dimension_semantics=("parallel",),
            vmem_limit_bytes=32 * 1024 * 1024,   # safe on v5e/v6e/v7x
        ),
    )(img1, img2, packed["w_fused"], packed["b_proj"],
      packed["w_heads_1"], packed["w_heads_2"], packed["b_heads"])

    # Slice the lane-dense packed output back into the module's three outputs.
    c1 = out[:B, 0:1]
    c2 = out[:B, 1:2]
    sim = out[:B, 2:3]
    return c1, c2, sim


# ---------------------------------------------------------------------------
# Parameters (nn.Linear-equivalent) and kernel-side packing
# ---------------------------------------------------------------------------
def init_params(key, in_channels):
    ks = jax.random.split(key, 6)
    # surrogate backbone projection: Linear(C, F)
    w_proj = jax.random.normal(ks[0], (in_channels, FEAT_DIM), jnp.float32) * 0.5
    b_proj = jax.random.normal(ks[1], (1, FEAT_DIM), jnp.float32) * 0.05
    # clarity_layer = nn.Linear(F, 1)
    w_clarity = jax.random.normal(ks[2], (FEAT_DIM, 1), jnp.float32) * 0.05
    b_clarity = jax.random.normal(ks[3], (), jnp.float32) * 0.05
    # similarity_layer = nn.Linear(2F, 1)
    w_sim = jax.random.normal(ks[4], (2 * FEAT_DIM, 1), jnp.float32) * 0.05
    b_sim = jax.random.normal(ks[5], (), jnp.float32) * 0.05
    return {"w_proj": w_proj, "b_proj": b_proj,
            "w_clarity": w_clarity, "b_clarity": b_clarity,
            "w_sim": w_sim, "b_sim": b_sim}


def pack_params(params, C, H, W):
    """One-time packing of nn.Linear-style params into kernel-friendly blocks."""
    HW = H * W
    # Fold global-average-pool into the projection:  W_fused[(c,h,w), f] = w_proj[c,f]/HW
    w_fused = (jnp.broadcast_to(params["w_proj"][:, None, :], (C, HW, FEAT_DIM))
               .reshape(C * HW, FEAT_DIM) / HW).astype(jnp.bfloat16)

    wc = params["w_clarity"]                       # (F, 1)
    ws1 = params["w_sim"][:FEAT_DIM]               # (F, 1)
    ws2 = params["w_sim"][FEAT_DIM:]               # (F, 1)
    zcol = jnp.zeros((FEAT_DIM, 1), jnp.float32)
    zpad = jnp.zeros((FEAT_DIM, HEAD_PAD - 3), jnp.float32)
    w_heads_1 = jnp.concatenate([wc, zcol, ws1, zpad], axis=1)   # (F, 128)
    w_heads_2 = jnp.concatenate([zcol, wc, ws2, zpad], axis=1)   # (F, 128)

    b_heads = jnp.zeros((1, HEAD_PAD), jnp.float32)
    b_heads = b_heads.at[0, 0].set(params["b_clarity"])
    b_heads = b_heads.at[0, 1].set(params["b_clarity"])
    b_heads = b_heads.at[0, 2].set(params["b_sim"])

    return {"w_fused": w_fused, "b_proj": params["b_proj"],
            "w_heads_1": w_heads_1, "w_heads_2": w_heads_2, "b_heads": b_heads}


# ---------------------------------------------------------------------------
# Pure-JAX reference (float32) for numerical validation
# ---------------------------------------------------------------------------
def reference_forward(image1, image2, params):
    def feats(img):
        pooled = jnp.mean(img, axis=(2, 3))                      # (B, C)
        z = pooled @ params["w_proj"] + params["b_proj"]         # (B, F)
        return z * jax.nn.sigmoid(z)                             # SiLU
    f1 = feats(image1)
    f2 = feats(image2)
    c1 = jax.nn.sigmoid(f1 @ params["w_clarity"] + params["b_clarity"])
    c2 = jax.nn.sigmoid(f2 @ params["w_clarity"] + params["b_clarity"])
    sim = jax.nn.sigmoid(jnp.concatenate([f1, f2], axis=1) @ params["w_sim"]
                         + params["b_sim"])
    return c1, c2, sim


if __name__ == "__main__":
    B, C, H, W = 16, 3, 32, 32   # small synthetic NCHW shapes (like PyTorch input)
    key = jax.random.PRNGKey(0)
    k_img1, k_img2, k_params = jax.random.split(key, 3)

    image1 = jax.random.normal(k_img1, (B, C, H, W), jnp.float32)
    image2 = jax.random.normal(k_img2, (B, C, H, W), jnp.float32)
    params = init_params(k_params, C)
    packed = pack_params(params, C, H, W)

    c1, c2, sim = duplicate_detection_forward(image1, image2, packed)
    jax.block_until_ready((c1, c2, sim))

    # Shape / range sanity + numerical check vs. the float32 reference
    # (tolerance covers the bf16 image/weight transfer quantization).
    assert c1.shape == (B, 1) and c2.shape == (B, 1) and sim.shape == (B, 1)
    assert bool(jnp.all((c1 >= 0) & (c1 <= 1)))
    assert bool(jnp.all((c2 >= 0) & (c2 <= 1)))
    assert bool(jnp.all((sim >= 0) & (sim <= 1)))
    r1, r2, rs = reference_forward(image1, image2, params)
    assert bool(jnp.max(jnp.abs(c1 - r1)) < 2e-2)
    assert bool(jnp.max(jnp.abs(c2 - r2)) < 2e-2)
    assert bool(jnp.max(jnp.abs(sim - rs)) < 2e-2)
    print("KERNEL_OK")
</pallas_src>

<mosaic_0001>
module attributes {stable_mosaic.version = 11 : i64} {
  func.func @_fused_kernel(%arg0: i32, %arg1: memref<8x3072xbf16, #tpu.memory_space<vmem>>, %arg2: memref<8x3072xbf16, #tpu.memory_space<vmem>>, %arg3: memref<3072x256xbf16, #tpu.memory_space<vmem>>, %arg4: memref<1x256xf32, #tpu.memory_space<vmem>>, %arg5: memref<256x128xf32, #tpu.memory_space<vmem>>, %arg6: memref<256x128xf32, #tpu.memory_space<vmem>>, %arg7: memref<1x128xf32, #tpu.memory_space<vmem>>, %arg8: memref<8x128xf32, #tpu.memory_space<vmem>>) attributes {dimension_semantics = [#tpu.dimension_semantics<parallel>], iteration_bounds = array<i64: 2>, scalar_prefetch = 0 : i64, scratch_operands = 0 : i64, tpu.core_type = #tpu.core_type<tc>, window_params = [{transform_indices = @transform_0, window_bounds = array<i64: 8, 3072>}, {transform_indices = @transform_1, window_bounds = array<i64: 8, 3072>}, {pipeline_mode = #tpu.pipeline_mode<synchronous>, transform_indices = @transform_2, window_bounds = array<i64: 3072, 256>}, {pipeline_mode = #tpu.pipeline_mode<synchronous>, transform_indices = @transform_3, window_bounds = array<i64: 1, 256>}, {pipeline_mode = #tpu.pipeline_mode<synchronous>, transform_indices = @transform_4, window_bounds = array<i64: 256, 128>}, {pipeline_mode = #tpu.pipeline_mode<synchronous>, transform_indices = @transform_5, window_bounds = array<i64: 256, 128>}, {pipeline_mode = #tpu.pipeline_mode<synchronous>, transform_indices = @transform_6, window_bounds = array<i64: 1, 128>}, {transform_indices = @transform_7, window_bounds = array<i64: 8, 128>}]} {
    %c0 = arith.constant 0 : index
    %c0_0 = arith.constant 0 : index
    %0 = vector.load %arg3[%c0, %c0_0] : memref<3072x256xbf16, #tpu.memory_space<vmem>>, vector<3072x256xbf16>
    %c0_1 = arith.constant 0 : index
    %c0_2 = arith.constant 0 : index
    %1 = vector.load %arg1[%c0_1, %c0_2] : memref<8x3072xbf16, #tpu.memory_space<vmem>>, vector<8x3072xbf16>
    %cst = arith.constant dense<0.000000e+00> : vector<8x256xf32>
    %2 = tpu.matmul %1, %0, %cst {dimension_numbers = #tpu.dot_dimension_numbers<[1], [0], [0], [1], [0, 0, 1, 1], [], []>} : vector<8x3072xbf16>, vector<3072x256xbf16>, vector<8x256xf32> -> vector<8x256xf32>
    %c0_3 = arith.constant 0 : index
    %c0_4 = arith.constant 0 : index
    %3 = vector.load %arg4[%c0_3, %c0_4] : memref<1x256xf32, #tpu.memory_space<vmem>>, vector<1x256xf32>
    %4 = vector.broadcast %3 : vector<1x256xf32> to vector<8x256xf32>
    %5 = arith.addf %2, %4 : vector<8x256xf32>
    %c0_5 = arith.constant 0 : index
    %c0_6 = arith.constant 0 : index
    %6 = vector.load %arg2[%c0_5, %c0_6] : memref<8x3072xbf16, #tpu.memory_space<vmem>>, vector<8x3072xbf16>
    %cst_7 = arith.constant dense<0.000000e+00> : vector<8x256xf32>
    %7 = tpu.matmul %6, %0, %cst_7 {dimension_numbers = #tpu.dot_dimension_numbers<[1], [0], [0], [1], [0, 0, 1, 1], [], []>} : vector<8x3072xbf16>, vector<3072x256xbf16>, vector<8x256xf32> -> vector<8x256xf32>
    %c0_8 = arith.constant 0 : index
    %c0_9 = arith.constant 0 : index
    %8 = vector.load %arg4[%c0_8, %c0_9] : memref<1x256xf32, #tpu.memory_space<vmem>>, vector<1x256xf32>
    %9 = vector.broadcast %8 : vector<1x256xf32> to vector<8x256xf32>
    %10 = arith.addf %7, %9 : vector<8x256xf32>
    %11 = arith.negf %5 : vector<8x256xf32>
    %12 = math.exp %11 : vector<8x256xf32>
    %cst_10 = arith.constant 1.000000e+00 : f32
    %13 = vector.broadcast %cst_10 : f32 to vector<8x256xf32>
    %14 = arith.addf %13, %12 : vector<8x256xf32>
    %15 = arith.divf %13, %14 : vector<8x256xf32>
    %16 = arith.mulf %5, %15 : vector<8x256xf32>
    %17 = arith.negf %10 : vector<8x256xf32>
    %18 = math.exp %17 : vector<8x256xf32>
    %cst_11 = arith.constant 1.000000e+00 : f32
    %19 = vector.broadcast %cst_11 : f32 to vector<8x256xf32>
    %20 = arith.addf %19, %18 : vector<8x256xf32>
    %21 = arith.divf %19, %20 : vector<8x256xf32>
    %22 = arith.mulf %10, %21 : vector<8x256xf32>
    %c0_12 = arith.constant 0 : index
    %c0_13 = arith.constant 0 : index
    %23 = vector.load %arg5[%c0_12, %c0_13] : memref<256x128xf32, #tpu.memory_space<vmem>>, vector<256x128xf32>
    %cst_14 = arith.constant dense<0.000000e+00> : vector<8x128xf32>
    %24 = tpu.matmul %16, %23, %cst_14 {dimension_numbers = #tpu.dot_dimension_numbers<[1], [0], [0], [1], [0, 0, 1, 1], [], []>} : vector<8x256xf32>, vector<256x128xf32>, vector<8x128xf32> -> vector<8x128xf32>
    %c0_15 = arith.constant 0 : index
    %c0_16 = arith.constant 0 : index
    %25 = vector.load %arg6[%c0_15, %c0_16] : memref<256x128xf32, #tpu.memory_space<vmem>>, vector<256x128xf32>
    %cst_17 = arith.constant dense<0.000000e+00> : vector<8x128xf32>
    %26 = tpu.matmul %22, %25, %cst_17 {dimension_numbers = #tpu.dot_dimension_numbers<[1], [0], [0], [1], [0, 0, 1, 1], [], []>} : vector<8x256xf32>, vector<256x128xf32>, vector<8x128xf32> -> vector<8x128xf32>
    %27 = arith.addf %24, %26 : vector<8x128xf32>
    %c0_18 = arith.constant 0 : index
    %c0_19 = arith.constant 0 : index
    %28 = vector.load %arg7[%c0_18, %c0_19] : memref<1x128xf32, #tpu.memory_space<vmem>>, vector<1x128xf32>
    %29 = vector.broadcast %28 : vector<1x128xf32> to vector<8x128xf32>
    %30 = arith.addf %27, %29 : vector<8x128xf32>
    %31 = arith.negf %30 : vector<8x128xf32>
    %32 = math.exp %31 : vector<8x128xf32>
    %cst_20 = arith.constant 1.000000e+00 : f32
    %33 = vector.broadcast %cst_20 : f32 to vector<8x128xf32>
    %34 = arith.addf %33, %32 : vector<8x128xf32>
    %35 = arith.divf %33, %34 : vector<8x128xf32>
    %c0_21 = arith.constant 0 : index
    %c0_22 = arith.constant 0 : index
    %36 = vector.load %arg8[%c0_21, %c0_22] : memref<8x128xf32, #tpu.memory_space<vmem>>, vector<8x128xf32>
    tpu.vector_store %arg8[%c0_21, %c0_22], %35 {strides = array<i32>} : memref<8x128xf32, #tpu.memory_space<vmem>>, vector<8x128xf32>,
    return
  }
  func.func @transform_0(%arg0: i32) -> (i32, i32) {
    %c0_i32 = arith.constant 0 : i32
    %c0_i32_0 = arith.constant 0 : i32
    return %arg0, %c0_i32 : i32, i32
  }
  func.func @transform_1(%arg0: i32) -> (i32, i32) {
    %c0_i32 = arith.constant 0 : i32
    %c0_i32_0 = arith.constant 0 : i32
    return %arg0, %c0_i32 : i32, i32
  }
  func.func @transform_2(%arg0: i32) -> (i32, i32) {
    %c0_i32 = arith.constant 0 : i32
    %c0_i32_0 = arith.constant 0 : i32
    %c0_i32_1 = arith.constant 0 : i32
    return %c0_i32, %c0_i32_0 : i32, i32
  }
  func.func @transform_3(%arg0: i32) -> (i32, i32) {
    %c0_i32 = arith.constant 0 : i32
    %c0_i32_0 = arith.constant 0 : i32
    %c0_i32_1 = arith.constant 0 : i32
    return %c0_i32, %c0_i32_0 : i32, i32
  }
  func.func @transform_4(%arg0: i32) -> (i32, i32) {
    %c0_i32 = arith.constant 0 : i32
    %c0_i32_0 = arith.constant 0 : i32
    %c0_i32_1 = arith.constant 0 : i32
    return %c0_i32, %c0_i32_0 : i32, i32
  }
  func.func @transform_5(%arg0: i32) -> (i32, i32) {
    %c0_i32 = arith.constant 0 : i32
    %c0_i32_0 = arith.constant 0 : i32
    %c0_i32_1 = arith.constant 0 : i32
    return %c0_i32, %c0_i32_0 : i32, i32
  }
  func.func @transform_6(%arg0: i32) -> (i32, i32) {
    %c0_i32 = arith.constant 0 : i32
    %c0_i32_0 = arith.constant 0 : i32
    %c0_i32_1 = arith.constant 0 : i32
    return %c0_i32, %c0_i32_0 : i32, i32
  }
  func.func @transform_7(%arg0: i32) -> (i32, i32) {
    %c0_i32 = arith.constant 0 : i32
    %c0_i32_0 = arith.constant 0 : i32
    return %arg0, %c0_i32 : i32, i32
  }
}

</mosaic_0001>

<bundles_post_ra>
// kernel: tpu_custom_call.1
= control target key start
LH: loop header
LB: loop body
LE: loop exit
PB: predicated region body
PF: predicated region fallthrough
CT: control target
= control target key end

     0   :  { %s9056_s0 = inlined_call_operand.hbm [shape: bf16[16,3072], index: 0, kind: input, shape index: {}]   ;;  %s9057_s1 = inlined_call_operand.hbm [shape: bf16[16,3072], index: 1, kind: input, shape index: {}]   ;;  %s9058_s2 = inlined_call_operand.hbm [shape: bf16[3072,256], index: 2, kind: input, shape index: {}]   ;;  %s9059_s3 = inlined_call_operand.hbm [shape: f32[1,256], index: 3, kind: input, shape index: {}]   ;;  %s9060_s4 = inlined_call_operand.hbm [shape: f32[256,128], index: 4, kind: input, shape index: {}]   ;;  %s9061_s5 = inlined_call_operand.hbm [shape: f32[256,128], index: 5, kind: input, shape index: {}]   ;;  %s9062_s6 = inlined_call_operand.hbm [shape: f32[1,128], index: 6, kind: input, shape index: {}]   ;;  %s9063_s7 = inlined_call_operand.hbm [shape: f32[16,128], index: 7, kind: output, shape index: {}]  }
   0x1   :  { %9418 = sst [smem:[#allocation374_spill]] %s9058_s2 }
   0x2   :  { %9419 = sst [smem:[#allocation375_spill]] %s9059_s3 }
   0x3   :  { %9420 = sst [smem:[#allocation376_spill]] %s9060_s4 }
   0x4   :  { %9421 = sst [smem:[#allocation377_spill]] %s9061_s5 }
   0x5   :  { %9422 = sst [smem:[#allocation378_spill]] %s9062_s6 }
   0x6   :  { %12 = vsyncpa [#allocation3], 0 }
   0x7   :  { %14 = vsyncpa [#allocation3 + $0x1], 0 }
   0x8   :  { %15 = vsyncpa [#allocation6], 0 }
   0x9   :  { %17 = vsyncpa [#allocation6 + $0x1], 0 }
   0xa   :  { %18 = vsyncpa [#allocation9], 0 }
   0xb   :  { %19 = vsyncpa [#allocation12], 0 }
   0xc   :  { %20 = vsyncpa [#allocation4], 0 }
   0xd   :  { %22 = vsyncpa [#allocation4 + $0x1], 0  ;;  %s6988_s24 = smov 0   ;;  %s6990_s25 = smov 0  }
   0xe   :  { %s6992_s26 = smov 0   ;;  %s6994_s27 = smov 0  }
   0xf LB: > { %9423 = sst [smem:[#allocation21_spill]] %s6935_s26  ;;  %s7012_s8 = sadd.s32 4294967295, %s6939_s27   ;;  %s6939_s27 = sphi %s6994_s27, %s10154_s27   ;;  %s6935_s26 = sphi %s6992_s26, %s10151_s26   ;;  %s6931_s25 = sphi %s6990_s25, %s10153_s25   ;;  %s6927_s24 = sphi %s6988_s24, %s10152_s24  }
  0x10   : > { %s9424_s2 = sld [smem:[#allocation374_spill]]  ;;  %p4571_p0 = scmp.ge.s32.totalorder %s6939_s27, 1 }
  0x11   : > { %p49_p1 = scmp.eq.s32.totalorder %s7012_s8, 0  ;;  %p216_p2 = scmp.lt.s32.totalorder %s6939_s27, 3 }
  0x12   : > { %s6941_s10 = smov [#allocation7]   ;;  %s9426_s3 = sld [smem:[#allocation375_spill]] }
  0x13   : > { %p7017_p3 = pnand %p4571_p0, %p216_p2  ;;  %s229_s11 = sshll.u32 %s6941_s10, 4  ;;  %s230_s11 = int_to_ptr.vmem [resolvable:$true] %s229_s11 }
  0x14   : > { %s9428_s5 = sld [smem:[#allocation377_spill]]  ;;  %s6942_s19 = smov [#allocation8]  }
  0x15   : > { %p6547_p4 = pneg %p7017_p3  ;;  %s244_s20 = sshll.u32 %s6942_s19, 4  ;;  %s245_s20 = int_to_ptr.vmem [resolvable:$true] %s244_s20 }
  0x16   : > { %s227_s30 = sshll.u32 %s9424_s2, 4  ;;  %s6943_s21 = smov 128   ;;  %s228_s30 = int_to_ptr.hbm [resolvable:$true] %s227_s30 }
  0x17   : > { %p7029_p6 = pnand %p6547_p4, %p49_p1  ;;  %s6944_s22 = smov 8  }
  0x18   : > { %s242_s14 = sshll.u32 %s9426_s3, 4  ;;  %s9429_s4 = sld [smem:[#allocation376_spill]]  ;;  %s243_s14 = int_to_ptr.hbm [resolvable:$true] %s242_s14 }
  0x19   : > { %6550 = dma.hbm_to_vmem [thread:$0]  (!%p7029_p6), %s228_s30, 49152, %s230_s11, [#allocation6], %s6943_s21, %s6943_s21, %s6944_s22  }
  0x1a   : > { %s267_s18 = sshll.u32 %s9428_s5, 4  ;;  %s6945_s10 = smov [#allocation11]   ;;  %s268_s18 = int_to_ptr.hbm [resolvable:$true] %s267_s18 }
  0x1b   : > { %6553 = dma.hbm_to_vmem [thread:$0]  (!%p7029_p6), %s243_s14, 32, %s245_s20, [#allocation9]  }
  0x1c   : > { %s269_s12 = sshll.u32 %s6945_s10, 4  ;;  %s6946_s30 = smov [#allocation10]   ;;  %s270_s12 = int_to_ptr.vmem [resolvable:$true] %s269_s12 }
  0x1d   : > { %6559 = dma.hbm_to_vmem [thread:$0]  (!%p7029_p6), %s268_s18, 4096, %s270_s12, [#allocation12], %s6943_s21, %s6943_s21, %s6944_s22  }
  0x1e   : > { %s253_s29 = sshll.u32 %s9429_s4, 4  ;;  %s255_s11 = sshll.u32 %s6946_s30, 4  ;;  %s254_s29 = int_to_ptr.hbm [resolvable:$true] %s253_s29  ;;  %s256_s11 = int_to_ptr.vmem [resolvable:$true] %s255_s11 }
  0x1f   : > { %s9430_s6 = sld [smem:[#allocation378_spill]]  ;;  %s6947_s17 = smov [#allocation13]  }
  0x20   : > { %6556 = dma.hbm_to_vmem [thread:$0]  (!%p7029_p6), %s254_s29, 4096, %s256_s11, [#allocation9], %s6943_s21, %s6943_s21, %s6944_s22  }
  0x21   : > { %s284_s19 = sshll.u32 %s6947_s17, 4  ;;  %s4570_s18 = sadd.s32 4294967294, %s6939_s27   ;;  %s285_s19 = int_to_ptr.vmem [resolvable:$true] %s284_s19 }
  0x22   : > { %s7054_s20 = sadd.s32 1, %s6939_s27   ;;  %s35_s23 = sadd.s32 1, %s6935_s26 }
  0x23   : > { %s32_s28 = ssub.s32 %s6939_s27, %s7054_s20  ;;  %p42_p7 = scmp.ne.s32.totalorder %s6935_s26, %s6931_s25 }
  0x24   : > { %p33_p8 = scmp.eq.s32.totalorder %s32_s28, 0  ;;  %p43_p9 = scmp.eq.s32.totalorder %s6939_s27, 0 }
  0x25   : > { %s282_s16 = sshll.u32 %s9430_s6, 4  ;;  %p48_p10 = scmp.ne.s32.totalorder %s6931_s25, %s6927_s24  ;;  %s283_s16 = int_to_ptr.hbm [resolvable:$true] %s282_s16 }
  0x26   : > { %6562 = dma.hbm_to_vmem [thread:$0]  (!%p7029_p6), %s283_s16, 16, %s285_s19, [#allocation12]  }
  0x27   : > { %p203_p11 = scmp.eq.s32.totalorder %s7012_s8, 1  ;;  %p44_p12 = por %p43_p9, %p42_p7 }
  0x28   : > { %s7066_s21 = scalar_select %p33_p8, %s6935_s26, %s35_s23  }
  0x29   : > { %p7070_p13 = por %p49_p1, %p48_p10  ;;  %p7074_p0 = por %p203_p11, %p42_p7 }
  0x2a   : > { %9431 = sst [smem:[#allocation22_spill]] %s7066_s21  ;;  %p209_p2 = scmp.eq.s32.totalorder %s4570_s18, 1 }
  0x2b   : > { %p6579_p4 = scmp.lt.s32.totalorder %s6939_s27, 2  ;;  %s295_s29 = sand.u32 1, %s6935_s26  }
  0x2c   : > { %p7080_p6 = por %p209_p2, %p48_p10  ;;  %s6516_s12 = smul.u32 96, %s295_s29 }
  0x2d   : > { %p7084_p8 = pnand %p6579_p4, %p44_p12  ;;  %s6517_s11 = smul.u32 96, %s6939_s27 }
  0x2e   : > { %s315_s13 = sand.u32 1, %s6939_s27   ;;  %s299_s19 = scalar_lea.vmem [#allocation2], %s6516_s12 }
  0x2f   : > { %s304_s17 = scalar_lea.hbm %s9056_s0, %s6517_s11  ;;  %s308_s18 = sshll.u32 %s299_s19, 4  ;;  %s309_s18 = int_to_ptr.vmem [resolvable:$true] %s308_s18 }
  0x30   : > { %s306_s23 = sshll.u32 %s304_s17, 4  ;;  %s296_s28 = scalar_lea.sflag [#allocation3], %s295_s29  ;;  %s307_s23 = int_to_ptr.hbm [resolvable:$true] %s306_s23 }
  0x31   : > { %s6797_s2 = sshra.s32 %s307_s23, 4  ;;  %p6801_p9 = pneg %p7084_p8  ;;  %s6798_s2 = int_to_ptr.hbm [resolvable:$true] %s6797_s2 }
  0x32   : > { %s6799_s3 = scalar_lea.hbm %s6798_s2, 96  ;;  %s6804_s14 = scalar_lea.hbm %s9056_s0, 192 }
  0x33   : > { %p6800_p7 = scmp.ne.s32.totalorder %s6798_s2, %s6799_s3  ;;  %p6805_p12 = scmp.lt.s32.totalorder %s6798_s2, %s9056_s0 }
  0x34   : > { %p6806_p2 = scmp.lt.s32.totalorder %s6804_s14, %s6799_s3 }
  0x35   : > { %p6802_p10 = pnand %p6801_p9, %p6800_p7 }
  0x36   : > { %p6807_p4 = por %p6806_p2, %p6805_p12 }
  0x37   : > { %p6803_p11 = pneg %p6802_p10 }
  0x39   : > { %p6808_p5 = pnand %p6807_p4, %p6803_p11 }
  0x3b   : > { %6811 = shalt.err (!%p6808_p5)
}
  0x3c   : > { %6566 = dma.hbm_to_vmem [thread:$0]  (!%p7084_p8), %s307_s23, 1536, %s309_s18, %s296_s28  }
  0x3d   : > { %s324_s6 = scalar_lea.hbm %s9057_s1, %s6517_s11  ;;  %s319_s26 = scalar_lea.vmem [#allocation5], %s6516_s12 }
  0x3e   : > { %s326_s21 = sshll.u32 %s324_s6, 4  ;;  %s328_s4 = sshll.u32 %s319_s26, 4  ;;  %s327_s21 = int_to_ptr.hbm [resolvable:$true] %s326_s21  ;;  %s329_s4 = int_to_ptr.vmem [resolvable:$true] %s328_s4 }
  0x3f   : > { %s316_s5 = scalar_lea.sflag [#allocation6], %s315_s13  ;;  %s6827_s16 = sshra.s32 %s327_s21, 4  ;;  %s6828_s16 = int_to_ptr.hbm [resolvable:$true] %s6827_s16 }
  0x40   : > { %s6829_s2 = scalar_lea.hbm %s6828_s16, 96  ;;  %s6834_s23 = scalar_lea.hbm %s9057_s1, 192 }
  0x41   : > { %p6830_p7 = scmp.ne.s32.totalorder %s6828_s16, %s6829_s2  ;;  %p6835_p11 = scmp.lt.s32.totalorder %s6828_s16, %s9057_s1 }
  0x42   : > { %p6836_p12 = scmp.lt.s32.totalorder %s6834_s23, %s6829_s2 }
  0x43   : > { %p6832_p5 = pnand %p6830_p7, %p6801_p9 }
  0x44   : > { %p6837_p2 = por %p6836_p12, %p6835_p11 }
  0x45   : > { %p6833_p10 = pneg %p6832_p5 }
  0x47   : > { %p6838_p4 = pnand %p6837_p2, %p6833_p10 }
  0x49   : > { %6841 = shalt.err (!%p6838_p4)
}
  0x4a   : > { %6569 = dma.hbm_to_vmem [thread:$0]  (!%p7084_p8), %s327_s21, 1536, %s329_s4, %s316_s5  }
  0x4b   : > { %337 = sbr.rel (%p7017_p3) target bundleno = 1197 (0x4ad), region = 48 }
  0x50   : > { %s7123_s6 = sand.u32 1, %s6931_s25  }
  0x51   : > { %s6520_s26 = smul.u32 96, %s7123_s6  ;;  %s340_s12 = scalar_lea.sflag [#allocation3], %s7123_s6 }
  0x53   : > { %s7127_s13 = scalar_lea.vmem [#allocation2], %s6520_s26 }
  0x54   : > { %6902 = dma.done.wait (%p7070_p13), %s340_s12, 1536  }
  0x55   : > { %6904 = vsyncadd (%p7070_p13), %s340_s12, 4294965760  ;;  %s349_s21 = sand.u32 1, %s7012_s8   ;;  %s7134_s30 = scalar_lea.vmem [#allocation5], %s6520_s26 }
  0x56   : > { %s350_s9 = scalar_lea.sflag [#allocation6], %s349_s21 }
  0x57   : > { %6906 = dma.done.wait (%p7070_p13), %s350_s9, 1536  }
  0x58   : > { %6908 = vsyncadd (%p7070_p13), %s350_s9, 4294965760 }
  0x59   : > { %6910 = dma.done.wait (%p49_p1), [#allocation6], 49152  }
  0x5a   : > { %6912 = vsyncadd (%p49_p1), [#allocation6], 4294918144 }
  0x5b   : > { %6914 = dma.done.wait (%p49_p1), [#allocation9], 4128  }
  0x5c   : > { %6916 = vsyncadd (%p49_p1), [#allocation9], 4294963168 }
  0x5d   : > { %6918 = dma.done.wait (%p49_p1), [#allocation12], 4112  }
  0x5e   : > { %6920 = vsyncadd (%p49_p1), [#allocation12], 4294963184  ;;  %v4645_v0 = vld [vmem:[#allocation7 + $0x70] sm:$0xf]  ;;  %v6147_v1 = vld [vmem:[#allocation7 + $0x74] sm:$0xf0] }
  0x5f   : > { %v4709_v2 = vld [vmem:[#allocation7 + $0xf0] sm:$0xf]  ;;  %v7152_v3 = vor.u32 %v6147_v1, %v4645_v0  ;;  %v6163_v4 = vld [vmem:[#allocation7 + $0xf4] sm:$0xf0]  ;;  %v4637_v11 = vld [vmem:[#allocation7 + $0x60] sm:$0xf] }
  0x60   : > { %v4773_v5 = vld [vmem:[#allocation7 + $0x170] sm:$0xf]  ;;  %v6179_v6 = vld [vmem:[#allocation7 + $0x174] sm:$0xf0]  ;;  %v7154_v7 = vor.u32 %v6163_v4, %v4709_v2  ;;  %v6145_v13 = vld [vmem:[#allocation7 + $0x64] sm:$0xf0] }
  0x61   : > { %v7156_v8 = vor.u32 %v6179_v6, %v4773_v5  ;;  %v4837_v9 = vld [vmem:[#allocation7 + $0x1f0] sm:$0xf]  ;;  %v6195_v10 = vld [vmem:[#allocation7 + $0x1f4] sm:$0xf0]  ;;  %2821 = vmatpush.bf16.msra.mxu0 %v7152_v3  ;;  %v4701_v14 = vld [vmem:[#allocation7 + $0xe0] sm:$0xf]  ;;  %v7163_v16 = vor.u32 %v6145_v13, %v4637_v11 }
  0x62   : > { %v7159_v12 = vor.u32 %v6195_v10, %v4837_v9  ;;  %v6161_v15 = vld [vmem:[#allocation7 + $0xe4] sm:$0xf0]  ;;  %2834 = vmatpush.bf16.msra.mxu1 %v7154_v7  ;;  %v4765_v18 = vld [vmem:[#allocation7 + $0x160] sm:$0xf]  ;;  %v4629_v23 = vld [vmem:[#allocation7 + $0x50] sm:$0xf] }
  0x63   : > { %2847 = vmatpush.bf16.msra.mxu2 %v7156_v8  ;;  %v7165_v17 = vor.u32 %v6161_v15, %v4701_v14  ;;  %v6177_v19 = vld [vmem:[#allocation7 + $0x164] sm:$0xf0]  ;;  %v4829_v20 = vld [vmem:[#allocation7 + $0x1e0] sm:$0xf]  ;;  %v6143_v24 = vld [vmem:[#allocation7 + $0x54] sm:$0xf0] }
  0x64   : > { %2860 = vmatpush.bf16.msra.mxu3 %v7159_v12  ;;  %v7168_v21 = vor.u32 %v6177_v19, %v4765_v18  ;;  %v6193_v22 = vld [vmem:[#allocation7 + $0x1e4] sm:$0xf0]  ;;  %v4693_v26 = vld [vmem:[#allocation7 + $0xd0] sm:$0xf]  ;;  %v6159_v27 = vld [vmem:[#allocation7 + $0xd4] sm:$0xf0]  ;;  %v7173_v29 = vor.u32 %v6143_v24, %v4629_v23 }
  0x65   : > { %v7170_v25 = vor.u32 %v6193_v22, %v4829_v20  ;;  %v4757_v28 = vld [vmem:[#allocation7 + $0x150] sm:$0xf]  ;;  %2822 = vmatpush.bf16.msra.mxu0 %v7163_v16  ;;  %v6175_v30 = vld [vmem:[#allocation7 + $0x154] sm:$0xf0]  ;;  %v7177_v33 = vor.u32 %v6159_v27, %v4693_v26  ;;  %v4621_v35 = vld [vmem:[#allocation7 + $0x40] sm:$0xf] }
  0x66   : > { %v4821_v31 = vld [vmem:[#allocation7 + $0x1d0] sm:$0xf]  ;;  %v6191_v32 = vld [vmem:[#allocation7 + $0x1d4] sm:$0xf0]  ;;  %2835 = vmatpush.bf16.msra.mxu1 %v7165_v17  ;;  %v7179_v34 = vor.u32 %v6175_v30, %v4757_v28  ;;  %v6141_v36 = vld [vmem:[#allocation7 + $0x44] sm:$0xf0] }
  0x67   : > { %2848 = vmatpush.bf16.msra.mxu2 %v7168_v21  ;;  %v4685_v37 = vld [vmem:[#allocation7 + $0xc0] sm:$0xf]  ;;  %v7182_v38 = vor.u32 %v6191_v32, %v4821_v31  ;;  %v6157_v39 = vld [vmem:[#allocation7 + $0xc4] sm:$0xf0]  ;;  %v7185_v44 = vor.u32 %v6141_v36, %v4621_v35  ;;  %v4613_v47 = vld [vmem:[#allocation7 + $0x30] sm:$0xf] }
  0x68   : > { %2861 = vmatpush.bf16.msra.mxu3 %v7170_v25  ;;  %v4749_v40 = vld [vmem:[#allocation7 + $0x140] sm:$0xf]  ;;  %v6173_v41 = vld [vmem:[#allocation7 + $0x144] sm:$0xf0]  ;;  %v7189_v45 = vor.u32 %v6157_v39, %v4685_v37  ;;  %v6139_v48 = vld [vmem:[#allocation7 + $0x34] sm:$0xf0] }
  0x69   : > { %v4813_v42 = vld [vmem:[#allocation7 + $0x1c0] sm:$0xf]  ;;  %v6189_v43 = vld [vmem:[#allocation7 + $0x1c4] sm:$0xf0]  ;;  %2823 = vmatpush.bf16.msra.mxu0 %v7173_v29  ;;  %v7191_v46 = vor.u32 %v6173_v41, %v4749_v40  ;;  %v4677_v49 = vld [vmem:[#allocation7 + $0xb0] sm:$0xf]  ;;  %v7197_v56 = vor.u32 %v6139_v48, %v4613_v47 }
  0x6a   : > { %2836 = vmatpush.bf16.msra.mxu1 %v7177_v33  ;;  %9436 = vst [vmem:[#allocation23_spill] sm:$0xff] %v7189_v45  ;;  %v7194_v50 = vor.u32 %v6189_v43, %v4813_v42  ;;  %v6155_v51 = vld [vmem:[#allocation7 + $0xb4] sm:$0xf0]  ;;  %v4741_v52 = vld [vmem:[#allocation7 + $0x130] sm:$0xf]  ;;  %s4586_s15 = sshll.u32 %s7123_s6, 3 }
  0x6b   : > { %2849 = vmatpush.bf16.msra.mxu2 %v7179_v34  ;;  %9437 = vst [vmem:[#allocation24_spill] sm:$0xff] %v7191_v46  ;;  %v6171_v53 = vld [vmem:[#allocation7 + $0x134] sm:$0xf0]  ;;  %v4805_v54 = vld [vmem:[#allocation7 + $0x1b0] sm:$0xf]  ;;  %v7201_v57 = vor.u32 %v6155_v51, %v4677_v49  ;;  %s6129_s14 = sshll.u32 %s7012_s8, 3 }
  0x6c   : > { %2862 = vmatpush.bf16.msra.mxu3 %v7182_v38  ;;  %9438 = vst [vmem:[#allocation25_spill] sm:$0xff] %v7194_v50  ;;  %v6187_v55 = vld [vmem:[#allocation7 + $0x1b4] sm:$0xf0]  ;;  %v7203_v58 = vor.u32 %v6171_v53, %v4741_v52  ;;  %v4605_v59 = vld [vmem:[#allocation7 + $0x20] sm:$0xf]  ;;  %s4425_s17 = scalar_lea.hbm %s9063_s7, %s6129_s14  ;;  %s414_s4 = scalar_lea.vmem [#allocation14], %s4586_s15 }
  0x6d   : > { %2824 = vmatpush.bf16.msra.mxu0 %v7185_v44  ;;  %9439 = vst [vmem:[#allocation26_spill] sm:$0xff] %v7197_v56  ;;  %v6137_v60 = vld [vmem:[#allocation7 + $0x24] sm:$0xf0]  ;;  %v4669_v61 = vld [vmem:[#allocation7 + $0xa0] sm:$0xf]  ;;  %v7206_v62 = vor.u32 %v6187_v55, %v4805_v54  ;;  %s4427_s5 = sshll.u32 %s414_s4, 4  ;;  %s4428_s5 = int_to_ptr.vmem [resolvable:$true] %s4427_s5 }
  0x6e   : > { %2837 = vmatpush.bf16.msra.mxu1 %v7189_v45  ;;  %9440 = vst [vmem:[#allocation27_spill] sm:$0xff] %v7201_v57  ;;  %v6153_v63 = vld [vmem:[#allocation7 + $0xa4] sm:$0xf0]  ;;  %v4733_v0 = vld [vmem:[#allocation7 + $0x120] sm:$0xf]  ;;  %v7209_v5 = vor.u32 %v6137_v60, %v4605_v59  ;;  %s4429_s16 = sshll.u32 %s4425_s17, 4  ;;  %s4430_s16 = int_to_ptr.hbm [resolvable:$true] %s4429_s16 }
  0x6f   : > { %2850 = vmatpush.bf16.msra.mxu2 %v7191_v46  ;;  %9441 = vst [vmem:[#allocation28_spill] sm:$0xff] %v7203_v58  ;;  %v6169_v1 = vld [vmem:[#allocation7 + $0x124] sm:$0xf0]  ;;  %v4797_v2 = vld [vmem:[#allocation7 + $0x1a0] sm:$0xf]  ;;  %v7213_v6 = vor.u32 %v6153_v63, %v4669_v61  ;;  %s4415_s8 = scalar_lea.sflag [#allocation4], %s7123_s6 }
  0x70   : > { %2863 = vmatpush.bf16.msra.mxu3 %v7194_v50  ;;  %9442 = vst [vmem:[#allocation29_spill] sm:$0xff] %v7206_v62  ;;  %v6185_v4 = vld [vmem:[#allocation7 + $0x1a4] sm:$0xf0]  ;;  %v7215_v9 = vor.u32 %v6169_v1, %v4733_v0  ;;  %v4597_v10 = vld [vmem:[#allocation7 + $0x10] sm:$0xf]  ;;  %s6871_s2 = sshra.s32 %s4430_s16, 4  ;;  %s6872_s2 = int_to_ptr.hbm [resolvable:$true] %s6871_s2 }
  0x71   : > { %2825 = vmatpush.bf16.msra.mxu0 %v7197_v56  ;;  %9443 = vst [vmem:[#allocation30_spill] sm:$0xff] %v7209_v5  ;;  %v6135_v11 = vld [vmem:[#allocation7 + $0x14] sm:$0xf0]  ;;  %v4661_v13 = vld [vmem:[#allocation7 + $0x90] sm:$0xf]  ;;  %v7218_v14 = vor.u32 %v6185_v4, %v4797_v2  ;;  %s6873_s3 = scalar_lea.hbm %s6872_s2, 8  ;;  %p6878_p8 = scmp.lt.s32.totalorder %s6872_s2, %s9063_s7 }
  0x72   : > { %2838 = vmatpush.bf16.msra.mxu1 %v7201_v57  ;;  %9444 = vst [vmem:[#allocation31_spill] sm:$0xff] %v7213_v6  ;;  %v6151_v15 = vld [vmem:[#allocation7 + $0x94] sm:$0xf0]  ;;  %v4725_v18 = vld [vmem:[#allocation7 + $0x110] sm:$0xf]  ;;  %v7221_v23 = vor.u32 %v6135_v11, %v4597_v10  ;;  %p6874_p1 = scmp.ne.s32.totalorder %s6872_s2, %s6873_s3  ;;  %s6877_s28 = scalar_lea.hbm %s9063_s7, 16 }
  0x73   : > { %2851 = vmatpush.bf16.msra.mxu2 %v7203_v58  ;;  %9445 = vst [vmem:[#allocation32_spill] sm:$0xff] %v7215_v9  ;;  %v6167_v19 = vld [vmem:[#allocation7 + $0x114] sm:$0xf0]  ;;  %v4789_v20 = vld [vmem:[#allocation7 + $0x190] sm:$0xf]  ;;  %v7225_v27 = vor.u32 %v6151_v15, %v4661_v13  ;;  %p6879_p9 = scmp.lt.s32.totalorder %s6877_s28, %s6873_s3 }
  0x74   : > { %2864 = vmatpush.bf16.msra.mxu3 %v7206_v62  ;;  %9446 = vst [vmem:[#allocation33_spill] sm:$0xff] %v7218_v14  ;;  %v6183_v22 = vld [vmem:[#allocation7 + $0x194] sm:$0xf0]  ;;  %v4589_v24 = vld [vmem:[#allocation7] sm:$0xf]  ;;  %v7227_v28 = vor.u32 %v6167_v19, %v4725_v18  ;;  %p6875_p3 = pnand %p6874_p1, %p7074_p0 }
  0x75   : > { %2826 = vmatpush.bf16.msra.mxu0 %v7209_v5  ;;  %9447 = vst [vmem:[#allocation34_spill] sm:$0xff] %v7221_v23  ;;  %v6133_v26 = vld [vmem:[#allocation7 + $0x4] sm:$0xf0]  ;;  %v4653_v30 = vld [vmem:[#allocation7 + $0x80] sm:$0xf]  ;;  %v7230_v35 = vor.u32 %v6183_v22, %v4789_v20  ;;  %p6880_p7 = por %p6879_p9, %p6878_p8 }
  0x76   : > { %2839 = vmatpush.bf16.msra.mxu1 %v7213_v6  ;;  %9448 = vst [vmem:[#allocation35_spill] sm:$0xff] %v7225_v27  ;;  %v6149_v31 = vld [vmem:[#allocation7 + $0x84] sm:$0xf0]  ;;  %v4717_v32 = vld [vmem:[#allocation7 + $0x100] sm:$0xf]  ;;  %v7233_v43 = vor.u32 %v6133_v26, %v4589_v24  ;;  %p6876_p13 = pneg %p6875_p3 }
  0x77   : > { %2852 = vmatpush.bf16.msra.mxu2 %v7215_v9  ;;  %9449 = vst [vmem:[#allocation36_spill] sm:$0xff] %v7227_v28  ;;  %v6165_v36 = vld [vmem:[#allocation7 + $0x104] sm:$0xf0]  ;;  %v4781_v37 = vld [vmem:[#allocation7 + $0x180] sm:$0xf]  ;;  %v7237_v51 = vor.u32 %v6149_v31, %v4653_v30 }
  0x78   : > { %2865 = vmatpush.bf16.msra.mxu3 %v7218_v14  ;;  %9450 = vst [vmem:[#allocation37_spill] sm:$0xff] %v7230_v35  ;;  %v6181_v39 = vld [vmem:[#allocation7 + $0x184] sm:$0xf0]  ;;  %v4901_v40 = vld [vmem:[#allocation7 + $0x270] sm:$0xf]  ;;  %v7239_v52 = vor.u32 %v6165_v36, %v4717_v32  ;;  %p6881_p5 = pnand %p6880_p7, %p6876_p13 }
  0x79   : > { %v6211_v41 = vld [vmem:[#allocation7 + $0x274] sm:$0xf0]  ;;  %v4965_v42 = vld [vmem:[#allocation7 + $0x2f0] sm:$0xf]  ;;  %2827 = vmatpush.bf16.msra.mxu0 %v7221_v23  ;;  %9451 = vst [vmem:[#allocation38_spill] sm:$0xff] %v7233_v43  ;;  %v7242_v55 = vor.u32 %v6181_v39, %v4781_v37 }
  0x7a   : > { %v6227_v47 = vld [vmem:[#allocation7 + $0x2f4] sm:$0xf0]  ;;  %v5029_v48 = vld [vmem:[#allocation7 + $0x370] sm:$0xf]  ;;  %2840 = vmatpush.bf16.msra.mxu1 %v7225_v27  ;;  %9452 = vst [vmem:[#allocation39_spill] sm:$0xff] %v7237_v51  ;;  %v7244_v59 = vor.u32 %v6211_v41, %v4901_v40 }
  0x7b   : > { %v6243_v49 = vld [vmem:[#allocation7 + $0x374] sm:$0xf0]  ;;  %2853 = vmatpush.bf16.msra.mxu2 %v7227_v28  ;;  %9453 = vst [vmem:[#allocation40_spill] sm:$0xff] %v7239_v52  ;;  %v5093_v53 = vld [vmem:[#allocation7 + $0x3f0] sm:$0xf]  ;;  %v7246_v60 = vor.u32 %v6227_v47, %v4965_v42  ;;  %v800_v42 = vld [vmem:[%s7127_s13 + $0x8] sm:$0xff] }
  0x7c   : > { %v6259_v54 = vld [vmem:[#allocation7 + $0x3f4] sm:$0xf0]  ;;  %2866 = vmatpush.bf16.msra.mxu3 %v7230_v35  ;;  %9454 = vst [vmem:[#allocation41_spill] sm:$0xff] %v7242_v55  ;;  %v7248_v61 = vor.u32 %v6243_v49, %v5029_v48  ;;  %v4893_v63 = vld [vmem:[#allocation7 + $0x260] sm:$0xf] }
  0x7d   : > { %9455 = vst [vmem:[#allocation42_spill] sm:$0xff] %v7244_v59  ;;  %v6209_v0 = vld [vmem:[#allocation7 + $0x264] sm:$0xf0]  ;;  %v4957_v1 = vld [vmem:[#allocation7 + $0x2e0] sm:$0xf]  ;;  %2828 = vmatpush.bf16.msra.mxu0 %v7233_v43  ;;  %v7251_v2 = vor.u32 %v6259_v54, %v5093_v53 }
  0x7e   : > { %9456 = vst [vmem:[#allocation43_spill] sm:$0xff] %v7246_v60  ;;  %v6225_v4 = vld [vmem:[#allocation7 + $0x2e4] sm:$0xf0]  ;;  %v5021_v10 = vld [vmem:[#allocation7 + $0x360] sm:$0xf]  ;;  %2841 = vmatpush.bf16.msra.mxu1 %v7237_v51  ;;  %v7257_v18 = vor.u32 %v6209_v0, %v4893_v63  ;;  %v831_v63 = vunpack.c.l.b16 %v800_v42 }
  0x7f   : > { %9457 = vst [vmem:[#allocation44_spill] sm:$0xff] %v7248_v61  ;;  %v6241_v11 = vld [vmem:[#allocation7 + $0x364] sm:$0xf0]  ;;  %2854 = vmatpush.bf16.msra.mxu2 %v7239_v52  ;;  %v5085_v13 = vld [vmem:[#allocation7 + $0x3e0] sm:$0xf]  ;;  %v7261_v20 = vor.u32 %v6225_v4, %v4957_v1  ;;  %v832_v1 = vunpack.c.h.b16 %v800_v42 }
  0x80   : > { %9458 = vst [vmem:[#allocation45_spill] sm:$0xff] %v7251_v2  ;;  %v6257_v15 = vld [vmem:[#allocation7 + $0x3e4] sm:$0xf0]  ;;  %2867 = vmatpush.bf16.msra.mxu3 %v7242_v55  ;;  %v4885_v19 = vld [vmem:[#allocation7 + $0x250] sm:$0xf]  ;;  %v7263_v22 = vor.u32 %v6241_v11, %v5021_v10  ;;  %v799_v47 = vld [vmem:[%s7127_s13] sm:$0xff] }
  0x81   : > { %2873 = vmatpush.bf16.msrb.mxu0 %v7244_v59  ;;  %9459 = vst [vmem:[#allocation46_spill] sm:$0xff] %v7257_v18  ;;  %v6207_v24 = vld [vmem:[#allocation7 + $0x254] sm:$0xf0]  ;;  %v4949_v26 = vld [vmem:[#allocation7 + $0x2d0] sm:$0xf]  ;;  %v7266_v31 = vor.u32 %v6257_v15, %v5085_v13  ;;  %v829_v0 = vunpack.c.l.b16 %v799_v47  ;;  %v830_v15 = vunpack.c.h.b16 %v799_v47 }
  0x82   : > { %2886 = vmatpush.bf16.msrb.mxu1 %v7246_v60  ;;  %9460 = vst [vmem:[#allocation47_spill] sm:$0xff] %v7261_v20  ;;  %v6223_v30 = vld [vmem:[#allocation7 + $0x2d4] sm:$0xf0]  ;;  %v5013_v32 = vld [vmem:[#allocation7 + $0x350] sm:$0xf]  ;;  %v7269_v40 = vor.u32 %v6207_v24, %v4885_v19 }
  0x83   : > { %2899 = vmatpush.bf16.msrb.mxu2 %v7248_v61  ;;  %9461 = vst [vmem:[#allocation48_spill] sm:$0xff] %v7263_v22  ;;  %v6239_v36 = vld [vmem:[#allocation7 + $0x354] sm:$0xf0]  ;;  %v5077_v37 = vld [vmem:[#allocation7 + $0x3d0] sm:$0xf]  ;;  %v7271_v41 = vor.u32 %v6223_v30, %v4949_v26  ;;  %v7282_v26 = vpack.c.b16 %v831_v63, %v831_v63  ;;  %v7284_v30 = vpack.c.b16 %v829_v0, %v829_v0 }
  0x84   : > { %2912 = vmatpush.bf16.msrb.mxu3 %v7251_v2  ;;  %9462 = vst [vmem:[#allocation49_spill] sm:$0xff] %v7266_v31  ;;  %v6255_v39 = vld [vmem:[#allocation7 + $0x3d4] sm:$0xf0]  ;;  %v7277_v48 = vor.u32 %v6239_v36, %v5013_v32  ;;  %v4877_v49 = vld [vmem:[#allocation7 + $0x240] sm:$0xf]  ;;  %v7286_v32 = vpack.c.b16 %v832_v1, %v832_v1  ;;  %v7291_v42 = vpack.c.b16 %v830_v15, %v830_v15 }
  0x85   : > { %2874 = vmatpush.bf16.msrb.mxu0 %v7257_v18  ;;  %9463 = vst [vmem:[#allocation50_spill] sm:$0xff] %v7269_v40  ;;  %v6205_v53 = vld [vmem:[#allocation7 + $0x244] sm:$0xf0]  ;;  %v4941_v54 = vld [vmem:[#allocation7 + $0x2c0] sm:$0xf]  ;;  %v7280_v4 = vor.u32 %v6255_v39, %v5077_v37  ;;  %2855 = vmatmul.bf16.vlgmr.msra.gmra.mxu2 %v7282_v26 }
  0x86   : > { %9464 = vst [vmem:[#allocation51_spill] sm:$0xff] %v7271_v41  ;;  %2887 = vmatpush.bf16.msrb.mxu1 %v7261_v20  ;;  %v6221_v10 = vld [vmem:[#allocation7 + $0x2c4] sm:$0xf0]  ;;  %v5005_v11 = vld [vmem:[#allocation7 + $0x340] sm:$0xf]  ;;  %v7289_v36 = vor.u32 %v6205_v53, %v4877_v49  ;;  %2829 = vmatmul.bf16.vlgmr.msra.gmra.mxu0 %v7284_v30  ;;  %v801_v20 = vld [vmem:[%s7127_s13 + $0x10] sm:$0xff] }
  0x87   : > { %2900 = vmatpush.bf16.msrb.mxu2 %v7263_v22  ;;  %9465 = vst [vmem:[#allocation52_spill] sm:$0xff] %v7277_v48  ;;  %v6237_v13 = vld [vmem:[#allocation7 + $0x344] sm:$0xf0]  ;;  %v5069_v19 = vld [vmem:[#allocation7 + $0x3c0] sm:$0xf]  ;;  %v7295_v37 = vor.u32 %v6221_v10, %v4941_v54  ;;  %2868 = vmatmul.bf16.vlgmr.msra.gmra.mxu3 %v7286_v32  ;;  %v802_v22 = vld [vmem:[%s7127_s13 + $0x18] sm:$0xff]  ;;  %v833_v60 = vunpack.c.l.b16 %v801_v20 }
  0x88   : > { %2913 = vmatpush.bf16.msrb.mxu3 %v7266_v31  ;;  %9466 = vst [vmem:[#allocation53_spill] sm:$0xff] %v7280_v4  ;;  %v6253_v24 = vld [vmem:[#allocation7 + $0x3c4] sm:$0xf0]  ;;  %v7297_v39 = vor.u32 %v6237_v13, %v5005_v11  ;;  %v4869_v47 = vld [vmem:[#allocation7 + $0x230] sm:$0xf]  ;;  %2842 = vmatmul.bf16.vlgmr.msra.gmra.mxu1 %v7291_v42  ;;  %v836_v59 = vunpack.c.h.b16 %v802_v22 }
  0x89   : > { %2875 = vmatpush.bf16.msrb.mxu0 %v7269_v40  ;;  %9467 = vst [vmem:[#allocation54_spill] sm:$0xff] %v7289_v36  ;;  %v6203_v63 = vld [vmem:[#allocation7 + $0x234] sm:$0xf0]  ;;  %v4933_v0 = vld [vmem:[#allocation7 + $0x2b0] sm:$0xf]  ;;  %v7300_v1 = vor.u32 %v6253_v24, %v5069_v19 }
  0x8a   : > { %2888 = vmatpush.bf16.msrb.mxu1 %v7271_v41  ;;  %9468 = vst [vmem:[#allocation55_spill] sm:$0xff] %v7295_v37  ;;  %v6219_v40 = vld [vmem:[#allocation7 + $0x2b4] sm:$0xf0]  ;;  %v4997_v49 = vld [vmem:[#allocation7 + $0x330] sm:$0xf]  ;;  %v7306_v54 = vor.u32 %v6203_v63, %v4869_v47 }
  0x8b   : > { %2901 = vmatpush.bf16.msrb.mxu2 %v7277_v48  ;;  %9469 = vst [vmem:[#allocation56_spill] sm:$0xff] %v7297_v39  ;;  %v6235_v53 = vld [vmem:[#allocation7 + $0x334] sm:$0xf0]  ;;  %v5061_v15 = vld [vmem:[#allocation7 + $0x3b0] sm:$0xf]  ;;  %v7311_v10 = vor.u32 %v6219_v40, %v4933_v0 }
  0x8c   : > { %2914 = vmatpush.bf16.msrb.mxu3 %v7280_v4  ;;  %9470 = vst [vmem:[#allocation57_spill] sm:$0xff] %v7300_v1  ;;  %v6251_v41 = vld [vmem:[#allocation7 + $0x3b4] sm:$0xf0]  ;;  %v7313_v11 = vor.u32 %v6235_v53, %v4997_v49  ;;  %v4861_v13 = vld [vmem:[#allocation7 + $0x220] sm:$0xf] }
  0x8d   : > { %2876 = vmatpush.bf16.msrb.mxu0 %v7289_v36  ;;  %9471 = vst [vmem:[#allocation58_spill] sm:$0xff] %v7306_v54  ;;  %v6201_v19 = vld [vmem:[#allocation7 + $0x224] sm:$0xf0]  ;;  %v4925_v24 = vld [vmem:[#allocation7 + $0x2a0] sm:$0xf]  ;;  %v7316_v4 = vor.u32 %v6251_v41, %v5061_v15 }
  0x8e   : > { %2889 = vmatpush.bf16.msrb.mxu1 %v7295_v37  ;;  %9472 = vst [vmem:[#allocation59_spill] sm:$0xff] %v7311_v10  ;;  %v6217_v36 = vld [vmem:[#allocation7 + $0x2a4] sm:$0xf0]  ;;  %v4989_v47 = vld [vmem:[#allocation7 + $0x320] sm:$0xf]  ;;  %v7319_v37 = vor.u32 %v6201_v19, %v4861_v13 }
  0x8f   : > { %2902 = vmatpush.bf16.msrb.mxu2 %v7297_v39  ;;  %9473 = vst [vmem:[#allocation60_spill] sm:$0xff] %v7313_v11  ;;  %v6233_v63 = vld [vmem:[#allocation7 + $0x324] sm:$0xf0]  ;;  %v5053_v48 = vld [vmem:[#allocation7 + $0x3a0] sm:$0xf]  ;;  %v7323_v40 = vor.u32 %v6217_v36, %v4925_v24 }
  0x90   : > { %2915 = vmatpush.bf16.msrb.mxu3 %v7300_v1  ;;  %9474 = vst [vmem:[#allocation61_spill] sm:$0xff] %v7316_v4  ;;  %v6249_v31 = vld [vmem:[#allocation7 + $0x3a4] sm:$0xf0]  ;;  %v7325_v0 = vor.u32 %v6233_v63, %v4989_v47  ;;  %v4853_v49 = vld [vmem:[#allocation7 + $0x210] sm:$0xf] }
  0x91   : > { %2877 = vmatpush.bf16.msrb.mxu0 %v7306_v54  ;;  %9475 = vst [vmem:[#allocation62_spill] sm:$0xff] %v7319_v37  ;;  %v6199_v41 = vld [vmem:[#allocation7 + $0x214] sm:$0xf0]  ;;  %v4917_v53 = vld [vmem:[#allocation7 + $0x290] sm:$0xf]  ;;  %v7328_v15 = vor.u32 %v6249_v31, %v5053_v48 }
  0x92   : > { %2890 = vmatpush.bf16.msrb.mxu1 %v7311_v10  ;;  %9476 = vst [vmem:[#allocation63_spill] sm:$0xff] %v7323_v40  ;;  %v6215_v1 = vld [vmem:[#allocation7 + $0x294] sm:$0xf0]  ;;  %v4981_v39 = vld [vmem:[#allocation7 + $0x310] sm:$0xf]  ;;  %v7331_v36 = vor.u32 %v6199_v41, %v4853_v49 }
  0x93   : > { %2903 = vmatpush.bf16.msrb.mxu2 %v7313_v11  ;;  %9477 = vst [vmem:[#allocation64_spill] sm:$0xff] %v7325_v0  ;;  %v6231_v13 = vld [vmem:[#allocation7 + $0x314] sm:$0xf0]  ;;  %v5045_v19 = vld [vmem:[#allocation7 + $0x390] sm:$0xf]  ;;  %v7335_v31 = vor.u32 %v6215_v1, %v4917_v53 }
  0x94   : > { %2916 = vmatpush.bf16.msrb.mxu3 %v7316_v4  ;;  %9478 = vst [vmem:[#allocation65_spill] sm:$0xff] %v7328_v15  ;;  %v6247_v54 = vld [vmem:[#allocation7 + $0x394] sm:$0xf0]  ;;  %v4845_v10 = vld [vmem:[#allocation7 + $0x200] sm:$0xf]  ;;  %v7337_v48 = vor.u32 %v6231_v13, %v4981_v39  ;;  %v835_v13 = vunpack.c.l.b16 %v802_v22 }
  0x95   : > { %2878 = vmatpush.bf16.msrb.mxu0 %v7319_v37  ;;  %9479 = vst [vmem:[#allocation66_spill] sm:$0xff] %v7331_v36  ;;  %v6197_v24 = vld [vmem:[#allocation7 + $0x204] sm:$0xf0]  ;;  %v4909_v47 = vld [vmem:[#allocation7 + $0x280] sm:$0xf]  ;;  %v7341_v37 = vor.u32 %v6247_v54, %v5045_v19 }
  0x96   : > { %v6213_v63 = vld [vmem:[#allocation7 + $0x284] sm:$0xf0]  ;;  %2891 = vmatpush.bf16.msrb.mxu1 %v7323_v40  ;;  %9480 = vst [vmem:[#allocation67_spill] sm:$0xff] %v7335_v31  ;;  %v4973_v4 = vld [vmem:[#allocation7 + $0x300] sm:$0xf] }
  0x97   : > { %2904 = vmatpush.bf16.msrb.mxu2 %v7325_v0  ;;  %9481 = vst [vmem:[#allocation68_spill] sm:$0xff] %v7337_v48  ;;  %v6229_v11 = vld [vmem:[#allocation7 + $0x304] sm:$0xf0]  ;;  %v5037_v49 = vld [vmem:[#allocation7 + $0x380] sm:$0xf]  ;;  %v7345_v0 = vor.u32 %v6197_v24, %v4845_v10  ;;  %v7349_v54 = vor.u32 %v6213_v63, %v4909_v47 }
  0x98   : > { %2917 = vmatpush.bf16.msrb.mxu3 %v7328_v15  ;;  %9482 = vst [vmem:[#allocation69_spill] sm:$0xff] %v7341_v37  ;;  %v6245_v41 = vld [vmem:[#allocation7 + $0x384] sm:$0xf0]  ;;  %v5157_v18 = vld [vmem:[#allocation7 + $0x470] sm:$0xf]  ;;  %v7351_v19 = vor.u32 %v6229_v11, %v4973_v4 }
  0x99   : > { %v6275_v2 = vld [vmem:[#allocation7 + $0x474] sm:$0xf0]  ;;  %v5221_v61 = vld [vmem:[#allocation7 + $0x4f0] sm:$0xf]  ;;  %2879 = vmatpush.bf16.msrb.mxu0 %v7331_v36  ;;  %9483 = vst [vmem:[#allocation70_spill] sm:$0xff] %v7345_v0  ;;  %v7354_v10 = vor.u32 %v6245_v41, %v5037_v49  ;;  %v834_v36 = vunpack.c.h.b16 %v801_v20  ;;  %v7371_v20 = vpack.c.b16 %v836_v59, %v836_v59 }
  0x9a   : > { %v6291_v1 = vld [vmem:[#allocation7 + $0x4f4] sm:$0xf0]  ;;  %v5285_v39 = vld [vmem:[#allocation7 + $0x570] sm:$0xf]  ;;  %2892 = vmatpush.bf16.msrb.mxu1 %v7335_v31  ;;  %9484 = vst [vmem:[#allocation71_spill] sm:$0xff] %v7349_v54  ;;  %v7356_v24 = vor.u32 %v6275_v2, %v5157_v18  ;;  %v7369_v18 = vpack.c.b16 %v833_v60, %v833_v60 }
  0x9b   : > { %v6307_v53 = vld [vmem:[#allocation7 + $0x574] sm:$0xf0]  ;;  %2905 = vmatpush.bf16.msrb.mxu2 %v7337_v48  ;;  %9485 = vst [vmem:[#allocation72_spill] sm:$0xff] %v7351_v19  ;;  %v5349_v15 = vld [vmem:[#allocation7 + $0x5f0] sm:$0xf]  ;;  %v7358_v55 = vor.u32 %v6291_v1, %v5221_v61 }
  0x9c   : > { %v6323_v40 = vld [vmem:[#allocation7 + $0x5f4] sm:$0xf0]  ;;  %2918 = vmatpush.bf16.msrb.mxu3 %v7341_v37  ;;  %9486 = vst [vmem:[#allocation73_spill] sm:$0xff] %v7354_v10  ;;  %v7360_v31 = vor.u32 %v6307_v53, %v5285_v39  ;;  %v5149_v48 = vld [vmem:[#allocation7 + $0x460] sm:$0xf]  ;;  %v7365_v37 = vpack.c.b16 %v835_v13, %v835_v13 }
  0x9d   : > { %9487 = vst [vmem:[#allocation74_spill] sm:$0xff] %v7356_v24  ;;  %v6273_v47 = vld [vmem:[#allocation7 + $0x464] sm:$0xf0]  ;;  %v5213_v63 = vld [vmem:[#allocation7 + $0x4e0] sm:$0xf]  ;;  %2880 = vmatpush.bf16.msrb.mxu0 %v7345_v0  ;;  %v7363_v4 = vor.u32 %v6323_v40, %v5349_v15  ;;  %v7377_v15 = vpack.c.b16 %v834_v36, %v834_v36 }
  0x9e   : > { %9488 = vst [vmem:[#allocation75_spill] sm:$0xff] %v7358_v55  ;;  %v6289_v11 = vld [vmem:[#allocation7 + $0x4e4] sm:$0xf0]  ;;  %v5277_v22 = vld [vmem:[#allocation7 + $0x560] sm:$0xf]  ;;  %2893 = vmatpush.bf16.msrb.mxu1 %v7349_v54  ;;  %v7375_v40 = vor.u32 %v6273_v47, %v5149_v48 }
  0x9f   : > { %9489 = vst [vmem:[#allocation76_spill] sm:$0xff] %v7360_v31  ;;  %v6305_v52 = vld [vmem:[#allocation7 + $0x564] sm:$0xf0]  ;;  %2906 = vmatpush.bf16.msrb.mxu2 %v7351_v19  ;;  %v5341_v61 = vld [vmem:[#allocation7 + $0x5e0] sm:$0xf]  ;;  %v7381_v49 = vor.u32 %v6289_v11, %v5213_v63 }
  0xa0   : > { %9490 = vst [vmem:[#allocation77_spill] sm:$0xff] %v7363_v4  ;;  %v6321_v2 = vld [vmem:[#allocation7 + $0x5e4] sm:$0xf0]  ;;  %2919 = vmatpush.bf16.msrb.mxu3 %v7354_v10  ;;  %v7383_v41 = vor.u32 %v6305_v52, %v5277_v22  ;;  %v5141_v60 = vld [vmem:[#allocation7 + $0x450] sm:$0xf]  ;;  %2881 = vmatmul.bf16.vlgmr.msrb.gmra.mxu0 %v7369_v18 }
  0xa1   : > { %2925 = vmatpush.bf16.msra.mxu0 %v7356_v24  ;;  %9491 = vst [vmem:[#allocation78_spill] sm:$0xff] %v7375_v40  ;;  %v6271_v1 = vld [vmem:[#allocation7 + $0x454] sm:$0xf0]  ;;  %v5205_v59 = vld [vmem:[#allocation7 + $0x4d0] sm:$0xf]  ;;  %v7386_v39 = vor.u32 %v6321_v2, %v5341_v61  ;;  %2894 = vmatmul.bf16.vlgmr.msrb.gmra.mxu1 %v7377_v15  ;;  %v804_v10 = vld [vmem:[%s7127_s13 + $0x28] sm:$0xff] }
  0xa2   : > { %2938 = vmatpush.bf16.msra.mxu1 %v7358_v55  ;;  %9492 = vst [vmem:[#allocation79_spill] sm:$0xff] %v7381_v49  ;;  %2907 = vmatmul.bf16.vlgmr.msrb.gmra.mxu2 %v7365_v37  ;;  %v6287_v48 = vld [vmem:[#allocation7 + $0x4d4] sm:$0xf0]  ;;  %v5269_v36 = vld [vmem:[#allocation7 + $0x550] sm:$0xf]  ;;  %v7392_v52 = vor.u32 %v6271_v1, %v5141_v60  ;;  %v839_v51 = vunpack.c.l.b16 %v804_v10 }
  0xa3   : > { %2951 = vmatpush.bf16.msra.mxu2 %v7360_v31  ;;  %9493 = vst [vmem:[#allocation80_spill] sm:$0xff] %v7383_v41  ;;  %v6303_v53 = vld [vmem:[#allocation7 + $0x554] sm:$0xf0]  ;;  %v5333_v13 = vld [vmem:[#allocation7 + $0x5d0] sm:$0xf]  ;;  %2920 = vmatmul.bf16.vlgmr.msrb.gmra.mxu3 %v7371_v20  ;;  %v7397_v63 = vor.u32 %v6287_v48, %v5205_v59 }
  0xa4   : > { %2964 = vmatpush.bf16.msra.mxu3 %v7363_v4  ;;  %9494 = vst [vmem:[#allocation81_spill] sm:$0xff] %v7386_v39  ;;  %v6319_v47 = vld [vmem:[#allocation7 + $0x5d4] sm:$0xf0]  ;;  %v7399_v11 = vor.u32 %v6303_v53, %v5269_v36  ;;  %v5133_v22 = vld [vmem:[#allocation7 + $0x440] sm:$0xf] }
  0xa5   : > { %2926 = vmatpush.bf16.msra.mxu0 %v7375_v40  ;;  %9495 = vst [vmem:[#allocation82_spill] sm:$0xff] %v7392_v52  ;;  %v6269_v61 = vld [vmem:[#allocation7 + $0x444] sm:$0xf0]  ;;  %v5197_v2 = vld [vmem:[#allocation7 + $0x4c0] sm:$0xf]  ;;  %v7402_v4 = vor.u32 %v6319_v47, %v5333_v13 }
  0xa6   : > { %2939 = vmatpush.bf16.msra.mxu1 %v7381_v49  ;;  %9496 = vst [vmem:[#allocation83_spill] sm:$0xff] %v7397_v63  ;;  %v6285_v40 = vld [vmem:[#allocation7 + $0x4c4] sm:$0xf0]  ;;  %v5261_v60 = vld [vmem:[#allocation7 + $0x540] sm:$0xf]  ;;  %v7405_v49 = vor.u32 %v6269_v61, %v5133_v22 }
  0xa7   : > { %2952 = vmatpush.bf16.msra.mxu2 %v7383_v41  ;;  %9497 = vst [vmem:[#allocation84_spill] sm:$0xff] %v7399_v11  ;;  %v6301_v1 = vld [vmem:[#allocation7 + $0x544] sm:$0xf0]  ;;  %v5325_v31 = vld [vmem:[#allocation7 + $0x5c0] sm:$0xf]  ;;  %v7409_v59 = vor.u32 %v6285_v40, %v5197_v2 }
  0xa8   : > { %2965 = vmatpush.bf16.msra.mxu3 %v7386_v39  ;;  %9498 = vst [vmem:[#allocation85_spill] sm:$0xff] %v7402_v4  ;;  %v6317_v55 = vld [vmem:[#allocation7 + $0x5c4] sm:$0xf0]  ;;  %v7411_v48 = vor.u32 %v6301_v1, %v5261_v60  ;;  %v5125_v36 = vld [vmem:[#allocation7 + $0x430] sm:$0xf] }
  0xa9   : > { %2927 = vmatpush.bf16.msra.mxu0 %v7392_v52  ;;  %9499 = vst [vmem:[#allocation86_spill] sm:$0xff] %v7405_v49  ;;  %v6267_v53 = vld [vmem:[#allocation7 + $0x434] sm:$0xf0]  ;;  %v5189_v13 = vld [vmem:[#allocation7 + $0x4b0] sm:$0xf]  ;;  %v7414_v47 = vor.u32 %v6317_v55, %v5325_v31 }
  0xaa   : > { %2940 = vmatpush.bf16.msra.mxu1 %v7397_v63  ;;  %9500 = vst [vmem:[#allocation87_spill] sm:$0xff] %v7409_v59  ;;  %v6283_v39 = vld [vmem:[#allocation7 + $0x4b4] sm:$0xf0]  ;;  %v5253_v41 = vld [vmem:[#allocation7 + $0x530] sm:$0xf]  ;;  %v7417_v63 = vor.u32 %v6267_v53, %v5125_v36 }
  0xab   : > { %2953 = vmatpush.bf16.msra.mxu2 %v7399_v11  ;;  %9501 = vst [vmem:[#allocation88_spill] sm:$0xff] %v7411_v48  ;;  %v6299_v52 = vld [vmem:[#allocation7 + $0x534] sm:$0xf0]  ;;  %v5317_v22 = vld [vmem:[#allocation7 + $0x5b0] sm:$0xf]  ;;  %v7421_v40 = vor.u32 %v6283_v39, %v5189_v13 }
  0xac   : > { %2966 = vmatpush.bf16.msra.mxu3 %v7402_v4  ;;  %9502 = vst [vmem:[#allocation89_spill] sm:$0xff] %v7414_v47  ;;  %v6315_v61 = vld [vmem:[#allocation7 + $0x5b4] sm:$0xf0]  ;;  %v7423_v2 = vor.u32 %v6299_v52, %v5253_v41  ;;  %v5117_v60 = vld [vmem:[#allocation7 + $0x420] sm:$0xf] }
  0xad   : > { %2928 = vmatpush.bf16.msra.mxu0 %v7405_v49  ;;  %9503 = vst [vmem:[#allocation90_spill] sm:$0xff] %v7417_v63  ;;  %v6265_v55 = vld [vmem:[#allocation7 + $0x424] sm:$0xf0]  ;;  %v5181_v31 = vld [vmem:[#allocation7 + $0x4a0] sm:$0xf]  ;;  %v7426_v1 = vor.u32 %v6315_v61, %v5317_v22 }
  0xae   : > { %2941 = vmatpush.bf16.msra.mxu1 %v7409_v59  ;;  %9504 = vst [vmem:[#allocation91_spill] sm:$0xff] %v7421_v40  ;;  %v6281_v4 = vld [vmem:[#allocation7 + $0x4a4] sm:$0xf0]  ;;  %v5245_v11 = vld [vmem:[#allocation7 + $0x520] sm:$0xf]  ;;  %v7429_v59 = vor.u32 %v6265_v55, %v5117_v60 }
  0xaf   : > { %2954 = vmatpush.bf16.msra.mxu2 %v7411_v48  ;;  %9505 = vst [vmem:[#allocation92_spill] sm:$0xff] %v7423_v2  ;;  %v6297_v49 = vld [vmem:[#allocation7 + $0x524] sm:$0xf0]  ;;  %v5309_v36 = vld [vmem:[#allocation7 + $0x5a0] sm:$0xf]  ;;  %v7433_v41 = vor.u32 %v6281_v4, %v5181_v31 }
  0xb0   : > { %2967 = vmatpush.bf16.msra.mxu3 %v7414_v47  ;;  %9506 = vst [vmem:[#allocation93_spill] sm:$0xff] %v7426_v1  ;;  %v6313_v53 = vld [vmem:[#allocation7 + $0x5a4] sm:$0xf0]  ;;  %v5109_v39 = vld [vmem:[#allocation7 + $0x410] sm:$0xf]  ;;  %v7435_v52 = vor.u32 %v6297_v49, %v5245_v11 }
  0xb1   : > { %2929 = vmatpush.bf16.msra.mxu0 %v7417_v63  ;;  %9507 = vst [vmem:[#allocation94_spill] sm:$0xff] %v7429_v59  ;;  %v6263_v13 = vld [vmem:[#allocation7 + $0x414] sm:$0xf0]  ;;  %v5173_v22 = vld [vmem:[#allocation7 + $0x490] sm:$0xf]  ;;  %v7438_v47 = vor.u32 %v6313_v53, %v5309_v36 }
  0xb2   : > { %2942 = vmatpush.bf16.msra.mxu1 %v7421_v40  ;;  %9508 = vst [vmem:[#allocation95_spill] sm:$0xff] %v7433_v41  ;;  %v6279_v61 = vld [vmem:[#allocation7 + $0x494] sm:$0xf0]  ;;  %v5237_v48 = vld [vmem:[#allocation7 + $0x510] sm:$0xf]  ;;  %v7441_v4 = vor.u32 %v6263_v13, %v5109_v39  ;;  %v803_v40 = vld [vmem:[%s7127_s13 + $0x20] sm:$0xff] }
  0xb3   : > { %2955 = vmatpush.bf16.msra.mxu2 %v7423_v2  ;;  %9509 = vst [vmem:[#allocation96_spill] sm:$0xff] %v7435_v52  ;;  %v6295_v60 = vld [vmem:[#allocation7 + $0x514] sm:$0xf0]  ;;  %v5301_v55 = vld [vmem:[#allocation7 + $0x590] sm:$0xf]  ;;  %v7445_v36 = vor.u32 %v6279_v61, %v5173_v22  ;;  %v838_v43 = vunpack.c.h.b16 %v803_v40 }
  0xb4   : > { %2968 = vmatpush.bf16.msra.mxu3 %v7426_v1  ;;  %9510 = vst [vmem:[#allocation97_spill] sm:$0xff] %v7438_v47  ;;  %v6311_v63 = vld [vmem:[#allocation7 + $0x594] sm:$0xf0]  ;;  %v5101_v24 = vld [vmem:[#allocation7 + $0x400] sm:$0xf]  ;;  %v7447_v53 = vor.u32 %v6295_v60, %v5237_v48  ;;  %v837_v60 = vunpack.c.l.b16 %v803_v40 }
  0xb5   : > { %2930 = vmatpush.bf16.msra.mxu0 %v7429_v59  ;;  %9511 = vst [vmem:[#allocation98_spill] sm:$0xff] %v7441_v4  ;;  %v6261_v49 = vld [vmem:[#allocation7 + $0x404] sm:$0xf0]  ;;  %v5165_v11 = vld [vmem:[#allocation7 + $0x480] sm:$0xf]  ;;  %v7451_v59 = vor.u32 %v6311_v63, %v5301_v55 }
  0xb6   : > { %v6277_v31 = vld [vmem:[#allocation7 + $0x484] sm:$0xf0]  ;;  %2943 = vmatpush.bf16.msra.mxu1 %v7433_v41  ;;  %9512 = vst [vmem:[#allocation99_spill] sm:$0xff] %v7445_v36  ;;  %v5229_v1 = vld [vmem:[#allocation7 + $0x500] sm:$0xf] }
  0xb7   : > { %2956 = vmatpush.bf16.msra.mxu2 %v7435_v52  ;;  %9513 = vst [vmem:[#allocation100_spill] sm:$0xff] %v7447_v53  ;;  %v6293_v2 = vld [vmem:[#allocation7 + $0x504] sm:$0xf0]  ;;  %v5293_v39 = vld [vmem:[#allocation7 + $0x580] sm:$0xf]  ;;  %v7455_v52 = vor.u32 %v6261_v49, %v5101_v24  ;;  %v7459_v63 = vor.u32 %v6277_v31, %v5165_v11 }
  0xb8   : > { %2969 = vmatpush.bf16.msra.mxu3 %v7438_v47  ;;  %9514 = vst [vmem:[#allocation101_spill] sm:$0xff] %v7451_v59  ;;  %v6309_v13 = vld [vmem:[#allocation7 + $0x584] sm:$0xf0]  ;;  %v5413_v19 = vld [vmem:[#allocation7 + $0x670] sm:$0xf]  ;;  %v7461_v55 = vor.u32 %v6293_v2, %v5229_v1  ;;  %v7475_v1 = vpack.c.b16 %v837_v60, %v837_v60 }
  0xb9   : > { %v6339_v54 = vld [vmem:[#allocation7 + $0x674] sm:$0xf0]  ;;  %v5477_v0 = vld [vmem:[#allocation7 + $0x6f0] sm:$0xf]  ;;  %2931 = vmatpush.bf16.msra.mxu0 %v7441_v4  ;;  %9515 = vst [vmem:[#allocation102_spill] sm:$0xff] %v7455_v52  ;;  %v7464_v24 = vor.u32 %v6309_v13, %v5293_v39  ;;  %v840_v4 = vunpack.c.h.b16 %v804_v10 }
  0xba   : > { %v6355_v22 = vld [vmem:[#allocation7 + $0x6f4] sm:$0xf0]  ;;  %v5541_v48 = vld [vmem:[#allocation7 + $0x770] sm:$0xf]  ;;  %2944 = vmatpush.bf16.msra.mxu1 %v7445_v36  ;;  %9516 = vst [vmem:[#allocation103_spill] sm:$0xff] %v7459_v63  ;;  %v7466_v49 = vor.u32 %v6339_v54, %v5413_v19  ;;  %v7481_v54 = vpack.c.b16 %v838_v43, %v838_v43 }
  0xbb   : > { %v6371_v61 = vld [vmem:[#allocation7 + $0x774] sm:$0xf0]  ;;  %2957 = vmatpush.bf16.msra.mxu2 %v7447_v53  ;;  %9517 = vst [vmem:[#allocation104_spill] sm:$0xff] %v7461_v55  ;;  %v5605_v47 = vld [vmem:[#allocation7 + $0x7f0] sm:$0xf]  ;;  %v7468_v35 = vor.u32 %v6355_v22, %v5477_v0  ;;  %v7479_v0 = vpack.c.b16 %v839_v51, %v839_v51 }
  0xbc   : > { %v6387_v41 = vld [vmem:[#allocation7 + $0x7f4] sm:$0xf0]  ;;  %2970 = vmatpush.bf16.msra.mxu3 %v7451_v59  ;;  %9518 = vst [vmem:[#allocation105_spill] sm:$0xff] %v7464_v24  ;;  %v7470_v36 = vor.u32 %v6371_v61, %v5541_v48  ;;  %v5405_v53 = vld [vmem:[#allocation7 + $0x660] sm:$0xf] }
  0xbd   : > { %9519 = vst [vmem:[#allocation106_spill] sm:$0xff] %v7466_v49  ;;  %v6337_v11 = vld [vmem:[#allocation7 + $0x664] sm:$0xf0]  ;;  %v5469_v31 = vld [vmem:[#allocation7 + $0x6e0] sm:$0xf]  ;;  %2932 = vmatpush.bf16.msra.mxu0 %v7455_v52  ;;  %v7473_v2 = vor.u32 %v6387_v41, %v5605_v47  ;;  %v7485_v47 = vpack.c.b16 %v840_v4, %v840_v4 }
  0xbe   : > { %9520 = vst [vmem:[#allocation107_spill] sm:$0xff] %v7468_v35  ;;  %v6353_v40 = vld [vmem:[#allocation7 + $0x6e4] sm:$0xf0]  ;;  %v5533_v59 = vld [vmem:[#allocation7 + $0x760] sm:$0xf]  ;;  %2945 = vmatpush.bf16.msra.mxu1 %v7459_v63  ;;  %v7487_v41 = vor.u32 %v6337_v11, %v5405_v53 }
  0xbf   : > { %9521 = vst [vmem:[#allocation108_spill] sm:$0xff] %v7470_v36  ;;  %v6369_v39 = vld [vmem:[#allocation7 + $0x764] sm:$0xf0]  ;;  %2958 = vmatpush.bf16.msra.mxu2 %v7461_v55  ;;  %v5597_v19 = vld [vmem:[#allocation7 + $0x7e0] sm:$0xf]  ;;  %v7491_v13 = vor.u32 %v6353_v40, %v5469_v31  ;;  %v806_v55 = vld [vmem:[%s7127_s13 + $0x38] sm:$0xff] }
  0xc0   : > { %9522 = vst [vmem:[#allocation109_spill] sm:$0xff] %v7473_v2  ;;  %v6385_v10 = vld [vmem:[#allocation7 + $0x7e4] sm:$0xf0]  ;;  %2971 = vmatpush.bf16.msra.mxu3 %v7464_v24  ;;  %v7493_v51 = vor.u32 %v6369_v39, %v5533_v59  ;;  %v5397_v43 = vld [vmem:[#allocation7 + $0x650] sm:$0xf]  ;;  %2933 = vmatmul.bf16.vlgmr.msra.gmra.mxu0 %v7475_v1  ;;  %v843_v27 = vunpack.c.l.b16 %v806_v55 }
  0xc1   : > { %2977 = vmatpush.bf16.msrb.mxu0 %v7466_v49  ;;  %9523 = vst [vmem:[#allocation110_spill] sm:$0xff] %v7487_v41  ;;  %v6335_v22 = vld [vmem:[#allocation7 + $0x654] sm:$0xf0]  ;;  %v5461_v48 = vld [vmem:[#allocation7 + $0x6d0] sm:$0xf]  ;;  %v7497_v61 = vor.u32 %v6385_v10, %v5597_v19  ;;  %2946 = vmatmul.bf16.vlgmr.msra.gmra.mxu1 %v7481_v54 }
  0xc2   : > { %2990 = vmatpush.bf16.msrb.mxu1 %v7468_v35  ;;  %9524 = vst [vmem:[#allocation111_spill] sm:$0xff] %v7491_v13  ;;  %v6351_v4 = vld [vmem:[#allocation7 + $0x6d4] sm:$0xf0]  ;;  %v5525_v53 = vld [vmem:[#allocation7 + $0x750] sm:$0xf]  ;;  %2959 = vmatmul.bf16.vlgmr.msra.gmra.mxu2 %v7479_v0  ;;  %v7503_v59 = vor.u32 %v6335_v22, %v5397_v43 }
  0xc3   : > { %3003 = vmatpush.bf16.msrb.mxu2 %v7470_v36  ;;  %9525 = vst [vmem:[#allocation112_spill] sm:$0xff] %v7493_v51  ;;  %v6367_v60 = vld [vmem:[#allocation7 + $0x754] sm:$0xf0]  ;;  %v5589_v11 = vld [vmem:[#allocation7 + $0x7d0] sm:$0xf]  ;;  %2972 = vmatmul.bf16.vlgmr.msra.gmra.mxu3 %v7485_v47  ;;  %v7507_v40 = vor.u32 %v6351_v4, %v5461_v48 }
  0xc4   : > { %3016 = vmatpush.bf16.msrb.mxu3 %v7473_v2  ;;  %9526 = vst [vmem:[#allocation113_spill] sm:$0xff] %v7497_v61  ;;  %v6383_v31 = vld [vmem:[#allocation7 + $0x7d4] sm:$0xf0]  ;;  %v7509_v39 = vor.u32 %v6367_v60, %v5525_v53  ;;  %v5389_v19 = vld [vmem:[#allocation7 + $0x640] sm:$0xf]  ;;  %v805_v24 = vld [vmem:[%s7127_s13 + $0x30] sm:$0xff] }
  0xc5   : > { %2978 = vmatpush.bf16.msrb.mxu0 %v7487_v41  ;;  %9527 = vst [vmem:[#allocation114_spill] sm:$0xff] %v7503_v59  ;;  %v6333_v10 = vld [vmem:[#allocation7 + $0x644] sm:$0xf0]  ;;  %v5453_v2 = vld [vmem:[#allocation7 + $0x6c0] sm:$0xf]  ;;  %v7512_v36 = vor.u32 %v6383_v31, %v5589_v11  ;;  %v842_v23 = vunpack.c.h.b16 %v805_v24 }
  0xc6   : > { %2991 = vmatpush.bf16.msrb.mxu1 %v7491_v13  ;;  %9528 = vst [vmem:[#allocation115_spill] sm:$0xff] %v7507_v40  ;;  %v6349_v35 = vld [vmem:[#allocation7 + $0x6c4] sm:$0xf0]  ;;  %v5517_v49 = vld [vmem:[#allocation7 + $0x740] sm:$0xf]  ;;  %v7515_v13 = vor.u32 %v6333_v10, %v5389_v19 }
  0xc7   : > { %3004 = vmatpush.bf16.msrb.mxu2 %v7493_v51  ;;  %9529 = vst [vmem:[#allocation116_spill] sm:$0xff] %v7509_v39  ;;  %v6365_v41 = vld [vmem:[#allocation7 + $0x744] sm:$0xf0]  ;;  %v5581_v43 = vld [vmem:[#allocation7 + $0x7c0] sm:$0xf]  ;;  %v7519_v48 = vor.u32 %v6349_v35, %v5453_v2 }
  0xc8   : > { %3017 = vmatpush.bf16.msrb.mxu3 %v7497_v61  ;;  %9530 = vst [vmem:[#allocation117_spill] sm:$0xff] %v7512_v36  ;;  %v6381_v22 = vld [vmem:[#allocation7 + $0x7c4] sm:$0xf0]  ;;  %v7521_v4 = vor.u32 %v6365_v41, %v5517_v49  ;;  %v5381_v53 = vld [vmem:[#allocation7 + $0x630] sm:$0xf] }
  0xc9   : > { %2979 = vmatpush.bf16.msrb.mxu0 %v7503_v59  ;;  %9531 = vst [vmem:[#allocation118_spill] sm:$0xff] %v7515_v13  ;;  %v6331_v60 = vld [vmem:[#allocation7 + $0x634] sm:$0xf0]  ;;  %v5445_v11 = vld [vmem:[#allocation7 + $0x6b0] sm:$0xf]  ;;  %v7524_v31 = vor.u32 %v6381_v22, %v5581_v43 }
  0xca   : > { %2992 = vmatpush.bf16.msrb.mxu1 %v7507_v40  ;;  %9532 = vst [vmem:[#allocation119_spill] sm:$0xff] %v7519_v48  ;;  %v6347_v61 = vld [vmem:[#allocation7 + $0x6b4] sm:$0xf0]  ;;  %v5509_v51 = vld [vmem:[#allocation7 + $0x730] sm:$0xf]  ;;  %v7527_v40 = vor.u32 %v6331_v60, %v5381_v53 }
  0xcb   : > { %3005 = vmatpush.bf16.msrb.mxu2 %v7509_v39  ;;  %9533 = vst [vmem:[#allocation120_spill] sm:$0xff] %v7521_v4  ;;  %v6363_v59 = vld [vmem:[#allocation7 + $0x734] sm:$0xf0]  ;;  %v5573_v19 = vld [vmem:[#allocation7 + $0x7b0] sm:$0xf]  ;;  %v7531_v35 = vor.u32 %v6347_v61, %v5445_v11 }
  0xcc   : > { %3018 = vmatpush.bf16.msrb.mxu3 %v7512_v36  ;;  %9534 = vst [vmem:[#allocation121_spill] sm:$0xff] %v7524_v31  ;;  %v6379_v10 = vld [vmem:[#allocation7 + $0x7b4] sm:$0xf0]  ;;  %v7533_v49 = vor.u32 %v6363_v59, %v5509_v51  ;;  %v5373_v2 = vld [vmem:[#allocation7 + $0x620] sm:$0xf] }
  0xcd   : > { %2980 = vmatpush.bf16.msrb.mxu0 %v7515_v13  ;;  %9535 = vst [vmem:[#allocation122_spill] sm:$0xff] %v7527_v40  ;;  %v6329_v41 = vld [vmem:[#allocation7 + $0x624] sm:$0xf0]  ;;  %v5437_v43 = vld [vmem:[#allocation7 + $0x6a0] sm:$0xf]  ;;  %v7536_v22 = vor.u32 %v6379_v10, %v5573_v19 }
  0xce   : > { %2993 = vmatpush.bf16.msrb.mxu1 %v7519_v48  ;;  %9536 = vst [vmem:[#allocation123_spill] sm:$0xff] %v7531_v35  ;;  %v6345_v36 = vld [vmem:[#allocation7 + $0x6a4] sm:$0xf0]  ;;  %v5501_v39 = vld [vmem:[#allocation7 + $0x720] sm:$0xf]  ;;  %v7539_v48 = vor.u32 %v6329_v41, %v5373_v2 }
  0xcf   : > { %3006 = vmatpush.bf16.msrb.mxu2 %v7521_v4  ;;  %9537 = vst [vmem:[#allocation124_spill] sm:$0xff] %v7533_v49  ;;  %v6361_v13 = vld [vmem:[#allocation7 + $0x724] sm:$0xf0]  ;;  %v5565_v53 = vld [vmem:[#allocation7 + $0x7a0] sm:$0xf]  ;;  %v7543_v51 = vor.u32 %v6345_v36, %v5437_v43 }
  0xd0   : > { %3019 = vmatpush.bf16.msrb.mxu3 %v7524_v31  ;;  %9538 = vst [vmem:[#allocation125_spill] sm:$0xff] %v7536_v22  ;;  %v6377_v60 = vld [vmem:[#allocation7 + $0x7a4] sm:$0xf0]  ;;  %v7545_v61 = vor.u32 %v6361_v13, %v5501_v39  ;;  %v5365_v59 = vld [vmem:[#allocation7 + $0x610] sm:$0xf] }
  0xd1   : > { %2981 = vmatpush.bf16.msrb.mxu0 %v7527_v40  ;;  %9539 = vst [vmem:[#allocation126_spill] sm:$0xff] %v7539_v48  ;;  %v6327_v11 = vld [vmem:[#allocation7 + $0x614] sm:$0xf0]  ;;  %v5429_v19 = vld [vmem:[#allocation7 + $0x690] sm:$0xf]  ;;  %v7548_v10 = vor.u32 %v6377_v60, %v5565_v53 }
  0xd2   : > { %2994 = vmatpush.bf16.msrb.mxu1 %v7531_v35  ;;  %9540 = vst [vmem:[#allocation127_spill] sm:$0xff] %v7543_v51  ;;  %v6343_v31 = vld [vmem:[#allocation7 + $0x694] sm:$0xf0]  ;;  %v5493_v4 = vld [vmem:[#allocation7 + $0x710] sm:$0xf]  ;;  %v7551_v36 = vor.u32 %v6327_v11, %v5365_v59 }
  0xd3   : > { %3007 = vmatpush.bf16.msrb.mxu2 %v7533_v49  ;;  %9541 = vst [vmem:[#allocation128_spill] sm:$0xff] %v7545_v61  ;;  %v6359_v2 = vld [vmem:[#allocation7 + $0x714] sm:$0xf0]  ;;  %v5557_v41 = vld [vmem:[#allocation7 + $0x790] sm:$0xf]  ;;  %v7555_v53 = vor.u32 %v6343_v31, %v5429_v19 }
  0xd4   : > { %3020 = vmatpush.bf16.msrb.mxu3 %v7536_v22  ;;  %9542 = vst [vmem:[#allocation129_spill] sm:$0xff] %v7548_v10  ;;  %v6375_v40 = vld [vmem:[#allocation7 + $0x794] sm:$0xf0]  ;;  %v5357_v35 = vld [vmem:[#allocation7 + $0x600] sm:$0xf]  ;;  %v7557_v60 = vor.u32 %v6359_v2, %v5493_v4  ;;  %v841_v2 = vunpack.c.l.b16 %v805_v24 }
  0xd5   : > { %2982 = vmatpush.bf16.msrb.mxu0 %v7539_v48  ;;  %9543 = vst [vmem:[#allocation130_spill] sm:$0xff] %v7551_v36  ;;  %v6325_v13 = vld [vmem:[#allocation7 + $0x604] sm:$0xf0]  ;;  %v5421_v39 = vld [vmem:[#allocation7 + $0x680] sm:$0xf]  ;;  %v7561_v48 = vor.u32 %v6375_v40, %v5557_v41 }
  0xd6   : > { %v6341_v43 = vld [vmem:[#allocation7 + $0x684] sm:$0xf0]  ;;  %2995 = vmatpush.bf16.msrb.mxu1 %v7543_v51  ;;  %9544 = vst [vmem:[#allocation131_spill] sm:$0xff] %v7555_v53  ;;  %v5485_v22 = vld [vmem:[#allocation7 + $0x700] sm:$0xf] }
  0xd7   : > { %3008 = vmatpush.bf16.msrb.mxu2 %v7545_v61  ;;  %9545 = vst [vmem:[#allocation132_spill] sm:$0xff] %v7557_v60  ;;  %v6357_v49 = vld [vmem:[#allocation7 + $0x704] sm:$0xf0]  ;;  %v5549_v59 = vld [vmem:[#allocation7 + $0x780] sm:$0xf]  ;;  %v7565_v61 = vor.u32 %v6325_v13, %v5357_v35  ;;  %v7569_v40 = vor.u32 %v6341_v43, %v5421_v39 }
  0xd8   : > { %3021 = vmatpush.bf16.msrb.mxu3 %v7548_v10  ;;  %9546 = vst [vmem:[#allocation133_spill] sm:$0xff] %v7561_v48  ;;  %v6373_v11 = vld [vmem:[#allocation7 + $0x784] sm:$0xf0]  ;;  %v5669_v63 = vld [vmem:[#allocation7 + $0x870] sm:$0xf]  ;;  %v7571_v41 = vor.u32 %v6357_v49, %v5485_v22  ;;  %v7585_v22 = vpack.c.b16 %v841_v2, %v841_v2 }
  0xd9   : > { %v6403_v52 = vld [vmem:[#allocation7 + $0x874] sm:$0xf0]  ;;  %v5733_v28 = vld [vmem:[#allocation7 + $0x8f0] sm:$0xf]  ;;  %2983 = vmatpush.bf16.msrb.mxu0 %v7551_v36  ;;  %9547 = vst [vmem:[#allocation134_spill] sm:$0xff] %v7565_v61  ;;  %v7574_v35 = vor.u32 %v6373_v11, %v5549_v59  ;;  %v844_v36 = vunpack.c.h.b16 %v806_v55 }
  0xda   : > { %v6419_v31 = vld [vmem:[#allocation7 + $0x8f4] sm:$0xf0]  ;;  %v5797_v4 = vld [vmem:[#allocation7 + $0x970] sm:$0xf]  ;;  %2996 = vmatpush.bf16.msrb.mxu1 %v7555_v53  ;;  %9548 = vst [vmem:[#allocation135_spill] sm:$0xff] %v7569_v40  ;;  %v7576_v13 = vor.u32 %v6403_v52, %v5669_v63  ;;  %v7591_v52 = vpack.c.b16 %v842_v23, %v842_v23 }
  0xdb   : > { %v6435_v19 = vld [vmem:[#allocation7 + $0x974] sm:$0xf0]  ;;  %3009 = vmatpush.bf16.msrb.mxu2 %v7557_v60  ;;  %9549 = vst [vmem:[#allocation136_spill] sm:$0xff] %v7571_v41  ;;  %v5861_v10 = vld [vmem:[#allocation7 + $0x9f0] sm:$0xf]  ;;  %v7578_v14 = vor.u32 %v6419_v31, %v5733_v28  ;;  %v7589_v28 = vpack.c.b16 %v843_v27, %v843_v27 }
  0xdc   : > { %v6451_v51 = vld [vmem:[#allocation7 + $0x9f4] sm:$0xf0]  ;;  %3022 = vmatpush.bf16.msrb.mxu3 %v7561_v48  ;;  %9550 = vst [vmem:[#allocation137_spill] sm:$0xff] %v7574_v35  ;;  %v7580_v53 = vor.u32 %v6435_v19, %v5797_v4  ;;  %v5661_v60 = vld [vmem:[#allocation7 + $0x860] sm:$0xf] }
  0xdd   : > { %9551 = vst [vmem:[#allocation138_spill] sm:$0xff] %v7576_v13  ;;  %v6401_v39 = vld [vmem:[#allocation7 + $0x864] sm:$0xf0]  ;;  %v5725_v43 = vld [vmem:[#allocation7 + $0x8e0] sm:$0xf]  ;;  %2984 = vmatpush.bf16.msrb.mxu0 %v7565_v61  ;;  %v7583_v49 = vor.u32 %v6451_v51, %v5861_v10  ;;  %v7595_v51 = vpack.c.b16 %v844_v36, %v844_v36 }
  0xde   : > { %9552 = vst [vmem:[#allocation139_spill] sm:$0xff] %v7578_v14  ;;  %v6417_v24 = vld [vmem:[#allocation7 + $0x8e4] sm:$0xf0]  ;;  %v5789_v48 = vld [vmem:[#allocation7 + $0x960] sm:$0xf]  ;;  %2997 = vmatpush.bf16.msrb.mxu1 %v7569_v40  ;;  %v7597_v10 = vor.u32 %v6401_v39, %v5661_v60 }
  0xdf   : > { %9553 = vst [vmem:[#allocation140_spill] sm:$0xff] %v7580_v53  ;;  %v6433_v59 = vld [vmem:[#allocation7 + $0x964] sm:$0xf0]  ;;  %3010 = vmatpush.bf16.msrb.mxu2 %v7571_v41  ;;  %v5853_v63 = vld [vmem:[#allocation7 + $0x9e0] sm:$0xf]  ;;  %v7601_v11 = vor.u32 %v6417_v24, %v5725_v43 }
  0xe0   : > { %9554 = vst [vmem:[#allocation141_spill] sm:$0xff] %v7583_v49  ;;  %v6449_v55 = vld [vmem:[#allocation7 + $0x9e4] sm:$0xf0]  ;;  %3023 = vmatpush.bf16.msrb.mxu3 %v7574_v35  ;;  %v7603_v27 = vor.u32 %v6433_v59, %v5789_v48  ;;  %v5653_v23 = vld [vmem:[#allocation7 + $0x850] sm:$0xf]  ;;  %2985 = vmatmul.bf16.vlgmr.msrb.gmra.mxu0 %v7585_v22  ;;  %v807_v35 = vld [vmem:[%s7127_s13 + $0x40] sm:$0xff] }
  0xe1   : > { %3029 = vmatpush.bf16.msra.mxu0 %v7576_v13  ;;  %9555 = vst [vmem:[#allocation142_spill] sm:$0xff] %v7597_v10  ;;  %v6399_v31 = vld [vmem:[#allocation7 + $0x854] sm:$0xf0]  ;;  %v5717_v4 = vld [vmem:[#allocation7 + $0x8d0] sm:$0xf]  ;;  %v7607_v19 = vor.u32 %v6449_v55, %v5853_v63  ;;  %2998 = vmatmul.bf16.vlgmr.msrb.gmra.mxu1 %v7591_v52  ;;  %v808_v41 = vld [vmem:[%s7127_s13 + $0x48] sm:$0xff]  ;;  %v846_v5 = vunpack.c.h.b16 %v807_v35 }
  0xe2   : > { %3042 = vmatpush.bf16.msra.mxu1 %v7578_v14  ;;  %9556 = vst [vmem:[#allocation143_spill] sm:$0xff] %v7601_v11  ;;  %v6415_v36 = vld [vmem:[#allocation7 + $0x8d4] sm:$0xf0]  ;;  %v5781_v60 = vld [vmem:[#allocation7 + $0x950] sm:$0xf]  ;;  %3011 = vmatmul.bf16.vlgmr.msrb.gmra.mxu2 %v7589_v28  ;;  %v7613_v48 = vor.u32 %v6399_v31, %v5653_v23  ;;  %v847_v6 = vunpack.c.l.b16 %v808_v41 }
  0xe3   : > { %3055 = vmatpush.bf16.msra.mxu2 %v7580_v53  ;;  %9557 = vst [vmem:[#allocation144_spill] sm:$0xff] %v7603_v27  ;;  %v6431_v2 = vld [vmem:[#allocation7 + $0x954] sm:$0xf0]  ;;  %v5845_v39 = vld [vmem:[#allocation7 + $0x9d0] sm:$0xf]  ;;  %3024 = vmatmul.bf16.vlgmr.msrb.gmra.mxu3 %v7595_v51  ;;  %v7617_v24 = vor.u32 %v6415_v36, %v5717_v4 }
  0xe4   : > { %3068 = vmatpush.bf16.msra.mxu3 %v7583_v49  ;;  %9558 = vst [vmem:[#allocation145_spill] sm:$0xff] %v7607_v19  ;;  %v6447_v43 = vld [vmem:[#allocation7 + $0x9d4] sm:$0xf0]  ;;  %v7619_v59 = vor.u32 %v6431_v2, %v5781_v60  ;;  %v5645_v63 = vld [vmem:[#allocation7 + $0x840] sm:$0xf] }
  0xe5   : > { %3030 = vmatpush.bf16.msra.mxu0 %v7597_v10  ;;  %9559 = vst [vmem:[#allocation146_spill] sm:$0xff] %v7613_v48  ;;  %v6397_v55 = vld [vmem:[#allocation7 + $0x844] sm:$0xf0]  ;;  %v5709_v49 = vld [vmem:[#allocation7 + $0x8c0] sm:$0xf]  ;;  %v7622_v53 = vor.u32 %v6447_v43, %v5845_v39 }
  0xe6   : > { %3043 = vmatpush.bf16.msra.mxu1 %v7601_v11  ;;  %9560 = vst [vmem:[#allocation147_spill] sm:$0xff] %v7617_v24  ;;  %v6413_v14 = vld [vmem:[#allocation7 + $0x8c4] sm:$0xf0]  ;;  %v5773_v13 = vld [vmem:[#allocation7 + $0x940] sm:$0xf]  ;;  %v7625_v11 = vor.u32 %v6397_v55, %v5645_v63 }
  0xe7   : > { %3056 = vmatpush.bf16.msra.mxu2 %v7603_v27  ;;  %9561 = vst [vmem:[#allocation148_spill] sm:$0xff] %v7619_v59  ;;  %v6429_v10 = vld [vmem:[#allocation7 + $0x944] sm:$0xf0]  ;;  %v5837_v23 = vld [vmem:[#allocation7 + $0x9c0] sm:$0xf]  ;;  %v7629_v4 = vor.u32 %v6413_v14, %v5709_v49 }
  0xe8   : > { %3069 = vmatpush.bf16.msra.mxu3 %v7607_v19  ;;  %9562 = vst [vmem:[#allocation149_spill] sm:$0xff] %v7622_v53  ;;  %v6445_v31 = vld [vmem:[#allocation7 + $0x9c4] sm:$0xf0]  ;;  %v7631_v36 = vor.u32 %v6429_v10, %v5773_v13  ;;  %v5637_v60 = vld [vmem:[#allocation7 + $0x830] sm:$0xf] }
  0xe9   : > { %3031 = vmatpush.bf16.msra.mxu0 %v7613_v48  ;;  %9563 = vst [vmem:[#allocation150_spill] sm:$0xff] %v7625_v11  ;;  %v6395_v2 = vld [vmem:[#allocation7 + $0x834] sm:$0xf0]  ;;  %v5701_v39 = vld [vmem:[#allocation7 + $0x8b0] sm:$0xf]  ;;  %v7634_v43 = vor.u32 %v6445_v31, %v5837_v23 }
  0xea   : > { %3044 = vmatpush.bf16.msra.mxu1 %v7617_v24  ;;  %9564 = vst [vmem:[#allocation151_spill] sm:$0xff] %v7629_v4  ;;  %v6411_v19 = vld [vmem:[#allocation7 + $0x8b4] sm:$0xf0]  ;;  %v5765_v27 = vld [vmem:[#allocation7 + $0x930] sm:$0xf]  ;;  %v7637_v24 = vor.u32 %v6395_v2, %v5637_v60 }
  0xeb   : > { %3057 = vmatpush.bf16.msra.mxu2 %v7619_v59  ;;  %9565 = vst [vmem:[#allocation152_spill] sm:$0xff] %v7631_v36  ;;  %v6427_v48 = vld [vmem:[#allocation7 + $0x934] sm:$0xf0]  ;;  %v5829_v63 = vld [vmem:[#allocation7 + $0x9b0] sm:$0xf]  ;;  %v7641_v14 = vor.u32 %v6411_v19, %v5701_v39 }
  0xec   : > { %3070 = vmatpush.bf16.msra.mxu3 %v7622_v53  ;;  %9566 = vst [vmem:[#allocation153_spill] sm:$0xff] %v7634_v43  ;;  %v6443_v55 = vld [vmem:[#allocation7 + $0x9b4] sm:$0xf0]  ;;  %v7643_v13 = vor.u32 %v6427_v48, %v5765_v27  ;;  %v5629_v49 = vld [vmem:[#allocation7 + $0x820] sm:$0xf] }
  0xed   : > { %3032 = vmatpush.bf16.msra.mxu0 %v7625_v11  ;;  %9567 = vst [vmem:[#allocation154_spill] sm:$0xff] %v7637_v24  ;;  %v6393_v10 = vld [vmem:[#allocation7 + $0x824] sm:$0xf0]  ;;  %v5693_v23 = vld [vmem:[#allocation7 + $0x8a0] sm:$0xf]  ;;  %v7646_v31 = vor.u32 %v6443_v55, %v5829_v63 }
  0xee   : > { %3045 = vmatpush.bf16.msra.mxu1 %v7629_v4  ;;  %9568 = vst [vmem:[#allocation155_spill] sm:$0xff] %v7641_v14  ;;  %v6409_v53 = vld [vmem:[#allocation7 + $0x8a4] sm:$0xf0]  ;;  %v5757_v59 = vld [vmem:[#allocation7 + $0x920] sm:$0xf]  ;;  %v7649_v4 = vor.u32 %v6393_v10, %v5629_v49 }
  0xef   : > { %3058 = vmatpush.bf16.msra.mxu2 %v7631_v36  ;;  %9569 = vst [vmem:[#allocation156_spill] sm:$0xff] %v7643_v13  ;;  %v6425_v11 = vld [vmem:[#allocation7 + $0x924] sm:$0xf0]  ;;  %v5821_v60 = vld [vmem:[#allocation7 + $0x9a0] sm:$0xf]  ;;  %v7653_v27 = vor.u32 %v6409_v53, %v5693_v23 }
  0xf0   : > { %3071 = vmatpush.bf16.msra.mxu3 %v7634_v43  ;;  %9570 = vst [vmem:[#allocation157_spill] sm:$0xff] %v7646_v31  ;;  %v6441_v2 = vld [vmem:[#allocation7 + $0x9a4] sm:$0xf0]  ;;  %v7655_v19 = vor.u32 %v6425_v11, %v5757_v59  ;;  %v5621_v48 = vld [vmem:[#allocation7 + $0x810] sm:$0xf] }
  0xf1   : > { %3033 = vmatpush.bf16.msra.mxu0 %v7637_v24  ;;  %9571 = vst [vmem:[#allocation158_spill] sm:$0xff] %v7649_v4  ;;  %v6391_v39 = vld [vmem:[#allocation7 + $0x814] sm:$0xf0]  ;;  %v5685_v63 = vld [vmem:[#allocation7 + $0x890] sm:$0xf]  ;;  %v7658_v55 = vor.u32 %v6441_v2, %v5821_v60 }
  0xf2   : > { %3046 = vmatpush.bf16.msra.mxu1 %v7641_v14  ;;  %9572 = vst [vmem:[#allocation159_spill] sm:$0xff] %v7653_v27  ;;  %v6407_v43 = vld [vmem:[#allocation7 + $0x894] sm:$0xf0]  ;;  %v5749_v36 = vld [vmem:[#allocation7 + $0x910] sm:$0xf]  ;;  %v7661_v53 = vor.u32 %v6391_v39, %v5621_v48 }
  0xf3   : > { %3059 = vmatpush.bf16.msra.mxu2 %v7643_v13  ;;  %9573 = vst [vmem:[#allocation160_spill] sm:$0xff] %v7655_v19  ;;  %v6423_v49 = vld [vmem:[#allocation7 + $0x914] sm:$0xf0]  ;;  %v5813_v10 = vld [vmem:[#allocation7 + $0x990] sm:$0xf]  ;;  %v7665_v60 = vor.u32 %v6407_v43, %v5685_v63 }
  0xf4   : > { %3072 = vmatpush.bf16.msra.mxu3 %v7646_v31  ;;  %9574 = vst [vmem:[#allocation161_spill] sm:$0xff] %v7658_v55  ;;  %v6439_v24 = vld [vmem:[#allocation7 + $0x994] sm:$0xf0]  ;;  %v5613_v14 = vld [vmem:[#allocation7 + $0x800] sm:$0xf]  ;;  %v7667_v2 = vor.u32 %v6423_v49, %v5749_v36  ;;  %v845_v49 = vunpack.c.l.b16 %v807_v35 }
  0xf5   : > { %3034 = vmatpush.bf16.msra.mxu0 %v7649_v4  ;;  %9575 = vst [vmem:[#allocation162_spill] sm:$0xff] %v7661_v53  ;;  %v6389_v11 = vld [vmem:[#allocation7 + $0x804] sm:$0xf0]  ;;  %v5677_v59 = vld [vmem:[#allocation7 + $0x880] sm:$0xf]  ;;  %v7671_v4 = vor.u32 %v6439_v24, %v5813_v10 }
  0xf6   : > { %v6405_v23 = vld [vmem:[#allocation7 + $0x884] sm:$0xf0]  ;;  %3047 = vmatpush.bf16.msra.mxu1 %v7653_v27  ;;  %9576 = vst [vmem:[#allocation163_spill] sm:$0xff] %v7665_v60  ;;  %v5741_v31 = vld [vmem:[#allocation7 + $0x900] sm:$0xf] }
  0xf7   : > { %3060 = vmatpush.bf16.msra.mxu2 %v7655_v19  ;;  %9577 = vst [vmem:[#allocation164_spill] sm:$0xff] %v7667_v2  ;;  %v6421_v13 = vld [vmem:[#allocation7 + $0x904] sm:$0xf0]  ;;  %v5805_v48 = vld [vmem:[#allocation7 + $0x980] sm:$0xf]  ;;  %v7675_v19 = vor.u32 %v6389_v11, %v5613_v14  ;;  %v7679_v24 = vor.u32 %v6405_v23, %v5677_v59 }
  0xf8   : > { %3073 = vmatpush.bf16.msra.mxu3 %v7658_v55  ;;  %9578 = vst [vmem:[#allocation165_spill] sm:$0xff] %v7671_v4  ;;  %v6437_v39 = vld [vmem:[#allocation7 + $0x984] sm:$0xf0]  ;;  %v5925_v40 = vld [vmem:[#allocation7 + $0xa70] sm:$0xf]  ;;  %v7681_v10 = vor.u32 %v6421_v13, %v5741_v31  ;;  %v7695_v31 = vpack.c.b16 %v845_v49, %v845_v49 }
  0xf9   : > { %v6467_v61 = vld [vmem:[#allocation7 + $0xa74] sm:$0xf0]  ;;  %v5989_v9 = vld [vmem:[#allocation7 + $0xaf0] sm:$0xf]  ;;  %3035 = vmatpush.bf16.msra.mxu0 %v7661_v53  ;;  %9579 = vst [vmem:[#allocation166_spill] sm:$0xff] %v7675_v19  ;;  %v7684_v14 = vor.u32 %v6437_v39, %v5805_v48  ;;  %v848_v53 = vunpack.c.h.b16 %v808_v41 }
  0xfa   : > { %v6483_v43 = vld [vmem:[#allocation7 + $0xaf4] sm:$0xf0]  ;;  %v6053_v36 = vld [vmem:[#allocation7 + $0xb70] sm:$0xf]  ;;  %3048 = vmatpush.bf16.msra.mxu1 %v7665_v60  ;;  %9580 = vst [vmem:[#allocation167_spill] sm:$0xff] %v7679_v24  ;;  %v7686_v11 = vor.u32 %v6467_v61, %v5925_v40  ;;  %v7701_v61 = vpack.c.b16 %v846_v5, %v846_v5 }
  0xfb   : > { %v6499_v63 = vld [vmem:[#allocation7 + $0xb74] sm:$0xf0]  ;;  %3061 = vmatpush.bf16.msra.mxu2 %v7667_v2  ;;  %9581 = vst [vmem:[#allocation168_spill] sm:$0xff] %v7681_v10  ;;  %v6117_v55 = vld [vmem:[#allocation7 + $0xbf0] sm:$0xf]  ;;  %v7688_v62 = vor.u32 %v6483_v43, %v5989_v9  ;;  %v7699_v9 = vpack.c.b16 %v847_v6, %v847_v6 }
  0xfc   : > { %v6515_v27 = vld [vmem:[#allocation7 + $0xbf4] sm:$0xf0]  ;;  %3074 = vmatpush.bf16.msra.mxu3 %v7671_v4  ;;  %9582 = vst [vmem:[#allocation169_spill] sm:$0xff] %v7684_v14  ;;  %v7690_v60 = vor.u32 %v6499_v63, %v6053_v36  ;;  %v5917_v2 = vld [vmem:[#allocation7 + $0xa60] sm:$0xf] }
  0xfd   : > { %9583 = vst [vmem:[#allocation170_spill] sm:$0xff] %v7686_v11  ;;  %v6465_v59 = vld [vmem:[#allocation7 + $0xa64] sm:$0xf0]  ;;  %v5981_v23 = vld [vmem:[#allocation7 + $0xae0] sm:$0xf]  ;;  %3036 = vmatpush.bf16.msra.mxu0 %v7675_v19  ;;  %v7693_v13 = vor.u32 %v6515_v27, %v6117_v55  ;;  %v7705_v27 = vpack.c.b16 %v848_v53, %v848_v53  ;;  %v809_v19 = vld [vmem:[%s7127_s13 + $0x50] sm:$0xff] }
  0xfe   : > { %9584 = vst [vmem:[#allocation171_spill] sm:$0xff] %v7688_v62  ;;  %v6481_v35 = vld [vmem:[#allocation7 + $0xae4] sm:$0xf0]  ;;  %v6045_v4 = vld [vmem:[#allocation7 + $0xb60] sm:$0xf]  ;;  %3049 = vmatpush.bf16.msra.mxu1 %v7679_v24  ;;  %v7707_v55 = vor.u32 %v6465_v59, %v5917_v2  ;;  %v849_v50 = vunpack.c.l.b16 %v809_v19 }
  0xff   : > { %9585 = vst [vmem:[#allocation172_spill] sm:$0xff] %v7690_v60  ;;  %v6497_v48 = vld [vmem:[#allocation7 + $0xb64] sm:$0xf0]  ;;  %3062 = vmatpush.bf16.msra.mxu2 %v7681_v10  ;;  %v6109_v40 = vld [vmem:[#allocation7 + $0xbe0] sm:$0xf]  ;;  %v7711_v39 = vor.u32 %v6481_v35, %v5981_v23 }
 0x100   : > { %9586 = vst [vmem:[#allocation173_spill] sm:$0xff] %v7693_v13  ;;  %v6513_v41 = vld [vmem:[#allocation7 + $0xbe4] sm:$0xf0]  ;;  %3075 = vmatpush.bf16.msra.mxu3 %v7684_v14  ;;  %v7713_v6 = vor.u32 %v6497_v48, %v6045_v4  ;;  %v5909_v5 = vld [vmem:[#allocation7 + $0xa50] sm:$0xf]  ;;  %3037 = vmatmul.bf16.vlgmr.msra.gmra.mxu0 %v7695_v31 }
 0x101   : > { %3081 = vmatpush.bf16.msrb.mxu0 %v7686_v11  ;;  %9587 = vst [vmem:[#allocation174_spill] sm:$0xff] %v7707_v55  ;;  %v6463_v43 = vld [vmem:[#allocation7 + $0xa54] sm:$0xf0]  ;;  %v5973_v36 = vld [vmem:[#allocation7 + $0xad0] sm:$0xf]  ;;  %v7717_v63 = vor.u32 %v6513_v41, %v6109_v40  ;;  %3050 = vmatmul.bf16.vlgmr.msra.gmra.mxu1 %v7701_v61 }
 0x102   : > { %3094 = vmatpush.bf16.msrb.mxu1 %v7688_v62  ;;  %9588 = vst [vmem:[#allocation175_spill] sm:$0xff] %v7711_v39  ;;  %v6479_v53 = vld [vmem:[#allocation7 + $0xad4] sm:$0xf0]  ;;  %v6037_v2 = vld [vmem:[#allocation7 + $0xb50] sm:$0xf]  ;;  %3063 = vmatmul.bf16.vlgmr.msra.gmra.mxu2 %v7699_v9  ;;  %v7723_v4 = vor.u32 %v6463_v43, %v5909_v5 }
 0x103   : > { %3107 = vmatpush.bf16.msrb.mxu2 %v7690_v60  ;;  %9589 = vst [vmem:[#allocation176_spill] sm:$0xff] %v7713_v6  ;;  %v6495_v49 = vld [vmem:[#allocation7 + $0xb54] sm:$0xf0]  ;;  %v6101_v59 = vld [vmem:[#allocation7 + $0xbd0] sm:$0xf]  ;;  %3076 = vmatmul.bf16.vlgmr.msra.gmra.mxu3 %v7705_v27  ;;  %v7727_v35 = vor.u32 %v6479_v53, %v5973_v36 }
 0x104   : > { %3120 = vmatpush.bf16.msrb.mxu3 %v7693_v13  ;;  %9590 = vst [vmem:[#allocation177_spill] sm:$0xff] %v7717_v63  ;;  %v6511_v23 = vld [vmem:[#allocation7 + $0xbd4] sm:$0xf0]  ;;  %v7729_v48 = vor.u32 %v6495_v49, %v6037_v2  ;;  %v5901_v40 = vld [vmem:[#allocation7 + $0xa40] sm:$0xf] }
 0x105   : > { %3082 = vmatpush.bf16.msrb.mxu0 %v7707_v55  ;;  %9591 = vst [vmem:[#allocation178_spill] sm:$0xff] %v7723_v4  ;;  %v6461_v41 = vld [vmem:[#allocation7 + $0xa44] sm:$0xf0]  ;;  %v5965_v13 = vld [vmem:[#allocation7 + $0xac0] sm:$0xf]  ;;  %v7732_v60 = vor.u32 %v6511_v23, %v6101_v59 }
 0x106   : > { %3095 = vmatpush.bf16.msrb.mxu1 %v7711_v39  ;;  %9592 = vst [vmem:[#allocation179_spill] sm:$0xff] %v7727_v35  ;;  %v6477_v62 = vld [vmem:[#allocation7 + $0xac4] sm:$0xf0]  ;;  %v6029_v11 = vld [vmem:[#allocation7 + $0xb40] sm:$0xf]  ;;  %v7735_v39 = vor.u32 %v6461_v41, %v5901_v40 }
 0x107   : > { %3108 = vmatpush.bf16.msrb.mxu2 %v7713_v6  ;;  %9593 = vst [vmem:[#allocation180_spill] sm:$0xff] %v7729_v48  ;;  %v6493_v55 = vld [vmem:[#allocation7 + $0xb44] sm:$0xf0]  ;;  %v6093_v5 = vld [vmem:[#allocation7 + $0xbc0] sm:$0xf]  ;;  %v7739_v53 = vor.u32 %v6477_v62, %v5965_v13 }
 0x108   : > { %3121 = vmatpush.bf16.msrb.mxu3 %v7717_v63  ;;  %9594 = vst [vmem:[#allocation181_spill] sm:$0xff] %v7732_v60  ;;  %v6509_v43 = vld [vmem:[#allocation7 + $0xbc4] sm:$0xf0]  ;;  %v5893_v36 = vld [vmem:[#allocation7 + $0xa30] sm:$0xf]  ;;  %v7741_v2 = vor.u32 %v6493_v55, %v6029_v11 }
 0x109   : > { %3083 = vmatpush.bf16.msrb.mxu0 %v7723_v4  ;;  %9595 = vst [vmem:[#allocation182_spill] sm:$0xff] %v7735_v39  ;;  %v6459_v49 = vld [vmem:[#allocation7 + $0xa34] sm:$0xf0]  ;;  %v5957_v59 = vld [vmem:[#allocation7 + $0xab0] sm:$0xf]  ;;  %v7744_v63 = vor.u32 %v6509_v43, %v6093_v5 }
 0x10a   : > { %3096 = vmatpush.bf16.msrb.mxu1 %v7727_v35  ;;  %9596 = vst [vmem:[#allocation183_spill] sm:$0xff] %v7739_v53  ;;  %v6475_v23 = vld [vmem:[#allocation7 + $0xab4] sm:$0xf0]  ;;  %v6021_v6 = vld [vmem:[#allocation7 + $0xb30] sm:$0xf]  ;;  %v2869_v57 = vpop.f32.mrf.mxu3 }
 0x10b   : > { %3109 = vmatpush.bf16.msrb.mxu2 %v7729_v48  ;;  %9597 = vst [vmem:[#allocation184_spill] sm:$0xff] %v7741_v2  ;;  %v6491_v4 = vld [vmem:[#allocation7 + $0xb34] sm:$0xf0]  ;;  %v7746_v40 = vld [vmem:[#allocation8] sm:$0x3]  ;;  %v7749_v48 = vor.u32 %v6459_v49, %v5893_v36  ;;  %v7753_v11 = vor.u32 %v6475_v23, %v5957_v59  ;;  %v2830_v59 = vpop.f32.mrf.mxu0 }
 0x10c   : > { %3122 = vmatpush.bf16.msrb.mxu3 %v7732_v60  ;;  %9598 = vst [vmem:[#allocation185_spill] sm:$0xff] %v7744_v63  ;;  %v6085_v41 = vld [vmem:[#allocation7 + $0xbb0] sm:$0xf]  ;;  %v6507_v14 = vld [vmem:[#allocation7 + $0xbb4] sm:$0xf0]  ;;  %v7755_v13 = vor.u32 %v6491_v4, %v6021_v6  ;;  %v9224_v43 = vperm.slane %v7746_v40, 0 }
 0x10d   : > { %9599 = vst [vmem:[#allocation186_spill] sm:$0xff] %v7746_v40  ;;  %3084 = vmatpush.bf16.msrb.mxu0 %v7735_v39  ;;  %v5885_v62 = vld [vmem:[#allocation7 + $0xa20] sm:$0xf]  ;;  %v6457_v55 = vld [vmem:[#allocation7 + $0xa24] sm:$0xf0]  ;;  %v7759_v60 = vor.u32 %v6507_v14, %v6085_v41 }
 0x10e   : > { %9600 = vst [vmem:[#allocation187_spill] sm:$0xff] %v7749_v48  ;;  %3097 = vmatpush.bf16.msrb.mxu1 %v7739_v53  ;;  %v5949_v5 = vld [vmem:[#allocation7 + $0xaa0] sm:$0xf]  ;;  %v6473_v39 = vld [vmem:[#allocation7 + $0xaa4] sm:$0xf0]  ;;  %v2843_v53 = vpop.f32.mrf.mxu1 }
 0x10f   : > { %3110 = vmatpush.bf16.msrb.mxu2 %v7741_v2  ;;  %9601 = vst [vmem:[#allocation188_spill] sm:$0xff] %v7753_v11  ;;  %v6013_v36 = vld [vmem:[#allocation7 + $0xb20] sm:$0xf]  ;;  %v6489_v49 = vld [vmem:[#allocation7 + $0xb24] sm:$0xf0]  ;;  %v7762_v2 = vor.u32 %v6457_v55, %v5885_v62  ;;  %v7766_v6 = vor.u32 %v6473_v39, %v5949_v5 }
 0x110   : > { %9602 = vst [vmem:[#allocation189_spill] sm:$0xff] %v7755_v13  ;;  %3123 = vmatpush.bf16.msrb.mxu3 %v7744_v63  ;;  %v6077_v35 = vld [vmem:[#allocation7 + $0xba0] sm:$0xf]  ;;  %v6505_v10 = vld [vmem:[#allocation7 + $0xba4] sm:$0xf0]  ;;  %v7768_v4 = vor.u32 %v6489_v49, %v6013_v36  ;;  %v2831_v63 = vadd.f32 %v2830_v59, %v9224_v43 }
 0x111   : > { %9603 = vst [vmem:[#allocation190_spill] sm:$0xff] %v7759_v60  ;;  %3085 = vmatpush.bf16.msrb.mxu0 %v7749_v48  ;;  %v5877_v14 = vld [vmem:[#allocation7 + $0xa10] sm:$0xf]  ;;  %v6455_v23 = vld [vmem:[#allocation7 + $0xa14] sm:$0xf0]  ;;  %v7773_v62 = vor.u32 %v6505_v10, %v6077_v35 }
 0x112   : > { %9604 = vst [vmem:[#allocation191_spill] sm:$0xff] %v7762_v2  ;;  %3098 = vmatpush.bf16.msrb.mxu1 %v7753_v11  ;;  %v5941_v41 = vld [vmem:[#allocation7 + $0xa90] sm:$0xf]  ;;  %v6471_v55 = vld [vmem:[#allocation7 + $0xa94] sm:$0xf0]  ;;  %v2844_v36 = vadd.f32 %v2843_v53, %v2831_v63  ;;  %v7776_v49 = vor.u32 %v6455_v23, %v5877_v14  ;;  %v2856_v63 = vpop.f32.mrf.mxu2 }
 0x113   : > { %3111 = vmatpush.bf16.msrb.mxu2 %v7755_v13  ;;  %9605 = vst [vmem:[#allocation192_spill] sm:$0xff] %v7766_v6  ;;  %v6005_v48 = vld [vmem:[#allocation7 + $0xb10] sm:$0xf]  ;;  %v6487_v11 = vld [vmem:[#allocation7 + $0xb14] sm:$0xf0]  ;;  %v7780_v10 = vor.u32 %v6471_v55, %v5941_v41 }
 0x114   : > { %9606 = vst [vmem:[#allocation193_spill] sm:$0xff] %v7768_v4  ;;  %3124 = vmatpush.bf16.msrb.mxu3 %v7759_v60  ;;  %v6069_v13 = vld [vmem:[#allocation7 + $0xb90] sm:$0xf]  ;;  %v6503_v39 = vld [vmem:[#allocation7 + $0xb94] sm:$0xf0]  ;;  %v7782_v35 = vor.u32 %v6487_v11, %v6005_v48  ;;  %v2857_v58 = vadd.f32 %v2856_v63, %v2844_v36 }
 0x115   : > { %9607 = vst [vmem:[#allocation194_spill] sm:$0xff] %v7773_v62  ;;  %v5869_v5 = vld [vmem:[#allocation7 + $0xa00] sm:$0xf]  ;;  %3086 = vmatpush.bf16.msrb.mxu0 %v7762_v2  ;;  %v6453_v40 = vld [vmem:[#allocation7 + $0xa04] sm:$0xf0]  ;;  %v7786_v53 = vor.u32 %v6503_v39, %v6069_v13  ;;  %v810_v2 = vld [vmem:[%s7127_s13 + $0x58] sm:$0xff]  ;;  %v2832_v13 = vpop.f32.mrf.mxu0 }
 0x116   : > { %9608 = vst [vmem:[#allocation195_spill] sm:$0xff] %v7776_v49  ;;  %v5933_v59 = vld [vmem:[#allocation7 + $0xa80] sm:$0xf]  ;;  %v6469_v43 = vld [vmem:[#allocation7 + $0xa84] sm:$0xf0]  ;;  %3099 = vmatpush.bf16.msrb.mxu1 %v7766_v6  ;;  %v7790_v48 = vor.u32 %v6453_v40, %v5869_v5  ;;  %v7792_v46 = vadd.f32 %v2869_v57, %v2857_v58  ;;  %v850_v40 = vunpack.c.h.b16 %v809_v19  ;;  %v2845_v5 = vpop.f32.mrf.mxu1  ;;  %v852_v58 = vunpack.c.h.b16 %v810_v2 }
 0x117   : > { %3112 = vmatpush.bf16.msrb.mxu2 %v7768_v4  ;;  %9609 = vst [vmem:[#allocation196_spill] sm:$0xff] %v7780_v10  ;;  %v5997_v60 = vld [vmem:[#allocation7 + $0xb00] sm:$0xf]  ;;  %v6485_v24 = vld [vmem:[#allocation7 + $0xb04] sm:$0xf0]  ;;  %v7796_v39 = vor.u32 %v6469_v43, %v5933_v59  ;;  %v7812_v19 = vpack.c.b16 %v849_v50, %v849_v50 }
 0x118   : > { %9610 = vst [vmem:[#allocation197_spill] sm:$0xff] %v7782_v35  ;;  %3125 = vmatpush.bf16.msrb.mxu3 %v7773_v62  ;;  %v6061_v14 = vld [vmem:[#allocation7 + $0xb80] sm:$0xf]  ;;  %v6501_v23 = vld [vmem:[#allocation7 + $0xb84] sm:$0xf0]  ;;  %v7798_v36 = vor.u32 %v6485_v24, %v5997_v60  ;;  %v7822_v50 = vpack.c.b16 %v852_v58, %v852_v58 }
 0x119   : > { %9611 = vst [vmem:[#allocation198_spill] sm:$0xff] %v7786_v53  ;;  %v6146_v6 = vld [vmem:[#allocation7 + $0x74] sm:$0xf]  ;;  %v4647_v56 = vld [vmem:[#allocation7 + $0x78] sm:$0xf0]  ;;  %3087 = vmatpush.bf16.msrb.mxu0 %v7776_v49  ;;  %v851_v49 = vunpack.c.l.b16 %v810_v2  ;;  %v7801_v45 = vor.u32 %v6501_v23, %v6061_v14  ;;  %v7818_v2 = vpack.c.b16 %v850_v40, %v850_v40 }
 0x11a   : > { %v6162_v4 = vld [vmem:[#allocation7 + $0xf4] sm:$0xf]  ;;  %9612 = vst [vmem:[#allocation199_spill] sm:$0xff] %v7790_v48  ;;  %v4711_v11 = vld [vmem:[#allocation7 + $0xf8] sm:$0xf0]  ;;  %3100 = vmatpush.bf16.msrb.mxu1 %v7780_v10  ;;  %v7803_v57 = vor.u32 %v6146_v6, %v4647_v56  ;;  %v2858_v23 = vpop.f32.mrf.mxu2 }
 0x11b   : > { %v6178_v41 = vld [vmem:[#allocation7 + $0x174] sm:$0xf]  ;;  %v4775_v55 = vld [vmem:[#allocation7 + $0x178] sm:$0xf0]  ;;  %3113 = vmatpush.bf16.msrb.mxu2 %v7782_v35  ;;  %9613 = vst [vmem:[#allocation200_spill] sm:$0xff] %v7796_v39  ;;  %v7805_v13 = vor.u32 %v6162_v4, %v4711_v11  ;;  %v7816_v56 = vpack.c.b16 %v851_v49, %v851_v49  ;;  %v2871_v11 = vpop.f32.mrf.mxu3 }
 0x11c   : > { %9614 = vst [vmem:[#allocation201_spill] sm:$0xff] %v7798_v36  ;;  %v6194_v63 = vld [vmem:[#allocation7 + $0x1f4] sm:$0xf]  ;;  %v4839_v62 = vld [vmem:[#allocation7 + $0x1f8] sm:$0xf0]  ;;  %3126 = vmatpush.bf16.msrb.mxu3 %v7786_v53  ;;  %v7807_v10 = vor.u32 %v6178_v41, %v4775_v55 }
 0x11d   : > { %9615 = vst [vmem:[#allocation202_spill] sm:$0xff] %v7801_v45  ;;  %v6144_v43 = vld [vmem:[#allocation7 + $0x64] sm:$0xf]  ;;  %v4639_v59 = vld [vmem:[#allocation7 + $0x68] sm:$0xf0]  ;;  %3088 = vmatpush.bf16.msrb.mxu0 %v7790_v48  ;;  %v7810_v24 = vor.u32 %v6194_v63, %v4839_v62 }
 0x11e   : > { %9616 = vst [vmem:[#allocation203_spill] sm:$0xff] %v7803_v57  ;;  %v6160_v60 = vld [vmem:[#allocation7 + $0xe4] sm:$0xf]  ;;  %v4703_v5 = vld [vmem:[#allocation7 + $0xe8] sm:$0xf0]  ;;  %3101 = vmatpush.bf16.msrb.mxu1 %v7796_v39  ;;  %v7824_v62 = vor.u32 %v6144_v43, %v4639_v59 }
 0x11f   : > { %9617 = vst [vmem:[#allocation204_spill] sm:$0xff] %v7805_v13  ;;  %v6176_v53 = vld [vmem:[#allocation7 + $0x164] sm:$0xf]  ;;  %v4767_v14 = vld [vmem:[#allocation7 + $0x168] sm:$0xf0]  ;;  %3114 = vmatpush.bf16.msrb.mxu2 %v7798_v36  ;;  %v7828_v49 = vor.u32 %v6160_v60, %v4703_v5 }
 0x120   : > { %9618 = vst [vmem:[#allocation205_spill] sm:$0xff] %v7807_v10  ;;  %v6192_v6 = vld [vmem:[#allocation7 + $0x1e4] sm:$0xf]  ;;  %v4831_v4 = vld [vmem:[#allocation7 + $0x1e8] sm:$0xf0]  ;;  %3127 = vmatpush.bf16.msrb.mxu3 %v7801_v45  ;;  %v7830_v41 = vor.u32 %v6176_v53, %v4767_v14  ;;  %3089 = vmatmul.bf16.vlgmr.msrb.gmra.mxu0 %v7812_v19 }
 0x121   : > { %9619 = vst [vmem:[#allocation206_spill] sm:$0xff] %v7810_v24  ;;  %3133 = vmatpush.bf16.msra.mxu0 %v7803_v57  ;;  %v6142_v55 = vld [vmem:[#allocation7 + $0x54] sm:$0xf]  ;;  %v4631_v63 = vld [vmem:[#allocation7 + $0x58] sm:$0xf0]  ;;  %v7834_v58 = vor.u32 %v6192_v6, %v4831_v4  ;;  %3102 = vmatmul.bf16.vlgmr.msrb.gmra.mxu1 %v7818_v2 }
 0x122   : > { %9620 = vst [vmem:[#allocation207_spill] sm:$0xff] %v7824_v62  ;;  %3146 = vmatpush.bf16.msra.mxu1 %v7805_v13  ;;  %v6158_v40 = vld [vmem:[#allocation7 + $0xd4] sm:$0xf]  ;;  %v4695_v43 = vld [vmem:[#allocation7 + $0xd8] sm:$0xf0]  ;;  %3115 = vmatmul.bf16.vlgmr.msrb.gmra.mxu2 %v7816_v56  ;;  %v7840_v53 = vor.u32 %v6142_v55, %v4631_v63 }
 0x123   : > { %3159 = vmatpush.bf16.msra.mxu2 %v7807_v10  ;;  %9621 = vst [vmem:[#allocation208_spill] sm:$0xff] %v7828_v49  ;;  %v6174_v59 = vld [vmem:[#allocation7 + $0x154] sm:$0xf]  ;;  %v4759_v23 = vld [vmem:[#allocation7 + $0x158] sm:$0xf0]  ;;  %3128 = vmatmul.bf16.vlgmr.msrb.gmra.mxu3 %v7822_v50  ;;  %v7844_v14 = vor.u32 %v6158_v40, %v4695_v43  ;;  %v2882_v40 = vpop.f32.mrf.mxu0 }
 0x124   : > { %9622 = vst [vmem:[#allocation209_spill] sm:$0xff] %v7830_v41  ;;  %3172 = vmatpush.bf16.msra.mxu3 %v7810_v24  ;;  %v6190_v60 = vld [vmem:[#allocation7 + $0x1d4] sm:$0xf]  ;;  %v4823_v5 = vld [vmem:[#allocation7 + $0x1d8] sm:$0xf0]  ;;  %v7846_v6 = vor.u32 %v6174_v59, %v4759_v23 }
 0x125   : > { %9623 = vst [vmem:[#allocation210_spill] sm:$0xff] %v7834_v58  ;;  %3134 = vmatpush.bf16.msra.mxu0 %v7824_v62  ;;  %v6140_v4 = vld [vmem:[#allocation7 + $0x44] sm:$0xf]  ;;  %v4623_v11 = vld [vmem:[#allocation7 + $0x48] sm:$0xf0]  ;;  %v7849_v10 = vor.u32 %v6190_v60, %v4823_v5 }
 0x126   : > { %9624 = vst [vmem:[#allocation211_spill] sm:$0xff] %v7840_v53  ;;  %3147 = vmatpush.bf16.msra.mxu1 %v7828_v49  ;;  %v6156_v24 = vld [vmem:[#allocation7 + $0xc4] sm:$0xf]  ;;  %v4687_v13 = vld [vmem:[#allocation7 + $0xc8] sm:$0xf0]  ;;  %v7852_v49 = vor.u32 %v6140_v4, %v4623_v11 }
 0x127   : > { %3160 = vmatpush.bf16.msra.mxu2 %v7830_v41  ;;  %9625 = vst [vmem:[#allocation212_spill] sm:$0xff] %v7844_v14  ;;  %v6172_v57 = vld [vmem:[#allocation7 + $0x144] sm:$0xf]  ;;  %v4751_v62 = vld [vmem:[#allocation7 + $0x148] sm:$0xf0]  ;;  %v7856_v43 = vor.u32 %v6156_v24, %v4687_v13  ;;  %v2895_v41 = vpop.f32.mrf.mxu1 }
 0x128   : > { %9626 = vst [vmem:[#allocation213_spill] sm:$0xff] %v7846_v6  ;;  %3173 = vmatpush.bf16.msra.mxu3 %v7834_v58  ;;  %v6188_v55 = vld [vmem:[#allocation7 + $0x1c4] sm:$0xf]  ;;  %v4815_v63 = vld [vmem:[#allocation7 + $0x1c8] sm:$0xf0]  ;;  %v7858_v59 = vor.u32 %v6172_v57, %v4751_v62  ;;  %v2883_v58 = vadd.f32 %v2882_v40, %v7792_v46 }
 0x129   : > { %9627 = vst [vmem:[#allocation214_spill] sm:$0xff] %v7849_v10  ;;  %3135 = vmatpush.bf16.msra.mxu0 %v7840_v53  ;;  %v6138_v23 = vld [vmem:[#allocation7 + $0x34] sm:$0xf]  ;;  %v4615_v60 = vld [vmem:[#allocation7 + $0x38] sm:$0xf0]  ;;  %v7862_v53 = vor.u32 %v6188_v55, %v4815_v63  ;;  %v2908_v63 = vpop.f32.mrf.mxu2 }
 0x12a   : > { %9628 = vst [vmem:[#allocation215_spill] sm:$0xff] %v7852_v49  ;;  %3148 = vmatpush.bf16.msra.mxu1 %v7844_v14  ;;  %v6154_v5 = vld [vmem:[#allocation7 + $0xb4] sm:$0xf]  ;;  %v4679_v4 = vld [vmem:[#allocation7 + $0xb8] sm:$0xf0]  ;;  %v7865_v57 = vor.u32 %v6138_v23, %v4615_v60 }
 0x12b   : > { %3161 = vmatpush.bf16.msra.mxu2 %v7846_v6  ;;  %9629 = vst [vmem:[#allocation216_spill] sm:$0xff] %v7856_v43  ;;  %v6170_v11 = vld [vmem:[#allocation7 + $0x134] sm:$0xf]  ;;  %v4743_v45 = vld [vmem:[#allocation7 + $0x138] sm:$0xf0]  ;;  %v2896_v6 = vadd.f32 %v2895_v41, %v2883_v58  ;;  %v7869_v46 = vor.u32 %v6154_v5, %v4679_v4  ;;  %v2884_v4 = vpop.f32.mrf.mxu0 }
 0x12c   : > { %9630 = vst [vmem:[#allocation217_spill] sm:$0xff] %v7858_v59  ;;  %3174 = vmatpush.bf16.msra.mxu3 %v7849_v10  ;;  %v6186_v14 = vld [vmem:[#allocation7 + $0x1b4] sm:$0xf]  ;;  %v4807_v36 = vld [vmem:[#allocation7 + $0x1b8] sm:$0xf0]  ;;  %v7871_v13 = vor.u32 %v6170_v11, %v4743_v45 }
 0x12d   : > { %9631 = vst [vmem:[#allocation218_spill] sm:$0xff] %v7862_v53  ;;  %3136 = vmatpush.bf16.msra.mxu0 %v7852_v49  ;;  %v6136_v24 = vld [vmem:[#allocation7 + $0x24] sm:$0xf]  ;;  %v4607_v62 = vld [vmem:[#allocation7 + $0x28] sm:$0xf0]  ;;  %v7874_v40 = vor.u32 %v6186_v14, %v4807_v36  ;;  %v2909_v60 = vadd.f32 %v2908_v63, %v2896_v6  ;;  %v2921_v49 = vpop.f32.mrf.mxu3 }
 0x12e   : > { %9632 = vst [vmem:[#allocation219_spill] sm:$0xff] %v7865_v57  ;;  %3149 = vmatpush.bf16.msra.mxu1 %v7856_v43  ;;  %v6152_v55 = vld [vmem:[#allocation7 + $0xa4] sm:$0xf]  ;;  %v4671_v41 = vld [vmem:[#allocation7 + $0xa8] sm:$0xf0]  ;;  %v7877_v5 = vor.u32 %v6136_v24, %v4607_v62 }
 0x12f   : > { %3162 = vmatpush.bf16.msra.mxu2 %v7858_v59  ;;  %9633 = vst [vmem:[#allocation220_spill] sm:$0xff] %v7869_v46  ;;  %v6168_v58 = vld [vmem:[#allocation7 + $0x124] sm:$0xf]  ;;  %v4735_v23 = vld [vmem:[#allocation7 + $0x128] sm:$0xf0]  ;;  %v7879_v45 = vadd.f32 %v2921_v49, %v2909_v60  ;;  %v7883_v36 = vor.u32 %v6152_v55, %v4671_v41 }
 0x130   : > { %9634 = vst [vmem:[#allocation221_spill] sm:$0xff] %v7871_v13  ;;  %3175 = vmatpush.bf16.msra.mxu3 %v7862_v53  ;;  %v6184_v43 = vld [vmem:[#allocation7 + $0x1a4] sm:$0xf]  ;;  %v4799_v10 = vld [vmem:[#allocation7 + $0x1a8] sm:$0xf0]  ;;  %v7885_v14 = vor.u32 %v6168_v58, %v4735_v23  ;;  %v2897_v53 = vpop.f32.mrf.mxu1 }
 0x131   : > { %9635 = vst [vmem:[#allocation222_spill] sm:$0xff] %v7874_v40  ;;  %3137 = vmatpush.bf16.msra.mxu0 %v7865_v57  ;;  %v6134_v11 = vld [vmem:[#allocation7 + $0x14] sm:$0xf]  ;;  %v4599_v6 = vld [vmem:[#allocation7 + $0x18] sm:$0xf0]  ;;  %v7888_v57 = vor.u32 %v6184_v43, %v4799_v10 }
 0x132   : > { %9636 = vst [vmem:[#allocation223_spill] sm:$0xff] %v7877_v5  ;;  %3150 = vmatpush.bf16.msra.mxu1 %v7869_v46  ;;  %v6150_v63 = vld [vmem:[#allocation7 + $0x94] sm:$0xf]  ;;  %v4663_v24 = vld [vmem:[#allocation7 + $0x98] sm:$0xf0] }
 0x133   : > { %3163 = vmatpush.bf16.msra.mxu2 %v7871_v13  ;;  %9637 = vst [vmem:[#allocation224_spill] sm:$0xff] %v7883_v36  ;;  %v6166_v49 = vld [vmem:[#allocation7 + $0x114] sm:$0xf]  ;;  %v4727_v62 = vld [vmem:[#allocation7 + $0x118] sm:$0xf0]  ;;  %v7891_v13 = vor.u32 %v6134_v11, %v4599_v6  ;;  %v7895_v53 = vor.u32 %v6150_v63, %v4663_v24 }
 0x134   : > { %9638 = vst [vmem:[#allocation225_spill] sm:$0xff] %v7885_v14  ;;  %3176 = vmatpush.bf16.msra.mxu3 %v7874_v40  ;;  %v6182_v60 = vld [vmem:[#allocation7 + $0x194] sm:$0xf]  ;;  %v4791_v4 = vld [vmem:[#allocation7 + $0x198] sm:$0xf0]  ;;  %v7897_v58 = vor.u32 %v6166_v49, %v4727_v62  ;;  %v2910_v40 = vpop.f32.mrf.mxu2 }
 0x135   : > { %9639 = vst [vmem:[#allocation226_spill] sm:$0xff] %v7888_v57  ;;  %3138 = vmatpush.bf16.msra.mxu0 %v7877_v5  ;;  %v6132_v55 = vld [vmem:[#allocation7 + $0x4] sm:$0xf]  ;;  %v4591_v41 = vld [vmem:[#allocation7 + $0x8] sm:$0xf0]  ;;  %v7900_v46 = vor.u32 %v6182_v60, %v4791_v4  ;;  %v2923_v59 = vpop.f32.mrf.mxu3 }
 0x136   : > { %9640 = vst [vmem:[#allocation227_spill] sm:$0xff] %v7891_v13  ;;  %3151 = vmatpush.bf16.msra.mxu1 %v7883_v36  ;;  %v6148_v10 = vld [vmem:[#allocation7 + $0x84] sm:$0xf]  ;;  %v4655_v43 = vld [vmem:[#allocation7 + $0x88] sm:$0xf0]  ;;  %v7903_v63 = vor.u32 %v6132_v55, %v4591_v41 }
 0x137   : > { %3164 = vmatpush.bf16.msra.mxu2 %v7885_v14  ;;  %9641 = vst [vmem:[#allocation228_spill] sm:$0xff] %v7895_v53  ;;  %v6164_v23 = vld [vmem:[#allocation7 + $0x104] sm:$0xf]  ;;  %v4719_v11 = vld [vmem:[#allocation7 + $0x108] sm:$0xf0]  ;;  %v7907_v40 = vor.u32 %v6148_v10, %v4655_v43 }
 0x138   : > { %3177 = vmatpush.bf16.msra.mxu3 %v7888_v57  ;;  %v6180_v6 = vld [vmem:[#allocation7 + $0x184] sm:$0xf]  ;;  %v4783_v5 = vld [vmem:[#allocation7 + $0x188] sm:$0xf0]  ;;  %v6210_v39 = vld [vmem:[#allocation7 + $0x274] sm:$0xf]  ;;  %v7909_v60 = vor.u32 %v6164_v23, %v4719_v11 }
 0x139   : > { %v4903_v36 = vld [vmem:[#allocation7 + $0x278] sm:$0xf0]  ;;  %v6226_v48 = vld [vmem:[#allocation7 + $0x2f4] sm:$0xf]  ;;  %3139 = vmatpush.bf16.msra.mxu0 %v7891_v13  ;;  %v7912_v57 = vor.u32 %v6180_v6, %v4783_v5  ;;  %v6208_v14 = vld [vmem:[#allocation7 + $0x264] sm:$0xf] }
 0x13a   : > { %v4967_v24 = vld [vmem:[#allocation7 + $0x2f8] sm:$0xf0]  ;;  %v6242_v49 = vld [vmem:[#allocation7 + $0x374] sm:$0xf]  ;;  %3152 = vmatpush.bf16.msra.mxu1 %v7895_v53  ;;  %9642 = vst [vmem:[#allocation229_spill] sm:$0xff] %v7909_v60  ;;  %v7914_v13 = vor.u32 %v6210_v39, %v4903_v36 }
 0x13b   : > { %v5031_v62 = vld [vmem:[#allocation7 + $0x378] sm:$0xf0]  ;;  %3165 = vmatpush.bf16.msra.mxu2 %v7897_v58  ;;  %v6258_v4 = vld [vmem:[#allocation7 + $0x3f4] sm:$0xf]  ;;  %9643 = vst [vmem:[#allocation230_spill] sm:$0xff] %v7912_v57  ;;  %v7916_v55 = vor.u32 %v6226_v48, %v4967_v24 }
 0x13c   : > { %v5095_v59 = vld [vmem:[#allocation7 + $0x3f8] sm:$0xf0]  ;;  %3178 = vmatpush.bf16.msra.mxu3 %v7900_v46  ;;  %9644 = vst [vmem:[#allocation231_spill] sm:$0xff] %v7914_v13  ;;  %v7918_v41 = vor.u32 %v6242_v49, %v5031_v62  ;;  %v4895_v53 = vld [vmem:[#allocation7 + $0x268] sm:$0xf0] }
 0x13d   : > { %9645 = vst [vmem:[#allocation232_spill] sm:$0xff] %v7916_v55  ;;  %v6224_v35 = vld [vmem:[#allocation7 + $0x2e4] sm:$0xf]  ;;  %3140 = vmatpush.bf16.msra.mxu0 %v7903_v63  ;;  %v7921_v10 = vor.u32 %v6258_v4, %v5095_v59  ;;  %v4959_v43 = vld [vmem:[#allocation7 + $0x2e8] sm:$0xf0]  ;;  %v7927_v48 = vor.u32 %v6208_v14, %v4895_v53 }
 0x13e   : > { %9646 = vst [vmem:[#allocation233_spill] sm:$0xff] %v7918_v41  ;;  %v6240_v23 = vld [vmem:[#allocation7 + $0x364] sm:$0xf]  ;;  %v5023_v11 = vld [vmem:[#allocation7 + $0x368] sm:$0xf0]  ;;  %3153 = vmatpush.bf16.msra.mxu1 %v7907_v40  ;;  %v7931_v36 = vor.u32 %v6224_v35, %v4959_v43 }
 0x13f   : > { %9647 = vst [vmem:[#allocation234_spill] sm:$0xff] %v7921_v10  ;;  %3166 = vmatpush.bf16.msra.mxu2 %v7909_v60  ;;  %v6256_v39 = vld [vmem:[#allocation7 + $0x3e4] sm:$0xf]  ;;  %v5087_v5 = vld [vmem:[#allocation7 + $0x3e8] sm:$0xf0]  ;;  %v7933_v6 = vor.u32 %v6240_v23, %v5023_v11 }
 0x140   : > { %3179 = vmatpush.bf16.msra.mxu3 %v7912_v57  ;;  %9648 = vst [vmem:[#allocation235_spill] sm:$0xff] %v7927_v48  ;;  %v6206_v24 = vld [vmem:[#allocation7 + $0x254] sm:$0xf]  ;;  %v4887_v49 = vld [vmem:[#allocation7 + $0x258] sm:$0xf0]  ;;  %v7936_v4 = vor.u32 %v6256_v39, %v5087_v5  ;;  %3141 = vmatmul.bf16.vlgmr.msra.gmra.mxu0 %v7284_v30 }
 0x141   : > { %3185 = vmatpush.bf16.msrb.mxu0 %v7914_v13  ;;  %9649 = vst [vmem:[#allocation236_spill] sm:$0xff] %v7931_v36  ;;  %v6222_v62 = vld [vmem:[#allocation7 + $0x2d4] sm:$0xf]  ;;  %v4951_v59 = vld [vmem:[#allocation7 + $0x2d8] sm:$0xf0]  ;;  %v7942_v35 = vor.u32 %v6206_v24, %v4887_v49  ;;  %3154 = vmatmul.bf16.vlgmr.msra.gmra.mxu1 %v7291_v42  ;;  %v2934_v49 = vpop.f32.mrf.mxu0 }
 0x142   : > { %3198 = vmatpush.bf16.msrb.mxu1 %v7916_v55  ;;  %9650 = vst [vmem:[#allocation237_spill] sm:$0xff] %v7933_v6  ;;  %v6238_v57 = vld [vmem:[#allocation7 + $0x354] sm:$0xf]  ;;  %v5015_v13 = vld [vmem:[#allocation7 + $0x358] sm:$0xf0]  ;;  %3167 = vmatmul.bf16.vlgmr.msra.gmra.mxu2 %v7282_v26  ;;  %v7947_v43 = vor.u32 %v6222_v62, %v4951_v59  ;;  %v2935_v62 = vadd.f32 %v2934_v49, %v7879_v45 }
 0x143   : > { %3211 = vmatpush.bf16.msrb.mxu2 %v7918_v41  ;;  %9651 = vst [vmem:[#allocation238_spill] sm:$0xff] %v7936_v4  ;;  %v6254_v14 = vld [vmem:[#allocation7 + $0x3d4] sm:$0xf]  ;;  %v5079_v53 = vld [vmem:[#allocation7 + $0x3d8] sm:$0xf0]  ;;  %3180 = vmatmul.bf16.vlgmr.msra.gmra.mxu3 %v7286_v32  ;;  %v7949_v23 = vor.u32 %v6238_v57, %v5015_v13  ;;  %v2947_v57 = vpop.f32.mrf.mxu1 }
 0x144   : > { %3224 = vmatpush.bf16.msrb.mxu3 %v7921_v10  ;;  %9652 = vst [vmem:[#allocation239_spill] sm:$0xff] %v7942_v35  ;;  %v6204_v26 = vld [vmem:[#allocation7 + $0x244] sm:$0xf]  ;;  %v4879_v11 = vld [vmem:[#allocation7 + $0x248] sm:$0xf0]  ;;  %v7952_v30 = vor.u32 %v6254_v14, %v5079_v53 }
 0x145   : > { %3186 = vmatpush.bf16.msrb.mxu0 %v7927_v48  ;;  %9653 = vst [vmem:[#allocation240_spill] sm:$0xff] %v7947_v43  ;;  %v6220_v39 = vld [vmem:[#allocation7 + $0x2c4] sm:$0xf]  ;;  %v4943_v32 = vld [vmem:[#allocation7 + $0x2c8] sm:$0xf0]  ;;  %v7956_v59 = vor.u32 %v6204_v26, %v4879_v11 }
 0x146   : > { %3199 = vmatpush.bf16.msrb.mxu1 %v7931_v36  ;;  %9654 = vst [vmem:[#allocation241_spill] sm:$0xff] %v7949_v23  ;;  %v6236_v5 = vld [vmem:[#allocation7 + $0x344] sm:$0xf]  ;;  %v5007_v24 = vld [vmem:[#allocation7 + $0x348] sm:$0xf0]  ;;  %v7960_v13 = vor.u32 %v6220_v39, %v4943_v32 }
 0x147   : > { %3212 = vmatpush.bf16.msrb.mxu2 %v7933_v6  ;;  %9655 = vst [vmem:[#allocation242_spill] sm:$0xff] %v7952_v30  ;;  %v6252_v42 = vld [vmem:[#allocation7 + $0x3c4] sm:$0xf]  ;;  %v5071_v48 = vld [vmem:[#allocation7 + $0x3c8] sm:$0xf0]  ;;  %v7962_v14 = vor.u32 %v6236_v5, %v5007_v24 }
 0x148   : > { %3225 = vmatpush.bf16.msrb.mxu3 %v7936_v4  ;;  %9656 = vst [vmem:[#allocation243_spill] sm:$0xff] %v7956_v59  ;;  %v6202_v53 = vld [vmem:[#allocation7 + $0x234] sm:$0xf]  ;;  %v4871_v4 = vld [vmem:[#allocation7 + $0x238] sm:$0xf0]  ;;  %v7965_v36 = vor.u32 %v6252_v42, %v5071_v48 }
 0x149   : > { %3187 = vmatpush.bf16.msrb.mxu0 %v7942_v35  ;;  %9657 = vst [vmem:[#allocation244_spill] sm:$0xff] %v7960_v13  ;;  %v6218_v6 = vld [vmem:[#allocation7 + $0x2b4] sm:$0xf]  ;;  %v2948_v35 = vadd.f32 %v2947_v57, %v2935_v62  ;;  %v4935_v45 = vld [vmem:[#allocation7 + $0x2b8] sm:$0xf0]  ;;  %v2960_v62 = vpop.f32.mrf.mxu2 }
 0x14a   : > { %3200 = vmatpush.bf16.msrb.mxu1 %v7947_v43  ;;  %9658 = vst [vmem:[#allocation245_spill] sm:$0xff] %v7962_v14  ;;  %v6234_v26 = vld [vmem:[#allocation7 + $0x334] sm:$0xf]  ;;  %v4999_v11 = vld [vmem:[#allocation7 + $0x338] sm:$0xf0]  ;;  %v7972_v39 = vor.u32 %v6218_v6, %v4935_v45 }
 0x14b   : > { %3213 = vmatpush.bf16.msrb.mxu2 %v7949_v23  ;;  %9659 = vst [vmem:[#allocation246_spill] sm:$0xff] %v7965_v36  ;;  %v6250_v49 = vld [vmem:[#allocation7 + $0x3b4] sm:$0xf]  ;;  %v5063_v10 = vld [vmem:[#allocation7 + $0x3b8] sm:$0xf0]  ;;  %v7968_v23 = vor.u32 %v6202_v53, %v4871_v4  ;;  %v7974_v32 = vor.u32 %v6234_v26, %v4999_v11  ;;  %v2961_v53 = vadd.f32 %v2960_v62, %v2948_v35  ;;  %v2949_v45 = vpop.f32.mrf.mxu1 }
 0x14c   : > { %3226 = vmatpush.bf16.msrb.mxu3 %v7952_v30  ;;  %9661 = vst [vmem:[#allocation248_spill] sm:$0xff] %v7972_v39  ;;  %v6200_v48 = vld [vmem:[#allocation7 + $0x224] sm:$0xf]  ;;  %v4863_v5 = vld [vmem:[#allocation7 + $0x228] sm:$0xf0]  ;;  %v7977_v42 = vor.u32 %v6250_v49, %v5063_v10  ;;  %v2973_v30 = vpop.f32.mrf.mxu3 }
 0x14d   : > { %3188 = vmatpush.bf16.msrb.mxu0 %v7956_v59  ;;  %9660 = vst [vmem:[#allocation247_spill] sm:$0xff] %v7968_v23  ;;  %v6216_v24 = vld [vmem:[#allocation7 + $0x2a4] sm:$0xf]  ;;  %v4927_v57 = vld [vmem:[#allocation7 + $0x2a8] sm:$0xf0]  ;;  %v7980_v6 = vor.u32 %v6200_v48, %v4863_v5  ;;  %v7984_v10 = vadd.f32 %v2973_v30, %v2961_v53 }
 0x14e   : > { %3201 = vmatpush.bf16.msrb.mxu1 %v7960_v13  ;;  %9662 = vst [vmem:[#allocation249_spill] sm:$0xff] %v7974_v32  ;;  %v6232_v59 = vld [vmem:[#allocation7 + $0x324] sm:$0xf]  ;;  %v4991_v4 = vld [vmem:[#allocation7 + $0x328] sm:$0xf0]  ;;  %v7986_v26 = vor.u32 %v6216_v24, %v4927_v57 }
 0x14f   : > { %3214 = vmatpush.bf16.msrb.mxu2 %v7962_v14  ;;  %9663 = vst [vmem:[#allocation250_spill] sm:$0xff] %v7977_v42  ;;  %v6248_v13 = vld [vmem:[#allocation7 + $0x3a4] sm:$0xf]  ;;  %v5055_v43 = vld [vmem:[#allocation7 + $0x3a8] sm:$0xf0]  ;;  %v2936_v14 = vpop.f32.mrf.mxu0  ;;  %v7988_v11 = vor.u32 %v6232_v59, %v4991_v4 }
 0x150   : > { %3227 = vmatpush.bf16.msrb.mxu3 %v7965_v36  ;;  %9664 = vst [vmem:[#allocation251_spill] sm:$0xff] %v7980_v6  ;;  %v6198_v35 = vld [vmem:[#allocation7 + $0x214] sm:$0xf]  ;;  %v4855_v49 = vld [vmem:[#allocation7 + $0x218] sm:$0xf0]  ;;  %v7991_v14 = vor.u32 %v6248_v13, %v5055_v43 }
 0x151   : > { %3189 = vmatpush.bf16.msrb.mxu0 %v7968_v23  ;;  %9665 = vst [vmem:[#allocation252_spill] sm:$0xff] %v7986_v26  ;;  %v6214_v62 = vld [vmem:[#allocation7 + $0x294] sm:$0xf]  ;;  %v4919_v48 = vld [vmem:[#allocation7 + $0x298] sm:$0xf0]  ;;  %v7994_v30 = vor.u32 %v6198_v35, %v4855_v49 }
 0x152   : > { %3202 = vmatpush.bf16.msrb.mxu1 %v7972_v39  ;;  %9666 = vst [vmem:[#allocation253_spill] sm:$0xff] %v7988_v11  ;;  %v6230_v5 = vld [vmem:[#allocation7 + $0x314] sm:$0xf]  ;;  %v4983_v45 = vld [vmem:[#allocation7 + $0x318] sm:$0xf0]  ;;  %v7998_v59 = vor.u32 %v6214_v62, %v4919_v48 }
 0x153   : > { %3215 = vmatpush.bf16.msrb.mxu2 %v7974_v32  ;;  %9667 = vst [vmem:[#allocation254_spill] sm:$0xff] %v7991_v14  ;;  %v6246_v23 = vld [vmem:[#allocation7 + $0x394] sm:$0xf]  ;;  %v5047_v39 = vld [vmem:[#allocation7 + $0x398] sm:$0xf0]  ;;  %v8000_v4 = vor.u32 %v6230_v5, %v4983_v45  ;;  %v2962_v32 = vpop.f32.mrf.mxu2 }
 0x154   : > { %3228 = vmatpush.bf16.msrb.mxu3 %v7977_v42  ;;  %9668 = vst [vmem:[#allocation255_spill] sm:$0xff] %v7994_v30  ;;  %v6196_v24 = vld [vmem:[#allocation7 + $0x204] sm:$0xf]  ;;  %v4847_v57 = vld [vmem:[#allocation7 + $0x208] sm:$0xf0]  ;;  %v8003_v42 = vor.u32 %v6246_v23, %v5047_v39  ;;  %v2975_v55 = vpop.f32.mrf.mxu3 }
 0x155   : > { %3190 = vmatpush.bf16.msrb.mxu0 %v7980_v6  ;;  %9669 = vst [vmem:[#allocation256_spill] sm:$0xff] %v7998_v59  ;;  %v6212_v43 = vld [vmem:[#allocation7 + $0x284] sm:$0xf]  ;;  %v4911_v13 = vld [vmem:[#allocation7 + $0x288] sm:$0xf0]  ;;  %v8006_v62 = vor.u32 %v6196_v24, %v4847_v57 }
 0x156   : > { %3203 = vmatpush.bf16.msrb.mxu1 %v7986_v26  ;;  %v6228_v53 = vld [vmem:[#allocation7 + $0x304] sm:$0xf]  ;;  %v4975_v6 = vld [vmem:[#allocation7 + $0x308] sm:$0xf0]  ;;  %v6274_v36 = vld [vmem:[#allocation7 + $0x474] sm:$0xf]  ;;  %v8010_v23 = vor.u32 %v6212_v43, %v4911_v13 }
 0x157   : > { %3216 = vmatpush.bf16.msrb.mxu2 %v7988_v11  ;;  %v6244_v35 = vld [vmem:[#allocation7 + $0x384] sm:$0xf]  ;;  %v5039_v49 = vld [vmem:[#allocation7 + $0x388] sm:$0xf0]  ;;  %v5159_v41 = vld [vmem:[#allocation7 + $0x478] sm:$0xf0]  ;;  %v8012_v39 = vor.u32 %v6228_v53, %v4975_v6 }
 0x158   : > { %3229 = vmatpush.bf16.msrb.mxu3 %v7991_v14  ;;  %v6290_v26 = vld [vmem:[#allocation7 + $0x4f4] sm:$0xf]  ;;  %v5223_v48 = vld [vmem:[#allocation7 + $0x4f8] sm:$0xf0]  ;;  %v8015_v55 = vor.u32 %v6244_v35, %v5039_v49  ;;  %v6272_v11 = vld [vmem:[#allocation7 + $0x464] sm:$0xf] }
 0x159   : > { %3191 = vmatpush.bf16.msrb.mxu0 %v7994_v30  ;;  %v6306_v5 = vld [vmem:[#allocation7 + $0x574] sm:$0xf]  ;;  %v5287_v45 = vld [vmem:[#allocation7 + $0x578] sm:$0xf0]  ;;  %9670 = vst [vmem:[#allocation257_spill] sm:$0xff] %v8012_v39  ;;  %v8017_v30 = vor.u32 %v6274_v36, %v5159_v41  ;;  %v8019_v24 = vor.u32 %v6290_v26, %v5223_v48 }
 0x15a   : > { %3204 = vmatpush.bf16.msrb.mxu1 %v7998_v59  ;;  %v6322_v32 = vld [vmem:[#allocation7 + $0x5f4] sm:$0xf]  ;;  %v5351_v14 = vld [vmem:[#allocation7 + $0x5f8] sm:$0xf0]  ;;  %9671 = vst [vmem:[#allocation258_spill] sm:$0xff] %v8015_v55  ;;  %v8021_v57 = vor.u32 %v6306_v5, %v5287_v45 }
 0x15b   : > { %3217 = vmatpush.bf16.msrb.mxu2 %v8000_v4  ;;  %9672 = vst [vmem:[#allocation259_spill] sm:$0xff] %v8017_v30  ;;  %v5151_v59 = vld [vmem:[#allocation7 + $0x468] sm:$0xf0]  ;;  %v6288_v60 = vld [vmem:[#allocation7 + $0x4e4] sm:$0xf]  ;;  %v8024_v43 = vor.u32 %v6322_v32, %v5351_v14 }
 0x15c   : > { %3230 = vmatpush.bf16.msrb.mxu3 %v8003_v42  ;;  %9673 = vst [vmem:[#allocation260_spill] sm:$0xff] %v8019_v24  ;;  %v5215_v6 = vld [vmem:[#allocation7 + $0x4e8] sm:$0xf0]  ;;  %v6304_v13 = vld [vmem:[#allocation7 + $0x564] sm:$0xf]  ;;  %v8030_v26 = vor.u32 %v6272_v11, %v5151_v59 }
 0x15d   : > { %9674 = vst [vmem:[#allocation261_spill] sm:$0xff] %v8021_v57  ;;  %3192 = vmatpush.bf16.msrb.mxu0 %v8006_v62  ;;  %v5279_v53 = vld [vmem:[#allocation7 + $0x568] sm:$0xf0]  ;;  %v6320_v41 = vld [vmem:[#allocation7 + $0x5e4] sm:$0xf]  ;;  %v8034_v14 = vor.u32 %v6288_v60, %v5215_v6 }
 0x15e   : > { %9675 = vst [vmem:[#allocation262_spill] sm:$0xff] %v8024_v43  ;;  %3205 = vmatpush.bf16.msrb.mxu1 %v8010_v23  ;;  %v5343_v36 = vld [vmem:[#allocation7 + $0x5e8] sm:$0xf0]  ;;  %v8036_v35 = vor.u32 %v6304_v13, %v5279_v53  ;;  %v6270_v49 = vld [vmem:[#allocation7 + $0x454] sm:$0xf] }
 0x15f   : > { %3218 = vmatpush.bf16.msrb.mxu2 %v8012_v39  ;;  %9676 = vst [vmem:[#allocation263_spill] sm:$0xff] %v8030_v26  ;;  %v5143_v48 = vld [vmem:[#allocation7 + $0x458] sm:$0xf0]  ;;  %v6286_v5 = vld [vmem:[#allocation7 + $0x4d4] sm:$0xf]  ;;  %v8039_v45 = vor.u32 %v6320_v41, %v5343_v36 }
 0x160   : > { %3231 = vmatpush.bf16.msrb.mxu3 %v8015_v55  ;;  %9677 = vst [vmem:[#allocation264_spill] sm:$0xff] %v8034_v14  ;;  %v5207_v32 = vld [vmem:[#allocation7 + $0x4d8] sm:$0xf0]  ;;  %v6302_v11 = vld [vmem:[#allocation7 + $0x554] sm:$0xf]  ;;  %3193 = vmatmul.bf16.vlgmr.msrb.gmra.mxu0 %v7369_v18  ;;  %v8045_v60 = vor.u32 %v6270_v49, %v5143_v48  ;;  %v2986_v48 = vpop.f32.mrf.mxu0 }
 0x161   : > { %3237 = vmatpush.bf16.msra.mxu0 %v8017_v30  ;;  %9678 = vst [vmem:[#allocation265_spill] sm:$0xff] %v8036_v35  ;;  %v5271_v59 = vld [vmem:[#allocation7 + $0x558] sm:$0xf0]  ;;  %v6318_v30 = vld [vmem:[#allocation7 + $0x5d4] sm:$0xf]  ;;  %3206 = vmatmul.bf16.vlgmr.msrb.gmra.mxu1 %v7377_v15 }
 0x162   : > { %3250 = vmatpush.bf16.msra.mxu1 %v8019_v24  ;;  %9679 = vst [vmem:[#allocation266_spill] sm:$0xff] %v8039_v45  ;;  %3219 = vmatmul.bf16.vlgmr.msrb.gmra.mxu2 %v7365_v37  ;;  %v5335_v24 = vld [vmem:[#allocation7 + $0x5d8] sm:$0xf0]  ;;  %v8050_v37 = vor.u32 %v6286_v5, %v5207_v32  ;;  %v8052_v6 = vor.u32 %v6302_v11, %v5271_v59  ;;  %v6268_v13 = vld [vmem:[#allocation7 + $0x444] sm:$0xf]  ;;  %v2999_v11 = vpop.f32.mrf.mxu1 }
 0x163   : > { %3263 = vmatpush.bf16.msra.mxu2 %v8021_v57  ;;  %3232 = vmatmul.bf16.vlgmr.msrb.gmra.mxu3 %v7371_v20  ;;  %9680 = vst [vmem:[#allocation267_spill] sm:$0xff] %v8045_v60  ;;  %v5135_v53 = vld [vmem:[#allocation7 + $0x448] sm:$0xf0]  ;;  %v6284_v41 = vld [vmem:[#allocation7 + $0x4c4] sm:$0xf]  ;;  %v8055_v18 = vor.u32 %v6318_v30, %v5335_v24  ;;  %v2987_v5 = vadd.f32 %v2986_v48, %v7984_v10 }
 0x164   : > { %3276 = vmatpush.bf16.msra.mxu3 %v8024_v43  ;;  %9681 = vst [vmem:[#allocation268_spill] sm:$0xff] %v8050_v37  ;;  %v5199_v20 = vld [vmem:[#allocation7 + $0x4c8] sm:$0xf0]  ;;  %v6300_v36 = vld [vmem:[#allocation7 + $0x544] sm:$0xf]  ;;  %v8059_v32 = vor.u32 %v6268_v13, %v5135_v53 }
 0x165   : > { %3238 = vmatpush.bf16.msra.mxu0 %v8030_v26  ;;  %9682 = vst [vmem:[#allocation269_spill] sm:$0xff] %v8052_v6  ;;  %v5263_v49 = vld [vmem:[#allocation7 + $0x548] sm:$0xf0]  ;;  %v6316_v15 = vld [vmem:[#allocation7 + $0x5c4] sm:$0xf]  ;;  %v8063_v59 = vor.u32 %v6284_v41, %v5199_v20 }
 0x166   : > { %3251 = vmatpush.bf16.msra.mxu1 %v8034_v14  ;;  %9683 = vst [vmem:[#allocation270_spill] sm:$0xff] %v8055_v18  ;;  %v5327_v26 = vld [vmem:[#allocation7 + $0x5c8] sm:$0xf0]  ;;  %v8065_v30 = vor.u32 %v6300_v36, %v5263_v49  ;;  %v6266_v24 = vld [vmem:[#allocation7 + $0x434] sm:$0xf] }
 0x167   : > { %3264 = vmatpush.bf16.msra.mxu2 %v8036_v35  ;;  %9684 = vst [vmem:[#allocation271_spill] sm:$0xff] %v8059_v32  ;;  %v6282_v35 = vld [vmem:[#allocation7 + $0x4b4] sm:$0xf]  ;;  %v8068_v14 = vor.u32 %v6316_v15, %v5327_v26  ;;  %v5191_v10 = vld [vmem:[#allocation7 + $0x4b8] sm:$0xf0] }
 0x168   : > { %3277 = vmatpush.bf16.msra.mxu3 %v8039_v45  ;;  %9685 = vst [vmem:[#allocation272_spill] sm:$0xff] %v8063_v59  ;;  %v5127_v45 = vld [vmem:[#allocation7 + $0x438] sm:$0xf0]  ;;  %v6298_v13 = vld [vmem:[#allocation7 + $0x534] sm:$0xf]  ;;  %v8075_v41 = vor.u32 %v6282_v35, %v5191_v10 }
 0x169   : > { %3239 = vmatpush.bf16.msra.mxu0 %v8045_v60  ;;  %9686 = vst [vmem:[#allocation273_spill] sm:$0xff] %v8065_v30  ;;  %v3000_v60 = vadd.f32 %v2999_v11, %v2987_v5  ;;  %v5255_v53 = vld [vmem:[#allocation7 + $0x538] sm:$0xf0]  ;;  %v6314_v48 = vld [vmem:[#allocation7 + $0x5b4] sm:$0xf]  ;;  %v3012_v5 = vpop.f32.mrf.mxu2 }
 0x16a   : > { %3252 = vmatpush.bf16.msra.mxu1 %v8050_v37  ;;  %9687 = vst [vmem:[#allocation274_spill] sm:$0xff] %v8068_v14  ;;  %v5319_v43 = vld [vmem:[#allocation7 + $0x5b8] sm:$0xf0]  ;;  %v8077_v20 = vor.u32 %v6298_v13, %v5255_v53  ;;  %v6264_v26 = vld [vmem:[#allocation7 + $0x424] sm:$0xf]  ;;  %v3001_v10 = vpop.f32.mrf.mxu1 }
 0x16b   : > { %3265 = vmatpush.bf16.msra.mxu2 %v8052_v6  ;;  %v8071_v6 = vor.u32 %v6266_v24, %v5127_v45  ;;  %9689 = vst [vmem:[#allocation276_spill] sm:$0xff] %v8075_v41  ;;  %v5119_v36 = vld [vmem:[#allocation7 + $0x428] sm:$0xf0]  ;;  %v6280_v49 = vld [vmem:[#allocation7 + $0x4a4] sm:$0xf]  ;;  %v8080_v15 = vor.u32 %v6314_v48, %v5319_v43  ;;  %v3013_v24 = vadd.f32 %v3012_v5, %v3000_v60 }
 0x16c   : > { %3278 = vmatpush.bf16.msra.mxu3 %v8055_v18  ;;  %9690 = vst [vmem:[#allocation277_spill] sm:$0xff] %v8077_v20  ;;  %v5183_v11 = vld [vmem:[#allocation7 + $0x4a8] sm:$0xf0]  ;;  %v3025_v18 = vpop.f32.mrf.mxu3  ;;  %v8083_v35 = vor.u32 %v6264_v26, %v5119_v36  ;;  %v6262_v60 = vld [vmem:[#allocation7 + $0x414] sm:$0xf] }
 0x16d   : > { %3240 = vmatpush.bf16.msra.mxu0 %v8059_v32  ;;  %9688 = vst [vmem:[#allocation275_spill] sm:$0xff] %v8071_v6  ;;  %v6296_v32 = vld [vmem:[#allocation7 + $0x524] sm:$0xf]  ;;  %v5247_v45 = vld [vmem:[#allocation7 + $0x528] sm:$0xf0]  ;;  %v8087_v43 = vadd.f32 %v3025_v18, %v3013_v24  ;;  %v8089_v13 = vor.u32 %v6280_v49, %v5183_v11 }
 0x16e   : > { %3253 = vmatpush.bf16.msra.mxu1 %v8063_v59  ;;  %9691 = vst [vmem:[#allocation278_spill] sm:$0xff] %v8080_v15  ;;  %v6312_v59 = vld [vmem:[#allocation7 + $0x5a4] sm:$0xf]  ;;  %v5311_v37 = vld [vmem:[#allocation7 + $0x5a8] sm:$0xf0]  ;;  %v8091_v53 = vor.u32 %v6296_v32, %v5247_v45 }
 0x16f   : > { %3266 = vmatpush.bf16.msra.mxu2 %v8065_v30  ;;  %v2988_v30 = vpop.f32.mrf.mxu0  ;;  %9692 = vst [vmem:[#allocation279_spill] sm:$0xff] %v8083_v35  ;;  %v5111_v48 = vld [vmem:[#allocation7 + $0x418] sm:$0xf0]  ;;  %v6278_v5 = vld [vmem:[#allocation7 + $0x494] sm:$0xf] }
 0x170   : > { %3279 = vmatpush.bf16.msra.mxu3 %v8068_v14  ;;  %9693 = vst [vmem:[#allocation280_spill] sm:$0xff] %v8089_v13  ;;  %v8094_v30 = vor.u32 %v6312_v59, %v5311_v37  ;;  %v5175_v26 = vld [vmem:[#allocation7 + $0x498] sm:$0xf0]  ;;  %v6294_v36 = vld [vmem:[#allocation7 + $0x514] sm:$0xf]  ;;  %v8097_v18 = vor.u32 %v6262_v60, %v5111_v48 }
 0x171   : > { %3241 = vmatpush.bf16.msra.mxu0 %v8071_v6  ;;  %9694 = vst [vmem:[#allocation281_spill] sm:$0xff] %v8091_v53  ;;  %v5239_v10 = vld [vmem:[#allocation7 + $0x518] sm:$0xf0]  ;;  %v6310_v6 = vld [vmem:[#allocation7 + $0x594] sm:$0xf]  ;;  %v8101_v32 = vor.u32 %v6278_v5, %v5175_v26 }
 0x172   : > { %3254 = vmatpush.bf16.msra.mxu1 %v8075_v41  ;;  %9695 = vst [vmem:[#allocation282_spill] sm:$0xff] %v8094_v30  ;;  %v5303_v41 = vld [vmem:[#allocation7 + $0x598] sm:$0xf0]  ;;  %v6260_v49 = vld [vmem:[#allocation7 + $0x404] sm:$0xf]  ;;  %v8103_v45 = vor.u32 %v6294_v36, %v5239_v10 }
 0x173   : > { %3267 = vmatpush.bf16.msra.mxu2 %v8077_v20  ;;  %9696 = vst [vmem:[#allocation283_spill] sm:$0xff] %v8097_v18  ;;  %v5103_v11 = vld [vmem:[#allocation7 + $0x408] sm:$0xf0]  ;;  %v6276_v37 = vld [vmem:[#allocation7 + $0x484] sm:$0xf]  ;;  %v3014_v20 = vpop.f32.mrf.mxu2 }
 0x174   : > { %3280 = vmatpush.bf16.msra.mxu3 %v8080_v15  ;;  %9697 = vst [vmem:[#allocation284_spill] sm:$0xff] %v8101_v32  ;;  %v5167_v59 = vld [vmem:[#allocation7 + $0x488] sm:$0xf0]  ;;  %v6292_v24 = vld [vmem:[#allocation7 + $0x504] sm:$0xf]  ;;  %v8106_v15 = vor.u32 %v6310_v6, %v5303_v41  ;;  %v3027_v55 = vpop.f32.mrf.mxu3  ;;  %v8109_v5 = vor.u32 %v6260_v49, %v5103_v11 }
 0x175   : > { %3242 = vmatpush.bf16.msra.mxu0 %v8083_v35  ;;  %v5231_v35 = vld [vmem:[#allocation7 + $0x508] sm:$0xf0]  ;;  %v6308_v60 = vld [vmem:[#allocation7 + $0x584] sm:$0xf]  ;;  %v6338_v14 = vld [vmem:[#allocation7 + $0x674] sm:$0xf]  ;;  %v8113_v6 = vor.u32 %v6276_v37, %v5167_v59 }
 0x176   : > { %3255 = vmatpush.bf16.msra.mxu1 %v8089_v13  ;;  %v5295_v48 = vld [vmem:[#allocation7 + $0x588] sm:$0xf0]  ;;  %v5415_v57 = vld [vmem:[#allocation7 + $0x678] sm:$0xf0]  ;;  %v6354_v13 = vld [vmem:[#allocation7 + $0x6f4] sm:$0xf]  ;;  %v8115_v41 = vor.u32 %v6292_v24, %v5231_v35 }
 0x177   : > { %3268 = vmatpush.bf16.msra.mxu2 %v8091_v53  ;;  %v5479_v26 = vld [vmem:[#allocation7 + $0x6f8] sm:$0xf0]  ;;  %v6370_v36 = vld [vmem:[#allocation7 + $0x774] sm:$0xf]  ;;  %v8118_v55 = vor.u32 %v6308_v60, %v5295_v48  ;;  %v6336_v53 = vld [vmem:[#allocation7 + $0x664] sm:$0xf] }
 0x178   : > { %3281 = vmatpush.bf16.msra.mxu3 %v8094_v30  ;;  %v5543_v10 = vld [vmem:[#allocation7 + $0x778] sm:$0xf0]  ;;  %9698 = vst [vmem:[#allocation285_spill] sm:$0xff] %v8115_v41  ;;  %v6386_v20 = vld [vmem:[#allocation7 + $0x7f4] sm:$0xf]  ;;  %v8122_v49 = vor.u32 %v6354_v13, %v5479_v26 }
 0x179   : > { %3243 = vmatpush.bf16.msra.mxu0 %v8097_v18  ;;  %v5607_v30 = vld [vmem:[#allocation7 + $0x7f8] sm:$0xf0]  ;;  %9699 = vst [vmem:[#allocation286_spill] sm:$0xff] %v8118_v55  ;;  %v8120_v18 = vor.u32 %v6338_v14, %v5415_v57  ;;  %v8124_v11 = vor.u32 %v6370_v36, %v5543_v10  ;;  %v6352_v39 = vld [vmem:[#allocation7 + $0x6e4] sm:$0xf] }
 0x17a   : > { %3256 = vmatpush.bf16.msra.mxu1 %v8101_v32  ;;  %9701 = vst [vmem:[#allocation288_spill] sm:$0xff] %v8122_v49  ;;  %v5407_v32 = vld [vmem:[#allocation7 + $0x668] sm:$0xf0]  ;;  %v8127_v37 = vor.u32 %v6386_v20, %v5607_v30  ;;  %v6368_v59 = vld [vmem:[#allocation7 + $0x764] sm:$0xf] }
 0x17b   : > { %3269 = vmatpush.bf16.msra.mxu2 %v8103_v45  ;;  %9700 = vst [vmem:[#allocation287_spill] sm:$0xff] %v8120_v18  ;;  %v5471_v35 = vld [vmem:[#allocation7 + $0x6e8] sm:$0xf0]  ;;  %v6384_v57 = vld [vmem:[#allocation7 + $0x7e4] sm:$0xf]  ;;  %v8133_v13 = vor.u32 %v6336_v53, %v5407_v32 }
 0x17c   : > { %3282 = vmatpush.bf16.msra.mxu3 %v8106_v15  ;;  %9702 = vst [vmem:[#allocation289_spill] sm:$0xff] %v8124_v11  ;;  %v5535_v24 = vld [vmem:[#allocation7 + $0x768] sm:$0xf0]  ;;  %v8137_v30 = vor.u32 %v6352_v39, %v5471_v35  ;;  %v6334_v48 = vld [vmem:[#allocation7 + $0x654] sm:$0xf] }
 0x17d   : > { %3244 = vmatpush.bf16.msra.mxu0 %v8109_v5  ;;  %9703 = vst [vmem:[#allocation290_spill] sm:$0xff] %v8127_v37  ;;  %v5599_v14 = vld [vmem:[#allocation7 + $0x7e8] sm:$0xf0]  ;;  %v8139_v60 = vor.u32 %v6368_v59, %v5535_v24  ;;  %v5399_v26 = vld [vmem:[#allocation7 + $0x658] sm:$0xf0] }
 0x17e   : > { %3257 = vmatpush.bf16.msra.mxu1 %v8113_v6  ;;  %9704 = vst [vmem:[#allocation291_spill] sm:$0xff] %v8133_v13  ;;  %v6350_v36 = vld [vmem:[#allocation7 + $0x6d4] sm:$0xf]  ;;  %v8143_v10 = vor.u32 %v6384_v57, %v5599_v14  ;;  %v5463_v20 = vld [vmem:[#allocation7 + $0x6d8] sm:$0xf0]  ;;  %v8149_v59 = vor.u32 %v6334_v48, %v5399_v26  ;;  %v3038_v48 = vpop.f32.mrf.mxu0 }
 0x17f   : > { %3270 = vmatpush.bf16.msra.mxu2 %v8115_v41  ;;  %9705 = vst [vmem:[#allocation292_spill] sm:$0xff] %v8137_v30  ;;  %v6366_v53 = vld [vmem:[#allocation7 + $0x754] sm:$0xf]  ;;  %v5527_v32 = vld [vmem:[#allocation7 + $0x758] sm:$0xf0] }
 0x180   : > { %3283 = vmatpush.bf16.msra.mxu3 %v8118_v55  ;;  %9706 = vst [vmem:[#allocation293_spill] sm:$0xff] %v8139_v60  ;;  %3245 = vmatmul.bf16.vlgmr.msra.gmra.mxu0 %v7475_v1  ;;  %v6382_v39 = vld [vmem:[#allocation7 + $0x7d4] sm:$0xf]  ;;  %v5591_v35 = vld [vmem:[#allocation7 + $0x7d8] sm:$0xf0]  ;;  %v8153_v1 = vor.u32 %v6350_v36, %v5463_v20  ;;  %v8155_v24 = vor.u32 %v6366_v53, %v5527_v32  ;;  %v3051_v53 = vpop.f32.mrf.mxu1 }
 0x181   : > { %3289 = vmatpush.bf16.msrb.mxu0 %v8120_v18  ;;  %9707 = vst [vmem:[#allocation294_spill] sm:$0xff] %v8143_v10  ;;  %3258 = vmatmul.bf16.vlgmr.msra.gmra.mxu1 %v7481_v54  ;;  %v6332_v57 = vld [vmem:[#allocation7 + $0x644] sm:$0xf]  ;;  %v8158_v54 = vor.u32 %v6382_v39, %v5591_v35  ;;  %v3039_v36 = vadd.f32 %v3038_v48, %v8087_v43  ;;  %v6330_v35 = vld [vmem:[#allocation7 + $0x634] sm:$0xf] }
 0x182   : > { %3302 = vmatpush.bf16.msrb.mxu1 %v8122_v49  ;;  %3271 = vmatmul.bf16.vlgmr.msra.gmra.mxu2 %v7479_v0  ;;  %9708 = vst [vmem:[#allocation295_spill] sm:$0xff] %v8149_v59  ;;  %v5391_v0 = vld [vmem:[#allocation7 + $0x648] sm:$0xf0]  ;;  %v6348_v14 = vld [vmem:[#allocation7 + $0x6c4] sm:$0xf] }
 0x183   : > { %3315 = vmatpush.bf16.msrb.mxu2 %v8124_v11  ;;  %3284 = vmatmul.bf16.vlgmr.msra.gmra.mxu3 %v7485_v47  ;;  %9709 = vst [vmem:[#allocation296_spill] sm:$0xff] %v8153_v1  ;;  %v5455_v47 = vld [vmem:[#allocation7 + $0x6c8] sm:$0xf0]  ;;  %v6380_v26 = vld [vmem:[#allocation7 + $0x7c4] sm:$0xf]  ;;  %v8162_v20 = vor.u32 %v6332_v57, %v5391_v0 }
 0x184   : > { %3328 = vmatpush.bf16.msrb.mxu3 %v8127_v37  ;;  %9710 = vst [vmem:[#allocation297_spill] sm:$0xff] %v8155_v24  ;;  %v6364_v37 = vld [vmem:[#allocation7 + $0x744] sm:$0xf]  ;;  %v5583_v11 = vld [vmem:[#allocation7 + $0x7c8] sm:$0xf0]  ;;  %v8166_v32 = vor.u32 %v6348_v14, %v5455_v47 }
 0x185   : > { %3290 = vmatpush.bf16.msrb.mxu0 %v8133_v13  ;;  %9711 = vst [vmem:[#allocation298_spill] sm:$0xff] %v8158_v54  ;;  %v5519_v13 = vld [vmem:[#allocation7 + $0x748] sm:$0xf0]  ;;  %v5447_v43 = vld [vmem:[#allocation7 + $0x6b8] sm:$0xf0] }
 0x186   : > { %3303 = vmatpush.bf16.msrb.mxu1 %v8137_v30  ;;  %9712 = vst [vmem:[#allocation299_spill] sm:$0xff] %v8162_v20  ;;  %v8168_v39 = vor.u32 %v6364_v37, %v5519_v13  ;;  %v8171_v30 = vor.u32 %v6380_v26, %v5583_v11  ;;  %v6362_v57 = vld [vmem:[#allocation7 + $0x734] sm:$0xf]  ;;  %v5511_v0 = vld [vmem:[#allocation7 + $0x738] sm:$0xf0] }
 0x187   : > { %3316 = vmatpush.bf16.msrb.mxu2 %v8139_v60  ;;  %9713 = vst [vmem:[#allocation300_spill] sm:$0xff] %v8166_v32  ;;  %v6346_v60 = vld [vmem:[#allocation7 + $0x6b4] sm:$0xf]  ;;  %v5575_v49 = vld [vmem:[#allocation7 + $0x7b8] sm:$0xf0]  ;;  %v8180_v13 = vor.u32 %v6362_v57, %v5511_v0 }
 0x188   : > { %3329 = vmatpush.bf16.msrb.mxu3 %v8143_v10  ;;  %9714 = vst [vmem:[#allocation301_spill] sm:$0xff] %v8168_v39  ;;  %v5383_v10 = vld [vmem:[#allocation7 + $0x638] sm:$0xf0]  ;;  %v6378_v48 = vld [vmem:[#allocation7 + $0x7b4] sm:$0xf]  ;;  %v8178_v37 = vor.u32 %v6346_v60, %v5447_v43  ;;  %v3053_v43 = vpop.f32.mrf.mxu1 }
 0x189   : > { %3291 = vmatpush.bf16.msrb.mxu0 %v8149_v59  ;;  %9715 = vst [vmem:[#allocation302_spill] sm:$0xff] %v8171_v30  ;;  %v3052_v59 = vadd.f32 %v3051_v53, %v3039_v36  ;;  %v6328_v11 = vld [vmem:[#allocation7 + $0x624] sm:$0xf]  ;;  %v5375_v14 = vld [vmem:[#allocation7 + $0x628] sm:$0xf0]  ;;  %v8183_v26 = vor.u32 %v6378_v48, %v5575_v49  ;;  %v3064_v36 = vpop.f32.mrf.mxu2 }
 0x18a   : > { %3304 = vmatpush.bf16.msrb.mxu1 %v8153_v1  ;;  %9717 = vst [vmem:[#allocation304_spill] sm:$0xff] %v8178_v37  ;;  %v6344_v47 = vld [vmem:[#allocation7 + $0x6a4] sm:$0xf]  ;;  %v5439_v53 = vld [vmem:[#allocation7 + $0x6a8] sm:$0xf0]  ;;  %v8186_v60 = vor.u32 %v6328_v11, %v5375_v14 }
 0x18b   : > { %3317 = vmatpush.bf16.msrb.mxu2 %v8155_v24  ;;  %v8174_v24 = vor.u32 %v6330_v35, %v5383_v10  ;;  %9718 = vst [vmem:[#allocation305_spill] sm:$0xff] %v8180_v13  ;;  %v5503_v10 = vld [vmem:[#allocation7 + $0x728] sm:$0xf0]  ;;  %v3065_v35 = vadd.f32 %v3064_v36, %v3052_v59  ;;  %v8192_v57 = vor.u32 %v6344_v47, %v5439_v53  ;;  %v6326_v59 = vld [vmem:[#allocation7 + $0x614] sm:$0xf] }
 0x18c   : > { %3330 = vmatpush.bf16.msrb.mxu3 %v8158_v54  ;;  %9719 = vst [vmem:[#allocation306_spill] sm:$0xff] %v8183_v26  ;;  %v3077_v54 = vpop.f32.mrf.mxu3  ;;  %v5567_v1 = vld [vmem:[#allocation7 + $0x7a8] sm:$0xf0]  ;;  %v5367_v48 = vld [vmem:[#allocation7 + $0x618] sm:$0xf0] }
 0x18d   : > { %3292 = vmatpush.bf16.msrb.mxu0 %v8162_v20  ;;  %9716 = vst [vmem:[#allocation303_spill] sm:$0xff] %v8174_v24  ;;  %v6360_v20 = vld [vmem:[#allocation7 + $0x724] sm:$0xf]  ;;  %v8190_v49 = vadd.f32 %v3077_v54, %v3065_v35  ;;  %v6342_v36 = vld [vmem:[#allocation7 + $0x694] sm:$0xf]  ;;  %v8200_v54 = vor.u32 %v6326_v59, %v5367_v48 }
 0x18e   : > { %3305 = vmatpush.bf16.msrb.mxu1 %v8166_v32  ;;  %v6376_v32 = vld [vmem:[#allocation7 + $0x7a4] sm:$0xf]  ;;  %9720 = vst [vmem:[#allocation307_spill] sm:$0xff] %v8186_v60  ;;  %v8194_v0 = vor.u32 %v6360_v20, %v5503_v10  ;;  %v5431_v11 = vld [vmem:[#allocation7 + $0x698] sm:$0xf0] }
 0x18f   : > { %3318 = vmatpush.bf16.msrb.mxu2 %v8168_v39  ;;  %v3040_v39 = vpop.f32.mrf.mxu0  ;;  %9721 = vst [vmem:[#allocation308_spill] sm:$0xff] %v8192_v57  ;;  %v6358_v14 = vld [vmem:[#allocation7 + $0x714] sm:$0xf]  ;;  %v5495_v43 = vld [vmem:[#allocation7 + $0x718] sm:$0xf0]  ;;  %v8204_v20 = vor.u32 %v6342_v36, %v5431_v11 }
 0x190   : > { %3331 = vmatpush.bf16.msrb.mxu3 %v8171_v30  ;;  %9722 = vst [vmem:[#allocation309_spill] sm:$0xff] %v8194_v0  ;;  %v8197_v39 = vor.u32 %v6376_v32, %v5567_v1  ;;  %v6324_v47 = vld [vmem:[#allocation7 + $0x604] sm:$0xf]  ;;  %v5359_v53 = vld [vmem:[#allocation7 + $0x608] sm:$0xf0]  ;;  %v8206_v10 = vor.u32 %v6358_v14, %v5495_v43 }
 0x191   : > { %3293 = vmatpush.bf16.msrb.mxu0 %v8174_v24  ;;  %v6374_v24 = vld [vmem:[#allocation7 + $0x794] sm:$0xf]  ;;  %9724 = vst [vmem:[#allocation311_spill] sm:$0xff] %v8200_v54  ;;  %v6340_v1 = vld [vmem:[#allocation7 + $0x684] sm:$0xf]  ;;  %v8212_v36 = vor.u32 %v6324_v47, %v5359_v53 }
 0x192   : > { %3306 = vmatpush.bf16.msrb.mxu1 %v8178_v37  ;;  %9723 = vst [vmem:[#allocation310_spill] sm:$0xff] %v8197_v39  ;;  %v5559_v37 = vld [vmem:[#allocation7 + $0x798] sm:$0xf0]  ;;  %v5423_v32 = vld [vmem:[#allocation7 + $0x688] sm:$0xf0] }
 0x193   : > { %3319 = vmatpush.bf16.msrb.mxu2 %v8180_v13  ;;  %9725 = vst [vmem:[#allocation312_spill] sm:$0xff] %v8204_v20  ;;  %v6356_v35 = vld [vmem:[#allocation7 + $0x704] sm:$0xf]  ;;  %v5551_v48 = vld [vmem:[#allocation7 + $0x788] sm:$0xf0]  ;;  %v3066_v13 = vpop.f32.mrf.mxu2 }
 0x194   : > { %3332 = vmatpush.bf16.msrb.mxu3 %v8183_v26  ;;  %v8209_v26 = vor.u32 %v6374_v24, %v5559_v37  ;;  %v6372_v59 = vld [vmem:[#allocation7 + $0x784] sm:$0xf]  ;;  %v6402_v30 = vld [vmem:[#allocation7 + $0x874] sm:$0xf]  ;;  %v5671_v18 = vld [vmem:[#allocation7 + $0x878] sm:$0xf0]  ;;  %v3079_v55 = vpop.f32.mrf.mxu3  ;;  %v8216_v24 = vor.u32 %v6340_v1, %v5423_v32 }
 0x195   : > { %3294 = vmatpush.bf16.msrb.mxu0 %v8186_v60  ;;  %v5487_v60 = vld [vmem:[#allocation7 + $0x708] sm:$0xf0]  ;;  %v5735_v11 = vld [vmem:[#allocation7 + $0x8f8] sm:$0xf0]  ;;  %v6434_v14 = vld [vmem:[#allocation7 + $0x974] sm:$0xf]  ;;  %v8221_v55 = vor.u32 %v6372_v59, %v5551_v48 }
 0x196   : > { %3307 = vmatpush.bf16.msrb.mxu1 %v8192_v57  ;;  %v6418_v57 = vld [vmem:[#allocation7 + $0x8f4] sm:$0xf]  ;;  %v5799_v43 = vld [vmem:[#allocation7 + $0x978] sm:$0xf0]  ;;  %v8218_v37 = vor.u32 %v6356_v35, %v5487_v60  ;;  %v6416_v41 = vld [vmem:[#allocation7 + $0x8e4] sm:$0xf] }
 0x197   : > { %3320 = vmatpush.bf16.msrb.mxu2 %v8194_v0  ;;  %v6450_v13 = vld [vmem:[#allocation7 + $0x9f4] sm:$0xf]  ;;  %9726 = vst [vmem:[#allocation313_spill] sm:$0xff] %v8221_v55  ;;  %v8225_v47 = vor.u32 %v6418_v57, %v5735_v11  ;;  %v8227_v53 = vor.u32 %v6434_v14, %v5799_v43  ;;  %v6400_v0 = vld [vmem:[#allocation7 + $0x864] sm:$0xf] }
 0x198   : > { %3333 = vmatpush.bf16.msrb.mxu3 %v8197_v39  ;;  %v5863_v39 = vld [vmem:[#allocation7 + $0x9f8] sm:$0xf0]  ;;  %v5727_v60 = vld [vmem:[#allocation7 + $0x8e8] sm:$0xf0]  ;;  %v6432_v32 = vld [vmem:[#allocation7 + $0x964] sm:$0xf] }
 0x199   : > { %3295 = vmatpush.bf16.msrb.mxu0 %v8200_v54  ;;  %v8223_v54 = vor.u32 %v6402_v30, %v5671_v18  ;;  %9728 = vst [vmem:[#allocation315_spill] sm:$0xff] %v8225_v47  ;;  %v8230_v1 = vor.u32 %v6450_v13, %v5863_v39  ;;  %v5791_v35 = vld [vmem:[#allocation7 + $0x968] sm:$0xf0]  ;;  %v6448_v18 = vld [vmem:[#allocation7 + $0x9e4] sm:$0xf]  ;;  %v8240_v39 = vor.u32 %v6416_v41, %v5727_v60 }
 0x19a   : > { %3308 = vmatpush.bf16.msrb.mxu1 %v8204_v20  ;;  %9729 = vst [vmem:[#allocation316_spill] sm:$0xff] %v8227_v53  ;;  %v5663_v20 = vld [vmem:[#allocation7 + $0x868] sm:$0xf0]  ;;  %v8242_v59 = vor.u32 %v6432_v32, %v5791_v35  ;;  %v6398_v48 = vld [vmem:[#allocation7 + $0x854] sm:$0xf] }
 0x19b   : > { %3321 = vmatpush.bf16.msrb.mxu2 %v8206_v10  ;;  %9727 = vst [vmem:[#allocation314_spill] sm:$0xff] %v8223_v54  ;;  %v5855_v30 = vld [vmem:[#allocation7 + $0x9e8] sm:$0xf0]  ;;  %v8236_v57 = vor.u32 %v6400_v0, %v5663_v20  ;;  %v5655_v11 = vld [vmem:[#allocation7 + $0x858] sm:$0xf0] }
 0x19c   : > { %3334 = vmatpush.bf16.msrb.mxu3 %v8209_v26  ;;  %9730 = vst [vmem:[#allocation317_spill] sm:$0xff] %v8230_v1  ;;  %v6414_v14 = vld [vmem:[#allocation7 + $0x8d4] sm:$0xf]  ;;  %v8246_v43 = vor.u32 %v6448_v18, %v5855_v30  ;;  %v5719_v13 = vld [vmem:[#allocation7 + $0x8d8] sm:$0xf0]  ;;  %v8252_v32 = vor.u32 %v6398_v48, %v5655_v11 }
 0x19d   : > { %3296 = vmatpush.bf16.msrb.mxu0 %v8212_v36  ;;  %9731 = vst [vmem:[#allocation318_spill] sm:$0xff] %v8236_v57  ;;  %v6430_v0 = vld [vmem:[#allocation7 + $0x954] sm:$0xf]  ;;  %v5783_v20 = vld [vmem:[#allocation7 + $0x958] sm:$0xf0]  ;;  %v3090_v48 = vpop.f32.mrf.mxu0 }
 0x19e   : > { %3309 = vmatpush.bf16.msrb.mxu1 %v8216_v24  ;;  %9732 = vst [vmem:[#allocation319_spill] sm:$0xff] %v8240_v39  ;;  %v6446_v41 = vld [vmem:[#allocation7 + $0x9d4] sm:$0xf]  ;;  %v5847_v60 = vld [vmem:[#allocation7 + $0x9d8] sm:$0xf0]  ;;  %v8258_v35 = vor.u32 %v6430_v0, %v5783_v20  ;;  %v3103_v0 = vpop.f32.mrf.mxu1 }
 0x19f   : > { %3322 = vmatpush.bf16.msrb.mxu2 %v8218_v37  ;;  %9733 = vst [vmem:[#allocation320_spill] sm:$0xff] %v8242_v59  ;;  %v6396_v18 = vld [vmem:[#allocation7 + $0x844] sm:$0xf] }
 0x1a0   : > { %3335 = vmatpush.bf16.msrb.mxu3 %v8221_v55  ;;  %3297 = vmatmul.bf16.vlgmr.msrb.gmra.mxu0 %v7585_v22  ;;  %9734 = vst [vmem:[#allocation321_spill] sm:$0xff] %v8246_v43  ;;  %v8256_v22 = vor.u32 %v6414_v14, %v5719_v13  ;;  %v6412_v30 = vld [vmem:[#allocation7 + $0x8c4] sm:$0xf]  ;;  %v3091_v14 = vadd.f32 %v3090_v48, %v8190_v49  ;;  %v5703_v49 = vld [vmem:[#allocation7 + $0x8b8] sm:$0xf0] }
 0x1a1   : > { %3341 = vmatpush.bf16.msra.mxu0 %v8223_v54  ;;  %3310 = vmatmul.bf16.vlgmr.msrb.gmra.mxu1 %v7591_v52  ;;  %9735 = vst [vmem:[#allocation322_spill] sm:$0xff] %v8252_v32  ;;  %v8261_v52 = vor.u32 %v6446_v41, %v5847_v60  ;;  %v6444_v11 = vld [vmem:[#allocation7 + $0x9c4] sm:$0xf]  ;;  %v6394_v60 = vld [vmem:[#allocation7 + $0x834] sm:$0xf] }
 0x1a2   : > { %3354 = vmatpush.bf16.msra.mxu1 %v8225_v47  ;;  %3323 = vmatmul.bf16.vlgmr.msrb.gmra.mxu2 %v7589_v28  ;;  %9736 = vst [vmem:[#allocation323_spill] sm:$0xff] %v8256_v22  ;;  %v5647_v28 = vld [vmem:[#allocation7 + $0x848] sm:$0xf0]  ;;  %v6442_v48 = vld [vmem:[#allocation7 + $0x9b4] sm:$0xf] }
 0x1a3   : > { %3367 = vmatpush.bf16.msra.mxu2 %v8227_v53  ;;  %3336 = vmatmul.bf16.vlgmr.msrb.gmra.mxu3 %v7595_v51  ;;  %9737 = vst [vmem:[#allocation324_spill] sm:$0xff] %v8258_v35  ;;  %v5711_v51 = vld [vmem:[#allocation7 + $0x8c8] sm:$0xf0]  ;;  %v8265_v13 = vor.u32 %v6396_v18, %v5647_v28  ;;  %v6426_v18 = vld [vmem:[#allocation7 + $0x934] sm:$0xf] }
 0x1a4   : > { %3380 = vmatpush.bf16.msra.mxu3 %v8230_v1  ;;  %9738 = vst [vmem:[#allocation325_spill] sm:$0xff] %v8261_v52  ;;  %v6428_v1 = vld [vmem:[#allocation7 + $0x944] sm:$0xf]  ;;  %v5839_v53 = vld [vmem:[#allocation7 + $0x9c8] sm:$0xf0]  ;;  %v8269_v20 = vor.u32 %v6412_v30, %v5711_v51 }
 0x1a5   : > { %3342 = vmatpush.bf16.msra.mxu0 %v8236_v57  ;;  %v5775_v57 = vld [vmem:[#allocation7 + $0x948] sm:$0xf0]  ;;  %9739 = vst [vmem:[#allocation326_spill] sm:$0xff] %v8265_v13  ;;  %v5767_v28 = vld [vmem:[#allocation7 + $0x938] sm:$0xf0] }
 0x1a6   : > { %3355 = vmatpush.bf16.msra.mxu1 %v8240_v39  ;;  %9740 = vst [vmem:[#allocation327_spill] sm:$0xff] %v8269_v20  ;;  %v8271_v41 = vor.u32 %v6428_v1, %v5775_v57  ;;  %v8274_v39 = vor.u32 %v6444_v11, %v5839_v53  ;;  %v5831_v47 = vld [vmem:[#allocation7 + $0x9b8] sm:$0xf0]  ;;  %v8283_v57 = vor.u32 %v6426_v18, %v5767_v28  ;;  %v6392_v53 = vld [vmem:[#allocation7 + $0x824] sm:$0xf] }
 0x1a7   : > { %3368 = vmatpush.bf16.msra.mxu2 %v8242_v59  ;;  %v6410_v59 = vld [vmem:[#allocation7 + $0x8b4] sm:$0xf]  ;;  %v5631_v30 = vld [vmem:[#allocation7 + $0x828] sm:$0xf0]  ;;  %v6408_v51 = vld [vmem:[#allocation7 + $0x8a4] sm:$0xf]  ;;  %v8286_v11 = vor.u32 %v6442_v48, %v5831_v47 }
 0x1a8   : > { %3381 = vmatpush.bf16.msra.mxu3 %v8246_v43  ;;  %9741 = vst [vmem:[#allocation328_spill] sm:$0xff] %v8271_v41  ;;  %v5639_v43 = vld [vmem:[#allocation7 + $0x838] sm:$0xf0]  ;;  %v8281_v1 = vor.u32 %v6410_v59, %v5703_v49  ;;  %v8289_v59 = vor.u32 %v6392_v53, %v5631_v30  ;;  %v3105_v49 = vpop.f32.mrf.mxu1  ;;  %v6422_v30 = vld [vmem:[#allocation7 + $0x914] sm:$0xf] }
 0x1a9   : > { %3343 = vmatpush.bf16.msra.mxu0 %v8252_v32  ;;  %9742 = vst [vmem:[#allocation329_spill] sm:$0xff] %v8274_v39  ;;  %v3104_v32 = vadd.f32 %v3103_v0, %v3091_v14  ;;  %v3116_v14 = vpop.f32.mrf.mxu2  ;;  %v5695_v0 = vld [vmem:[#allocation7 + $0x8a8] sm:$0xf0]  ;;  %v5623_v48 = vld [vmem:[#allocation7 + $0x818] sm:$0xf0] }
 0x1aa   : > { %3356 = vmatpush.bf16.msra.mxu1 %v8256_v22  ;;  %9744 = vst [vmem:[#allocation331_spill] sm:$0xff] %v8281_v1  ;;  %v5823_v22 = vld [vmem:[#allocation7 + $0x9a8] sm:$0xf0]  ;;  %v8295_v18 = vor.u32 %v6408_v51, %v5695_v0  ;;  %v5687_v53 = vld [vmem:[#allocation7 + $0x898] sm:$0xf0] }
 0x1ab   : > { %3369 = vmatpush.bf16.msra.mxu2 %v8258_v35  ;;  %v8277_v35 = vor.u32 %v6394_v60, %v5639_v43  ;;  %9745 = vst [vmem:[#allocation332_spill] sm:$0xff] %v8283_v57  ;;  %v5759_v43 = vld [vmem:[#allocation7 + $0x928] sm:$0xf0]  ;;  %v3117_v60 = vadd.f32 %v3116_v14, %v3104_v32  ;;  %v6390_v32 = vld [vmem:[#allocation7 + $0x814] sm:$0xf] }
 0x1ac   : > { %3382 = vmatpush.bf16.msra.mxu3 %v8261_v52  ;;  %9746 = vst [vmem:[#allocation333_spill] sm:$0xff] %v8286_v11  ;;  %v3129_v52 = vpop.f32.mrf.mxu3  ;;  %v6406_v14 = vld [vmem:[#allocation7 + $0x894] sm:$0xf]  ;;  %v5751_v49 = vld [vmem:[#allocation7 + $0x918] sm:$0xf0] }
 0x1ad   : > { %3344 = vmatpush.bf16.msra.mxu0 %v8265_v13  ;;  %9743 = vst [vmem:[#allocation330_spill] sm:$0xff] %v8277_v35  ;;  %v6424_v13 = vld [vmem:[#allocation7 + $0x924] sm:$0xf]  ;;  %v8293_v47 = vadd.f32 %v3129_v52, %v3117_v60  ;;  %v8303_v52 = vor.u32 %v6390_v32, %v5623_v48  ;;  %v5615_v0 = vld [vmem:[#allocation7 + $0x808] sm:$0xf0] }
 0x1ae   : > { %3357 = vmatpush.bf16.msra.mxu1 %v8269_v20  ;;  %v6440_v20 = vld [vmem:[#allocation7 + $0x9a4] sm:$0xf]  ;;  %9747 = vst [vmem:[#allocation334_spill] sm:$0xff] %v8289_v59  ;;  %v8297_v28 = vor.u32 %v6424_v13, %v5759_v43  ;;  %v8307_v13 = vor.u32 %v6406_v14, %v5687_v53  ;;  %v8309_v43 = vor.u32 %v6422_v30, %v5751_v49  ;;  %v5807_v48 = vld [vmem:[#allocation7 + $0x988] sm:$0xf0] }
 0x1af   : > { %3370 = vmatpush.bf16.msra.mxu2 %v8271_v41  ;;  %v3092_v41 = vpop.f32.mrf.mxu0  ;;  %9748 = vst [vmem:[#allocation335_spill] sm:$0xff] %v8293_v47  ;;  %v6388_v51 = vld [vmem:[#allocation7 + $0x804] sm:$0xf]  ;;  %v5991_v53 = vld [vmem:[#allocation7 + $0xaf8] sm:$0xf0] }
 0x1b0   : > { %3383 = vmatpush.bf16.msra.mxu3 %v8274_v39  ;;  %9749 = vst [vmem:[#allocation336_spill] sm:$0xff] %v8295_v18  ;;  %v8300_v41 = vor.u32 %v6440_v20, %v5823_v22  ;;  %v6404_v22 = vld [vmem:[#allocation7 + $0x884] sm:$0xf]  ;;  %v5679_v20 = vld [vmem:[#allocation7 + $0x888] sm:$0xf0]  ;;  %v8315_v14 = vor.u32 %v6388_v51, %v5615_v0 }
 0x1b1   : > { %3345 = vmatpush.bf16.msra.mxu0 %v8277_v35  ;;  %9750 = vst [vmem:[#allocation337_spill] sm:$0xff] %v8297_v28  ;;  %v6438_v35 = vld [vmem:[#allocation7 + $0x994] sm:$0xf]  ;;  %v6420_v60 = vld [vmem:[#allocation7 + $0x904] sm:$0xf] }
 0x1b2   : > { %3358 = vmatpush.bf16.msra.mxu1 %v8281_v1  ;;  %9751 = vst [vmem:[#allocation338_spill] sm:$0xff] %v8300_v41  ;;  %v5815_v1 = vld [vmem:[#allocation7 + $0x998] sm:$0xf0]  ;;  %v6436_v32 = vld [vmem:[#allocation7 + $0x984] sm:$0xf] }
 0x1b3   : > { %3371 = vmatpush.bf16.msra.mxu2 %v8283_v57  ;;  %9752 = vst [vmem:[#allocation339_spill] sm:$0xff] %v8303_v52  ;;  %v8312_v47 = vor.u32 %v6438_v35, %v5815_v1  ;;  %v6466_v57 = vld [vmem:[#allocation7 + $0xa74] sm:$0xf]  ;;  %v5927_v39 = vld [vmem:[#allocation7 + $0xa78] sm:$0xf0]  ;;  %v8319_v35 = vor.u32 %v6404_v22, %v5679_v20 }
 0x1b4   : > { %3384 = vmatpush.bf16.msra.mxu3 %v8286_v11  ;;  %9753 = vst [vmem:[#allocation340_spill] sm:$0xff] %v8307_v13  ;;  %v3118_v11 = vpop.f32.mrf.mxu2  ;;  %v3131_v54 = vpop.f32.mrf.mxu3  ;;  %v6498_v30 = vld [vmem:[#allocation7 + $0xb74] sm:$0xf]  ;;  %v6055_v49 = vld [vmem:[#allocation7 + $0xb78] sm:$0xf0] }
 0x1b5   : > { %3346 = vmatpush.bf16.msra.mxu0 %v8289_v59  ;;  %v5743_v59 = vld [vmem:[#allocation7 + $0x908] sm:$0xf0]  ;;  %v6514_v11 = vld [vmem:[#allocation7 + $0xbf4] sm:$0xf]  ;;  %v8324_v54 = vor.u32 %v6436_v32, %v5807_v48  ;;  %v8330_v0 = vor.u32 %v6498_v30, %v6055_v49  ;;  %v6480_v55 = vld [vmem:[#allocation7 + $0xae4] sm:$0xf] }
 0x1b6   : > { %3359 = vmatpush.bf16.msra.mxu1 %v8295_v18  ;;  %v6482_v18 = vld [vmem:[#allocation7 + $0xaf4] sm:$0xf]  ;;  %v8321_v1 = vor.u32 %v6420_v60, %v5743_v59  ;;  %v5983_v59 = vld [vmem:[#allocation7 + $0xae8] sm:$0xf0]  ;;  %v6496_v20 = vld [vmem:[#allocation7 + $0xb64] sm:$0xf] }
 0x1b7   : > { %3372 = vmatpush.bf16.msra.mxu2 %v8297_v28  ;;  %v8328_v51 = vor.u32 %v6482_v18, %v5991_v53  ;;  %9756 = vst [vmem:[#allocation343_spill] sm:$0xff] %v8330_v0  ;;  %v6464_v28 = vld [vmem:[#allocation7 + $0xa64] sm:$0xf]  ;;  %v6047_v60 = vld [vmem:[#allocation7 + $0xb68] sm:$0xf0] }
 0x1b8   : > { %3385 = vmatpush.bf16.msra.mxu3 %v8300_v41  ;;  %v6119_v41 = vld [vmem:[#allocation7 + $0xbf8] sm:$0xf0]  ;;  %v8345_v32 = vor.u32 %v6496_v20, %v6047_v60  ;;  %v6462_v48 = vld [vmem:[#allocation7 + $0xa54] sm:$0xf]  ;;  %v6460_v60 = vld [vmem:[#allocation7 + $0xa44] sm:$0xf] }
 0x1b9   : > { %3347 = vmatpush.bf16.msra.mxu0 %v8303_v52  ;;  %v8326_v52 = vor.u32 %v6466_v57, %v5927_v39  ;;  %9755 = vst [vmem:[#allocation342_spill] sm:$0xff] %v8328_v51  ;;  %v8333_v22 = vor.u32 %v6514_v11, %v6119_v41  ;;  %v6512_v39 = vld [vmem:[#allocation7 + $0xbe4] sm:$0xf]  ;;  %v6111_v57 = vld [vmem:[#allocation7 + $0xbe8] sm:$0xf0]  ;;  %v8343_v41 = vor.u32 %v6480_v55, %v5983_v59 }
 0x1ba   : > { %3360 = vmatpush.bf16.msra.mxu1 %v8307_v13  ;;  %v5919_v13 = vld [vmem:[#allocation7 + $0xa68] sm:$0xf0]  ;;  %9760 = vst [vmem:[#allocation347_spill] sm:$0xff] %v8345_v32  ;;  %v5911_v53 = vld [vmem:[#allocation7 + $0xa58] sm:$0xf0]  ;;  %v8349_v49 = vor.u32 %v6512_v39, %v6111_v57 }
 0x1bb   : > { %3373 = vmatpush.bf16.msra.mxu2 %v8309_v43  ;;  %9754 = vst [vmem:[#allocation341_spill] sm:$0xff] %v8326_v52  ;;  %v8339_v18 = vor.u32 %v6464_v28, %v5919_v13  ;;  %v6478_v30 = vld [vmem:[#allocation7 + $0xad4] sm:$0xf]  ;;  %v5975_v11 = vld [vmem:[#allocation7 + $0xad8] sm:$0xf0]  ;;  %v8355_v20 = vor.u32 %v6462_v48, %v5911_v53 }
 0x1bc   : > { %3386 = vmatpush.bf16.msra.mxu3 %v8312_v47  ;;  %9757 = vst [vmem:[#allocation344_spill] sm:$0xff] %v8333_v22  ;;  %v6494_v28 = vld [vmem:[#allocation7 + $0xb54] sm:$0xf]  ;;  %v6039_v13 = vld [vmem:[#allocation7 + $0xb58] sm:$0xf0] }
 0x1bd   : > { %3348 = vmatpush.bf16.msra.mxu0 %v8315_v14  ;;  %9758 = vst [vmem:[#allocation345_spill] sm:$0xff] %v8339_v18  ;;  %v6510_v55 = vld [vmem:[#allocation7 + $0xbd4] sm:$0xf]  ;;  %v6103_v59 = vld [vmem:[#allocation7 + $0xbd8] sm:$0xf0]  ;;  %v8361_v39 = vor.u32 %v6494_v28, %v6039_v13 }
 0x1be   : > { %3361 = vmatpush.bf16.msra.mxu1 %v8319_v35  ;;  %9759 = vst [vmem:[#allocation346_spill] sm:$0xff] %v8343_v41  ;;  %v6476_v57 = vld [vmem:[#allocation7 + $0xac4] sm:$0xf]  ;;  %v5967_v48 = vld [vmem:[#allocation7 + $0xac8] sm:$0xf0] }
 0x1bf   : > { %3374 = vmatpush.bf16.msra.mxu2 %v8321_v1  ;;  %9761 = vst [vmem:[#allocation348_spill] sm:$0xff] %v8349_v49  ;;  %v6492_v53 = vld [vmem:[#allocation7 + $0xb44] sm:$0xf]  ;;  %v8374_v28 = vor.u32 %v6476_v57, %v5967_v48 }
 0x1c0   : > { %3387 = vmatpush.bf16.msra.mxu3 %v8324_v54  ;;  %3349 = vmatmul.bf16.vlgmr.msra.gmra.mxu0 %v7695_v31  ;;  %9762 = vst [vmem:[#allocation349_spill] sm:$0xff] %v8355_v20  ;;  %v8359_v31 = vor.u32 %v6478_v30, %v5975_v11  ;;  %v3142_v11 = vpop.f32.mrf.mxu0 }
 0x1c1   : > { %3393 = vmatpush.bf16.msrb.mxu0 %v8326_v52  ;;  %3362 = vmatmul.bf16.vlgmr.msra.gmra.mxu1 %v7701_v61  ;;  %9764 = vst [vmem:[#allocation351_spill] sm:$0xff] %v8361_v39  ;;  %v8363_v61 = vld [vmem:[#allocation8] sm:$0x3]  ;;  %v6506_v52 = vld [vmem:[#allocation7 + $0xbb4] sm:$0xf] }
 0x1c2   : > { %3406 = vmatpush.bf16.msrb.mxu1 %v8328_v51  ;;  %3375 = vmatmul.bf16.vlgmr.msra.gmra.mxu2 %v7699_v9  ;;  %9763 = vst [vmem:[#allocation350_spill] sm:$0xff] %v8359_v31  ;;  %v5903_v9 = vld [vmem:[#allocation7 + $0xa48] sm:$0xf0]  ;;  %v3155_v51 = vpop.f32.mrf.mxu1 }
 0x1c3   : > { %3419 = vmatpush.bf16.msrb.mxu2 %v8330_v0  ;;  %3388 = vmatmul.bf16.vlgmr.msra.gmra.mxu3 %v7705_v27  ;;  %9765 = vst [vmem:[#allocation352_spill] sm:$0xff] %v8363_v61  ;;  %v8367_v27 = vor.u32 %v6510_v55, %v6103_v59  ;;  %v6095_v0 = vld [vmem:[#allocation7 + $0xbc8] sm:$0xf0]  ;;  %v8370_v30 = vor.u32 %v6460_v60, %v5903_v9  ;;  %v6458_v55 = vld [vmem:[#allocation7 + $0xa34] sm:$0xf] }
 0x1c4   : > { %3432 = vmatpush.bf16.msrb.mxu3 %v8333_v22  ;;  %9768 = vst [vmem:[#allocation355_spill] sm:$0xff] %v8374_v28  ;;  %v5895_v59 = vld [vmem:[#allocation7 + $0xa38] sm:$0xf0]  ;;  %v6474_v22 = vld [vmem:[#allocation7 + $0xab4] sm:$0xf] }
 0x1c5   : > { %3394 = vmatpush.bf16.msrb.mxu0 %v8339_v18  ;;  %9766 = vst [vmem:[#allocation353_spill] sm:$0xff] %v8367_v27  ;;  %v6031_v18 = vld [vmem:[#allocation7 + $0xb48] sm:$0xf0]  ;;  %v5959_v9 = vld [vmem:[#allocation7 + $0xab8] sm:$0xf0] }
 0x1c6   : > { %3407 = vmatpush.bf16.msrb.mxu1 %v8343_v41  ;;  %v6508_v41 = vld [vmem:[#allocation7 + $0xbc4] sm:$0xf]  ;;  %9767 = vst [vmem:[#allocation354_spill] sm:$0xff] %v8370_v30  ;;  %v8376_v13 = vor.u32 %v6492_v53, %v6031_v18  ;;  %v8384_v18 = vor.u32 %v6458_v55, %v5895_v59  ;;  %v6015_v55 = vld [vmem:[#allocation7 + $0xb28] sm:$0xf0] }
 0x1c7   : > { %3420 = vmatpush.bf16.msrb.mxu2 %v8345_v32  ;;  %v8381_v60 = vor.u32 %v6508_v41, %v6095_v0  ;;  %v6456_v0 = vld [vmem:[#allocation7 + $0xa24] sm:$0xf]  ;;  %v5887_v41 = vld [vmem:[#allocation7 + $0xa28] sm:$0xf0] }
 0x1c8   : > { %3433 = vmatpush.bf16.msrb.mxu3 %v8349_v49  ;;  %9769 = vst [vmem:[#allocation356_spill] sm:$0xff] %v8376_v13  ;;  %v9770_v49 = vperm.slane %v8363_v61, 1  ;;  %v6472_v53 = vld [vmem:[#allocation7 + $0xaa4] sm:$0xf]  ;;  %v6079_v61 = vld [vmem:[#allocation7 + $0xba8] sm:$0xf0] }
 0x1c9   : > { %3395 = vmatpush.bf16.msrb.mxu0 %v8355_v20  ;;  %9771 = vst [vmem:[#allocation357_spill] sm:$0xff] %v8381_v60  ;;  %v6490_v20 = vld [vmem:[#allocation7 + $0xb34] sm:$0xf] }
 0x1ca   : > { %3408 = vmatpush.bf16.msrb.mxu1 %v8359_v31  ;;  %v3143_v32 = vadd.f32 %v3142_v11, %v9770_v49  ;;  %v6023_v31 = vld [vmem:[#allocation7 + $0xb38] sm:$0xf0]  ;;  %9772 = vst [vmem:[#allocation358_spill] sm:$0xff] %v8384_v18  ;;  %v8388_v49 = vor.u32 %v6474_v22, %v5959_v9  ;;  %v3168_v11 = vpop.f32.mrf.mxu2  ;;  %v8396_v22 = vor.u32 %v6456_v0, %v5887_v41  ;;  %v6454_v9 = vld [vmem:[#allocation7 + $0xa14] sm:$0xf] }
 0x1cb   : > { %3421 = vmatpush.bf16.msrb.mxu2 %v8361_v39  ;;  %v6087_v39 = vld [vmem:[#allocation7 + $0xbb8] sm:$0xf0]  ;;  %v8390_v48 = vor.u32 %v6490_v20, %v6023_v31  ;;  %v3144_v31 = vpop.f32.mrf.mxu0 }
 0x1cc   : > { %3434 = vmatpush.bf16.msrb.mxu3 %v8367_v27  ;;  %v3156_v57 = vadd.f32 %v3155_v51, %v3143_v32  ;;  %9773 = vst [vmem:[#allocation359_spill] sm:$0xff] %v8388_v49  ;;  %v8393_v27 = vor.u32 %v6506_v52, %v6087_v39  ;;  %v5951_v51 = vld [vmem:[#allocation7 + $0xaa8] sm:$0xf0]  ;;  %v6488_v32 = vld [vmem:[#allocation7 + $0xb24] sm:$0xf] }
 0x1cd   : > { %3396 = vmatpush.bf16.msrb.mxu0 %v8370_v30  ;;  %9774 = vst [vmem:[#allocation360_spill] sm:$0xff] %v8390_v48  ;;  %v3181_v30 = vpop.f32.mrf.mxu3  ;;  %v8402_v52 = vor.u32 %v6472_v53, %v5951_v51  ;;  %v8404_v39 = vor.u32 %v6488_v32, %v6015_v55  ;;  %v5943_v0 = vld [vmem:[#allocation7 + $0xa98] sm:$0xf0]  ;;  %v6452_v51 = vld [vmem:[#allocation7 + $0xa04] sm:$0xf] }
 0x1ce   : > { %3409 = vmatpush.bf16.msrb.mxu1 %v8374_v28  ;;  %9775 = vst [vmem:[#allocation361_spill] sm:$0xff] %v8393_v27  ;;  %v3169_v59 = vadd.f32 %v3168_v11, %v3156_v57  ;;  %v6504_v28 = vld [vmem:[#allocation7 + $0xba4] sm:$0xf]  ;;  %v5879_v57 = vld [vmem:[#allocation7 + $0xa18] sm:$0xf0] }
 0x1cf   : > { %3422 = vmatpush.bf16.msrb.mxu2 %v8376_v13  ;;  %9776 = vst [vmem:[#allocation362_spill] sm:$0xff] %v8396_v22  ;;  %v6470_v11 = vld [vmem:[#allocation7 + $0xa94] sm:$0xf]  ;;  %v6007_v41 = vld [vmem:[#allocation7 + $0xb18] sm:$0xf0] }
 0x1d0   : > { %3435 = vmatpush.bf16.msrb.mxu3 %v8381_v60  ;;  %v8398_v20 = vadd.f32 %v3181_v30, %v3169_v59  ;;  %9777 = vst [vmem:[#allocation363_spill] sm:$0xff] %v8402_v52  ;;  %v3157_v60 = vpop.f32.mrf.mxu1  ;;  %v6486_v30 = vld [vmem:[#allocation7 + $0xb14] sm:$0xf]  ;;  %v6071_v31 = vld [vmem:[#allocation7 + $0xb98] sm:$0xf0]  ;;  %v8414_v53 = vor.u32 %v6470_v11, %v5943_v0 }
 0x1d1   : > { %3397 = vmatpush.bf16.msrb.mxu0 %v8384_v18  ;;  %9778 = vst [vmem:[#allocation364_spill] sm:$0xff] %v8404_v39  ;;  %v8407_v18 = vor.u32 %v6504_v28, %v6079_v61  ;;  %v6502_v59 = vld [vmem:[#allocation7 + $0xb94] sm:$0xf]  ;;  %v8416_v60 = vor.u32 %v6486_v30, %v6007_v41  ;;  %v5871_v61 = vld [vmem:[#allocation7 + $0xa08] sm:$0xf0] }
 0x1d2   : > { %3410 = vmatpush.bf16.msrb.mxu1 %v8388_v49  ;;  %9781 = vst [vmem:[#allocation367_spill] sm:$0xff] %v8414_v53  ;;  %v6468_v28 = vld [vmem:[#allocation7 + $0xa84] sm:$0xf]  ;;  %v3170_v32 = vpop.f32.mrf.mxu2  ;;  %v8419_v55 = vor.u32 %v6502_v59, %v6071_v31  ;;  %v8422_v11 = vor.u32 %v6452_v51, %v5871_v61  ;;  %v9799_v61 = vld [vmem:[#allocation34_spill] sm:$0xff]  ;;  %v9966_v13 = vld [vmem:[#allocation199_spill] sm:$0xff] }
 0x1d3   : > { %3423 = vmatpush.bf16.msrb.mxu2 %v8390_v48  ;;  %9779 = vst [vmem:[#allocation365_spill] sm:$0xff] %v8407_v18  ;;  %v8410_v48 = vor.u32 %v6454_v9, %v5879_v57  ;;  %v5999_v9 = vld [vmem:[#allocation7 + $0xb08] sm:$0xf0]  ;;  %v6500_v49 = vld [vmem:[#allocation7 + $0xb84] sm:$0xf]  ;;  %v9800_v32 = vld [vmem:[#allocation35_spill] sm:$0xff] }
 0x1d4   : > { %3436 = vmatpush.bf16.msrb.mxu3 %v8393_v27  ;;  %9782 = vst [vmem:[#allocation368_spill] sm:$0xff] %v8416_v60  ;;  %v5935_v27 = vld [vmem:[#allocation7 + $0xa88] sm:$0xf0]  ;;  %v9798_v59 = vld [vmem:[#allocation33_spill] sm:$0xff] }
 0x1d5   : > { %3398 = vmatpush.bf16.msrb.mxu0 %v8396_v22  ;;  %9780 = vst [vmem:[#allocation366_spill] sm:$0xff] %v8410_v48  ;;  %v6484_v22 = vld [vmem:[#allocation7 + $0xb04] sm:$0xf]  ;;  %v3183_v57 = vpop.f32.mrf.mxu3  ;;  %v8426_v0 = vor.u32 %v6468_v28, %v5935_v27  ;;  %v9795_v27 = vld [vmem:[#allocation30_spill] sm:$0xff] }
 0x1d6   : > { %3411 = vmatpush.bf16.msrb.mxu1 %v8402_v52  ;;  %9783 = vst [vmem:[#allocation369_spill] sm:$0xff] %v8419_v55  ;;  %v6063_v52 = vld [vmem:[#allocation7 + $0xb88] sm:$0xf0]  ;;  %v8428_v30 = vor.u32 %v6484_v22, %v5999_v9  ;;  %v9797_v22 = vld [vmem:[#allocation32_spill] sm:$0xff] }
 0x1d7   : > { %3424 = vmatpush.bf16.msrb.mxu2 %v8404_v39  ;;  %9784 = vst [vmem:[#allocation370_spill] sm:$0xff] %v8422_v11  ;;  %v8431_v41 = vor.u32 %v6500_v49, %v6063_v52  ;;  %v9796_v49 = vld [vmem:[#allocation31_spill] sm:$0xff]  ;;  %v3446_v52 = vld [vmem:[%s7134_s30 + $0x8] sm:$0xff]  ;;  %v3445_v51 = vld [vmem:[%s7134_s30] sm:$0xff] }
 0x1d8   : > { %3437 = vmatpush.bf16.msrb.mxu3 %v8407_v18  ;;  %9785 = vst [vmem:[#allocation371_spill] sm:$0xff] %v8426_v0  ;;  %v3471_v28 = vunpack.c.l.b16 %v3446_v52  ;;  %v9801_v9 = vld [vmem:[#allocation36_spill] sm:$0xff]  ;;  %v3469_v57 = vunpack.c.l.b16 %v3445_v51  ;;  %v9962_v39 = vld [vmem:[#allocation195_spill] sm:$0xff] }
 0x1d9   : > { %3399 = vmatpush.bf16.msrb.mxu0 %v8410_v48  ;;  %9786 = vst [vmem:[#allocation372_spill] sm:$0xff] %v8428_v30  ;;  %v3456_v48 = vld [vmem:[%s7134_s30 + $0x58] sm:$0xff] }
 0x1da   : > { %3412 = vmatpush.bf16.msrb.mxu1 %v8414_v53  ;;  %9787 = vst [vmem:[#allocation373_spill] sm:$0xff] %v8431_v41 }
 0x1db   : > { %3425 = vmatpush.bf16.msrb.mxu2 %v8416_v60  ;;  %v3455_v60 = vld [vmem:[%s7134_s30 + $0x50] sm:$0xff] }
 0x1dc   : > { %3438 = vmatpush.bf16.msrb.mxu3 %v8419_v55  ;;  %v9955_v55 = vld [vmem:[#allocation190_spill] sm:$0xff] }
 0x1dd   : > { %3400 = vmatpush.bf16.msrb.mxu0 %v8422_v11  ;;  %v9953_v11 = vld [vmem:[#allocation188_spill] sm:$0xff] }
 0x1de   : > { %3413 = vmatpush.bf16.msrb.mxu1 %v8426_v0  ;;  %v9952_v0 = vld [vmem:[#allocation187_spill] sm:$0xff] }
 0x1df   : > { %3426 = vmatpush.bf16.msrb.mxu2 %v8428_v30  ;;  %v9932_v30 = vld [vmem:[#allocation166_spill] sm:$0xff] }
 0x1e0   : > { %3439 = vmatpush.bf16.msrb.mxu3 %v8431_v41  ;;  %3401 = vmatmul.bf16.vlgmr.msrb.gmra.mxu0 %v7812_v19  ;;  %v9920_v41 = vld [vmem:[#allocation155_spill] sm:$0xff] }
 0x1e1   : > { %3541 = vmatpush.bf16.msra.mxu0 %v7152_v3  ;;  %3414 = vmatmul.bf16.vlgmr.msrb.gmra.mxu1 %v7818_v2  ;;  %v3194_v3 = vpop.f32.mrf.mxu0  ;;  %v9792_v2 = vld [vmem:[#allocation27_spill] sm:$0xff] }
 0x1e2   : > { %3554 = vmatpush.bf16.msra.mxu1 %v7154_v7  ;;  %3427 = vmatmul.bf16.vlgmr.msrb.gmra.mxu2 %v7816_v56  ;;  %v3195_v7 = vadd.f32 %v3194_v3, %v8398_v20  ;;  %v3472_v3 = vunpack.c.h.b16 %v3446_v52  ;;  %v9815_v52 = vld [vmem:[#allocation50_spill] sm:$0xff] }
 0x1e3   : > { %3567 = vmatpush.bf16.msra.mxu2 %v7156_v8  ;;  %3440 = vmatmul.bf16.vlgmr.msrb.gmra.mxu3 %v7822_v50  ;;  %v3207_v8 = vpop.f32.mrf.mxu1  ;;  %v9794_v50 = vld [vmem:[#allocation29_spill] sm:$0xff] }
 0x1e4   : > { %3580 = vmatpush.bf16.msra.mxu3 %v7159_v12  ;;  %v3208_v12 = vadd.f32 %v3207_v8, %v3195_v7  ;;  %v9802_v7 = vld [vmem:[#allocation37_spill] sm:$0xff]  ;;  %v3470_v8 = vunpack.c.h.b16 %v3445_v51  ;;  %v9816_v51 = vld [vmem:[#allocation51_spill] sm:$0xff] }
 0x1e5   : > { %3542 = vmatpush.bf16.msra.mxu0 %v7163_v16  ;;  %v9788_v16 = vld [vmem:[#allocation23_spill] sm:$0xff] }
 0x1e6   : > { %3555 = vmatpush.bf16.msra.mxu1 %v7165_v17  ;;  %v9789_v17 = vld [vmem:[#allocation24_spill] sm:$0xff] }
 0x1e7   : > { %3568 = vmatpush.bf16.msra.mxu2 %v7168_v21  ;;  %v3220_v21 = vpop.f32.mrf.mxu2 }
 0x1e8   : > { %3581 = vmatpush.bf16.msra.mxu3 %v7170_v25  ;;  %v9790_v25 = vld [vmem:[#allocation25_spill] sm:$0xff] }
 0x1e9   : > { %3543 = vmatpush.bf16.msra.mxu0 %v7173_v29  ;;  %v3221_v29 = vadd.f32 %v3220_v21, %v3208_v12  ;;  %v3196_v56 = vpop.f32.mrf.mxu0  ;;  %v9803_v12 = vld [vmem:[#allocation38_spill] sm:$0xff]  ;;  %v9805_v21 = vld [vmem:[#allocation40_spill] sm:$0xff] }
 0x1ea   : > { %3556 = vmatpush.bf16.msra.mxu1 %v7177_v33  ;;  %v3233_v33 = vpop.f32.mrf.mxu3  ;;  %v8483_v56 = vpack.c.b16 %v3470_v8, %v3470_v8 }
 0x1eb   : > { %3569 = vmatpush.bf16.msra.mxu2 %v7179_v34  ;;  %v9791_v34 = vld [vmem:[#allocation26_spill] sm:$0xff]  ;;  %v3234_v19 = vadd.f32 %v3233_v33, %v3221_v29  ;;  %v8479_v29 = vpack.c.b16 %v3472_v3, %v3472_v3  ;;  %v9806_v33 = vld [vmem:[#allocation41_spill] sm:$0xff]  ;;  %v9821_v3 = vld [vmem:[#allocation56_spill] sm:$0xff] }
 0x1ec   : > { %3582 = vmatpush.bf16.msra.mxu3 %v7182_v38  ;;  %v9793_v38 = vld [vmem:[#allocation28_spill] sm:$0xff] }
 0x1ed   : > { %3544 = vmatpush.bf16.msra.mxu0 %v7185_v44  ;;  %v3209_v44 = vpop.f32.mrf.mxu1 }
 0x1ee   : > { %3557 = vmatpush.bf16.msra.mxu1 %v9788_v16  ;;  %v8473_v16 = vpack.c.b16 %v3471_v28, %v3471_v28  ;;  %v9810_v44 = vld [vmem:[#allocation45_spill] sm:$0xff] }
 0x1ef   : > { %3570 = vmatpush.bf16.msra.mxu2 %v9789_v17  ;;  %v3222_v20 = vpop.f32.mrf.mxu2  ;;  %v9804_v17 = vld [vmem:[#allocation39_spill] sm:$0xff]  ;;  %v9818_v28 = vld [vmem:[#allocation53_spill] sm:$0xff] }
 0x1f0   : > { %3583 = vmatpush.bf16.msra.mxu3 %v9790_v25  ;;  %v8477_v25 = vpack.c.b16 %v3469_v57, %v3469_v57  ;;  %v9820_v57 = vld [vmem:[#allocation55_spill] sm:$0xff] }
 0x1f1   : > { %3545 = vmatpush.bf16.msra.mxu0 %v9791_v34  ;;  %v9807_v34 = vld [vmem:[#allocation42_spill] sm:$0xff] }
 0x1f2   : > { %3558 = vmatpush.bf16.msra.mxu1 %v9792_v2  ;;  %v3235_v31 = vpop.f32.mrf.mxu3  ;;  %v9808_v2 = vld [vmem:[#allocation43_spill] sm:$0xff] }
 0x1f3   : > { %3571 = vmatpush.bf16.msra.mxu2 %v9793_v38  ;;  %v9809_v38 = vld [vmem:[#allocation44_spill] sm:$0xff] }
 0x1f4   : > { %3584 = vmatpush.bf16.msra.mxu3 %v9794_v50  ;;  %v9811_v50 = vld [vmem:[#allocation46_spill] sm:$0xff] }
 0x1f5   : > { %3546 = vmatpush.bf16.msra.mxu0 %v9795_v27  ;;  %v9812_v27 = vld [vmem:[#allocation47_spill] sm:$0xff] }
 0x1f6   : > { %3559 = vmatpush.bf16.msra.mxu1 %v9796_v49  ;;  %v9813_v49 = vld [vmem:[#allocation48_spill] sm:$0xff] }
 0x1f7   : > { %3572 = vmatpush.bf16.msra.mxu2 %v9797_v22  ;;  %v9814_v22 = vld [vmem:[#allocation49_spill] sm:$0xff] }
 0x1f8   : > { %3585 = vmatpush.bf16.msra.mxu3 %v9798_v59 }
 0x1f9   : > { %3547 = vmatpush.bf16.msra.mxu0 %v9799_v61  ;;  %v9817_v61 = vld [vmem:[#allocation52_spill] sm:$0xff] }
 0x1fa   : > { %3560 = vmatpush.bf16.msra.mxu1 %v9800_v32 }
 0x1fb   : > { %3573 = vmatpush.bf16.msra.mxu2 %v9801_v9  ;;  %v9819_v9 = vld [vmem:[#allocation54_spill] sm:$0xff] }
 0x1fc   : > { %3586 = vmatpush.bf16.msra.mxu3 %v9802_v7  ;;  %v9822_v7 = vld [vmem:[#allocation57_spill] sm:$0xff] }
 0x1fd   : > { %3548 = vmatpush.bf16.msra.mxu0 %v9803_v12  ;;  %v3246_v20 = vpop.f32.mrf.mxu0 }
 0x1fe   : > { %3561 = vmatpush.bf16.msra.mxu1 %v9804_v17  ;;  %v3247_v59 = vadd.f32 %v3246_v20, %v3234_v19  ;;  %v3259_v31 = vpop.f32.mrf.mxu1  ;;  %v9830_v20 = vld [vmem:[#allocation65_spill] sm:$0xff] }
 0x1ff   : > { %3574 = vmatpush.bf16.msra.mxu2 %v9805_v21  ;;  %v9823_v21 = vld [vmem:[#allocation58_spill] sm:$0xff] }
 0x200   : > { %3587 = vmatpush.bf16.msra.mxu3 %v9806_v33  ;;  %3549 = vmatmul.bf16.vlgmr.msra.gmra.mxu0 %v8477_v25  ;;  %v3260_v32 = vadd.f32 %v3259_v31, %v3247_v59  ;;  %v3447_v59 = vld [vmem:[%s7134_s30 + $0x10] sm:$0xff] }
 0x201   : > { %3593 = vmatpush.bf16.msrb.mxu0 %v9807_v34  ;;  %3562 = vmatmul.bf16.vlgmr.msra.gmra.mxu1 %v8483_v56  ;;  %v9824_v34 = vld [vmem:[#allocation59_spill] sm:$0xff] }
 0x202   : > { %3606 = vmatpush.bf16.msrb.mxu1 %v9808_v2  ;;  %3575 = vmatmul.bf16.vlgmr.msra.gmra.mxu2 %v8473_v16  ;;  %v9825_v2 = vld [vmem:[#allocation60_spill] sm:$0xff] }
 0x203   : > { %3619 = vmatpush.bf16.msrb.mxu2 %v9809_v38  ;;  %3588 = vmatmul.bf16.vlgmr.msra.gmra.mxu3 %v8479_v29 }
 0x204   : > { %3632 = vmatpush.bf16.msrb.mxu3 %v9810_v44  ;;  %v9826_v44 = vld [vmem:[#allocation61_spill] sm:$0xff] }
 0x205   : > { %3594 = vmatpush.bf16.msrb.mxu0 %v9811_v50  ;;  %v3272_v8 = vpop.f32.mrf.mxu2  ;;  %v3248_v17 = vpop.f32.mrf.mxu0  ;;  %v9827_v50 = vld [vmem:[#allocation62_spill] sm:$0xff] }
 0x206   : > { %3607 = vmatpush.bf16.msrb.mxu1 %v9812_v27  ;;  %v3273_v19 = vadd.f32 %v3272_v8, %v3260_v32  ;;  %v3285_v12 = vpop.f32.mrf.mxu3  ;;  %v3261_v33 = vpop.f32.mrf.mxu1  ;;  %v9828_v27 = vld [vmem:[#allocation63_spill] sm:$0xff]  ;;  %v9833_v32 = vld [vmem:[#allocation68_spill] sm:$0xff]  ;;  %v9835_v8 = vld [vmem:[#allocation70_spill] sm:$0xff] }
 0x207   : > { %3620 = vmatpush.bf16.msrb.mxu2 %v9813_v49  ;;  %v9829_v49 = vld [vmem:[#allocation64_spill] sm:$0xff] }
 0x208   : > { %3633 = vmatpush.bf16.msrb.mxu3 %v9814_v22  ;;  %v3286_v38 = vadd.f32 %v3285_v12, %v3273_v19  ;;  %v3448_v22 = vld [vmem:[%s7134_s30 + $0x18] sm:$0xff] }
 0x209   : > { %3595 = vmatpush.bf16.msrb.mxu0 %v9815_v52  ;;  %v9836_v12 = vld [vmem:[#allocation71_spill] sm:$0xff]  ;;  %v9837_v17 = vld [vmem:[#allocation72_spill] sm:$0xff] }
 0x20a   : > { %3608 = vmatpush.bf16.msrb.mxu1 %v9816_v51  ;;  %v9831_v51 = vld [vmem:[#allocation66_spill] sm:$0xff] }
 0x20b   : > { %3621 = vmatpush.bf16.msrb.mxu2 %v9817_v61  ;;  %v3475_v61 = vunpack.c.l.b16 %v3448_v22 }
 0x20c   : > { %3634 = vmatpush.bf16.msrb.mxu3 %v9818_v28  ;;  %v9832_v28 = vld [vmem:[#allocation67_spill] sm:$0xff] }
 0x20d   : > { %3596 = vmatpush.bf16.msrb.mxu0 %v9819_v9  ;;  %v3274_v52 = vpop.f32.mrf.mxu2  ;;  %v3473_v9 = vunpack.c.l.b16 %v3447_v59  ;;  %v8519_v19 = vpack.c.b16 %v3475_v61, %v3475_v61 }
 0x20e   : > { %3609 = vmatpush.bf16.msrb.mxu1 %v9820_v57  ;;  %v3287_v31 = vpop.f32.mrf.mxu3  ;;  %v3476_v57 = vunpack.c.h.b16 %v3448_v22  ;;  %v9843_v22 = vld [vmem:[#allocation78_spill] sm:$0xff]  ;;  %v9845_v52 = vld [vmem:[#allocation80_spill] sm:$0xff] }
 0x20f   : > { %3622 = vmatpush.bf16.msrb.mxu2 %v9821_v3  ;;  %v9834_v3 = vld [vmem:[#allocation69_spill] sm:$0xff] }
 0x210   : > { %3635 = vmatpush.bf16.msrb.mxu3 %v9822_v7  ;;  %v3474_v7 = vunpack.c.h.b16 %v3447_v59  ;;  %v8525_v33 = vpack.c.b16 %v3476_v57, %v3476_v57  ;;  %v9846_v59 = vld [vmem:[#allocation81_spill] sm:$0xff] }
 0x211   : > { %3597 = vmatpush.bf16.msrb.mxu0 %v9823_v21  ;;  %v8523_v21 = vpack.c.b16 %v3473_v9, %v3473_v9  ;;  %v9849_v9 = vld [vmem:[#allocation84_spill] sm:$0xff]  ;;  %v9850_v57 = vld [vmem:[#allocation85_spill] sm:$0xff] }
 0x212   : > { %3610 = vmatpush.bf16.msrb.mxu1 %v9824_v34  ;;  %v9838_v34 = vld [vmem:[#allocation73_spill] sm:$0xff] }
 0x213   : > { %3623 = vmatpush.bf16.msrb.mxu2 %v9825_v2  ;;  %v9839_v2 = vld [vmem:[#allocation74_spill] sm:$0xff] }
 0x214   : > { %3636 = vmatpush.bf16.msrb.mxu3 %v9826_v44  ;;  %v8529_v44 = vpack.c.b16 %v3474_v7, %v3474_v7  ;;  %v9851_v7 = vld [vmem:[#allocation86_spill] sm:$0xff] }
 0x215   : > { %3598 = vmatpush.bf16.msrb.mxu0 %v9827_v50  ;;  %v9840_v50 = vld [vmem:[#allocation75_spill] sm:$0xff] }
 0x216   : > { %3611 = vmatpush.bf16.msrb.mxu1 %v9828_v27  ;;  %v9841_v27 = vld [vmem:[#allocation76_spill] sm:$0xff] }
 0x217   : > { %3624 = vmatpush.bf16.msrb.mxu2 %v9829_v49  ;;  %v9842_v49 = vld [vmem:[#allocation77_spill] sm:$0xff] }
 0x218   : > { %3637 = vmatpush.bf16.msrb.mxu3 %v9830_v20  ;;  %v9844_v20 = vld [vmem:[#allocation79_spill] sm:$0xff] }
 0x219   : > { %3599 = vmatpush.bf16.msrb.mxu0 %v9831_v51  ;;  %v9847_v51 = vld [vmem:[#allocation82_spill] sm:$0xff] }
 0x21a   : > { %3612 = vmatpush.bf16.msrb.mxu1 %v9832_v28 }
 0x21b   : > { %3625 = vmatpush.bf16.msrb.mxu2 %v9833_v32  ;;  %v9848_v32 = vld [vmem:[#allocation83_spill] sm:$0xff] }
 0x21c   : > { %3638 = vmatpush.bf16.msrb.mxu3 %v9834_v3 }
 0x21d   : > { %3600 = vmatpush.bf16.msrb.mxu0 %v9835_v8  ;;  %v3298_v31 = vpop.f32.mrf.mxu0  ;;  %v9852_v8 = vld [vmem:[#allocation87_spill] sm:$0xff] }
 0x21e   : > { %3613 = vmatpush.bf16.msrb.mxu1 %v9836_v12  ;;  %v3299_v61 = vadd.f32 %v3298_v31, %v3286_v38  ;;  %v3311_v28 = vpop.f32.mrf.mxu1  ;;  %v9853_v12 = vld [vmem:[#allocation88_spill] sm:$0xff]  ;;  %v9859_v31 = vld [vmem:[#allocation94_spill] sm:$0xff] }
 0x21f   : > { %3626 = vmatpush.bf16.msrb.mxu2 %v9837_v17  ;;  %v9854_v17 = vld [vmem:[#allocation89_spill] sm:$0xff] }
 0x220   : > { %3639 = vmatpush.bf16.msrb.mxu3 %v9838_v34  ;;  %3601 = vmatmul.bf16.vlgmr.msrb.gmra.mxu0 %v8523_v21  ;;  %v3312_v3 = vadd.f32 %v3311_v28, %v3299_v61  ;;  %v9861_v61 = vld [vmem:[#allocation96_spill] sm:$0xff] }
 0x221   : > { %3645 = vmatpush.bf16.msra.mxu0 %v9839_v2  ;;  %3614 = vmatmul.bf16.vlgmr.msrb.gmra.mxu1 %v8529_v44  ;;  %v3449_v28 = vld [vmem:[%s7134_s30 + $0x20] sm:$0xff] }
 0x222   : > { %3658 = vmatpush.bf16.msra.mxu1 %v9840_v50  ;;  %3627 = vmatmul.bf16.vlgmr.msrb.gmra.mxu2 %v8519_v19 }
 0x223   : > { %3671 = vmatpush.bf16.msra.mxu2 %v9841_v27  ;;  %3640 = vmatmul.bf16.vlgmr.msrb.gmra.mxu3 %v8525_v33  ;;  %v9855_v27 = vld [vmem:[#allocation90_spill] sm:$0xff] }
 0x224   : > { %3684 = vmatpush.bf16.msra.mxu3 %v9842_v49 }
 0x225   : > { %3646 = vmatpush.bf16.msra.mxu0 %v9843_v22  ;;  %v3324_v34 = vpop.f32.mrf.mxu2  ;;  %v3300_v50 = vpop.f32.mrf.mxu0  ;;  %v9856_v22 = vld [vmem:[#allocation91_spill] sm:$0xff] }
 0x226   : > { %3659 = vmatpush.bf16.msra.mxu1 %v9844_v20  ;;  %v3325_v38 = vadd.f32 %v3324_v34, %v3312_v3  ;;  %v3337_v2 = vpop.f32.mrf.mxu3  ;;  %v3313_v49 = vpop.f32.mrf.mxu1  ;;  %v9857_v20 = vld [vmem:[#allocation92_spill] sm:$0xff] }
 0x227   : > { %3672 = vmatpush.bf16.msra.mxu2 %v9845_v52 }
 0x228   : > { %3685 = vmatpush.bf16.msra.mxu3 %v9846_v59  ;;  %v3338_v52 = vadd.f32 %v3337_v2, %v3325_v38  ;;  %v9858_v59 = vld [vmem:[#allocation93_spill] sm:$0xff]  ;;  %v3478_v38 = vunpack.c.h.b16 %v3449_v28 }
 0x229   : > { %3647 = vmatpush.bf16.msra.mxu0 %v9847_v51  ;;  %v9860_v51 = vld [vmem:[#allocation95_spill] sm:$0xff]  ;;  %v9866_v2 = vld [vmem:[#allocation101_spill] sm:$0xff] }
 0x22a   : > { %3660 = vmatpush.bf16.msra.mxu1 %v9848_v32  ;;  %v9862_v32 = vld [vmem:[#allocation97_spill] sm:$0xff] }
 0x22b   : > { %3673 = vmatpush.bf16.msra.mxu2 %v9849_v9  ;;  %v3450_v9 = vld [vmem:[%s7134_s30 + $0x28] sm:$0xff] }
 0x22c   : > { %3686 = vmatpush.bf16.msra.mxu3 %v9850_v57  ;;  %v3479_v34 = vunpack.c.l.b16 %v3450_v9  ;;  %v3480_v50 = vunpack.c.h.b16 %v3450_v9  ;;  %v9873_v9 = vld [vmem:[#allocation108_spill] sm:$0xff] }
 0x22d   : > { %3648 = vmatpush.bf16.msra.mxu0 %v9851_v7  ;;  %v3326_v57 = vpop.f32.mrf.mxu2  ;;  %v9863_v7 = vld [vmem:[#allocation98_spill] sm:$0xff] }
 0x22e   : > { %3661 = vmatpush.bf16.msra.mxu1 %v9852_v8  ;;  %v3339_v3 = vpop.f32.mrf.mxu3  ;;  %v3477_v8 = vunpack.c.l.b16 %v3449_v28  ;;  %v8575_v28 = vpack.c.b16 %v3480_v50, %v3480_v50  ;;  %v9874_v57 = vld [vmem:[#allocation109_spill] sm:$0xff]  ;;  %v9880_v50 = vld [vmem:[#allocation115_spill] sm:$0xff] }
 0x22f   : > { %3674 = vmatpush.bf16.msra.mxu2 %v9853_v12  ;;  %v9864_v12 = vld [vmem:[#allocation99_spill] sm:$0xff]  ;;  %v9875_v3 = vld [vmem:[#allocation110_spill] sm:$0xff] }
 0x230   : > { %3687 = vmatpush.bf16.msra.mxu3 %v9854_v17  ;;  %v9865_v17 = vld [vmem:[#allocation100_spill] sm:$0xff]  ;;  %v8565_v49 = vpack.c.b16 %v3477_v8, %v3477_v8 }
 0x231   : > { %3649 = vmatpush.bf16.msra.mxu0 %v9855_v27  ;;  %v9867_v27 = vld [vmem:[#allocation102_spill] sm:$0xff]  ;;  %v9877_v8 = vld [vmem:[#allocation112_spill] sm:$0xff] }
 0x232   : > { %3662 = vmatpush.bf16.msra.mxu1 %v9856_v22  ;;  %v9868_v22 = vld [vmem:[#allocation103_spill] sm:$0xff] }
 0x233   : > { %3675 = vmatpush.bf16.msra.mxu2 %v9857_v20  ;;  %v9869_v20 = vld [vmem:[#allocation104_spill] sm:$0xff] }
 0x234   : > { %3688 = vmatpush.bf16.msra.mxu3 %v9858_v59  ;;  %v8569_v59 = vpack.c.b16 %v3479_v34, %v3479_v34  ;;  %v9879_v34 = vld [vmem:[#allocation114_spill] sm:$0xff] }
 0x235   : > { %3650 = vmatpush.bf16.msra.mxu0 %v9859_v31  ;;  %v8571_v31 = vpack.c.b16 %v3478_v38, %v3478_v38 }
 0x236   : > { %3663 = vmatpush.bf16.msra.mxu1 %v9860_v51  ;;  %v9870_v51 = vld [vmem:[#allocation105_spill] sm:$0xff] }
 0x237   : > { %3676 = vmatpush.bf16.msra.mxu2 %v9861_v61  ;;  %v9871_v61 = vld [vmem:[#allocation106_spill] sm:$0xff] }
 0x238   : > { %3689 = vmatpush.bf16.msra.mxu3 %v9862_v32  ;;  %v9872_v32 = vld [vmem:[#allocation107_spill] sm:$0xff] }
 0x239   : > { %3651 = vmatpush.bf16.msra.mxu0 %v9863_v7  ;;  %v9876_v7 = vld [vmem:[#allocation111_spill] sm:$0xff] }
 0x23a   : > { %3664 = vmatpush.bf16.msra.mxu1 %v9864_v12  ;;  %v9878_v12 = vld [vmem:[#allocation113_spill] sm:$0xff] }
 0x23b   : > { %3677 = vmatpush.bf16.msra.mxu2 %v9865_v17 }
 0x23c   : > { %3690 = vmatpush.bf16.msra.mxu3 %v9866_v2 }
 0x23d   : > { %3652 = vmatpush.bf16.msra.mxu0 %v9867_v27  ;;  %v3350_v17 = vpop.f32.mrf.mxu0  ;;  %v9881_v27 = vld [vmem:[#allocation116_spill] sm:$0xff] }
 0x23e   : > { %3665 = vmatpush.bf16.msra.mxu1 %v9868_v22  ;;  %v3351_v38 = vadd.f32 %v3350_v17, %v3338_v52  ;;  %v3363_v2 = vpop.f32.mrf.mxu1  ;;  %v9882_v22 = vld [vmem:[#allocation117_spill] sm:$0xff]  ;;  %v9888_v17 = vld [vmem:[#allocation123_spill] sm:$0xff] }
 0x23f   : > { %3678 = vmatpush.bf16.msra.mxu2 %v9869_v20 }
 0x240   : > { %3691 = vmatpush.bf16.msra.mxu3 %v9870_v51  ;;  %3653 = vmatmul.bf16.vlgmr.msra.gmra.mxu0 %v8565_v49  ;;  %v3364_v20 = vadd.f32 %v3363_v2, %v3351_v38  ;;  %v9883_v51 = vld [vmem:[#allocation118_spill] sm:$0xff]  ;;  %v9890_v2 = vld [vmem:[#allocation125_spill] sm:$0xff] }
 0x241   : > { %3697 = vmatpush.bf16.msrb.mxu0 %v9871_v61  ;;  %3666 = vmatmul.bf16.vlgmr.msra.gmra.mxu1 %v8571_v31  ;;  %v9884_v61 = vld [vmem:[#allocation119_spill] sm:$0xff] }
 0x242   : > { %3710 = vmatpush.bf16.msrb.mxu1 %v9872_v32  ;;  %3679 = vmatmul.bf16.vlgmr.msra.gmra.mxu2 %v8569_v59  ;;  %v9885_v32 = vld [vmem:[#allocation120_spill] sm:$0xff] }
 0x243   : > { %3723 = vmatpush.bf16.msrb.mxu2 %v9873_v9  ;;  %3692 = vmatmul.bf16.vlgmr.msra.gmra.mxu3 %v8575_v28  ;;  %v9886_v9 = vld [vmem:[#allocation121_spill] sm:$0xff] }
 0x244   : > { %3736 = vmatpush.bf16.msrb.mxu3 %v9874_v57 }
 0x245   : > { %3698 = vmatpush.bf16.msrb.mxu0 %v9875_v3  ;;  %v3376_v57 = vpop.f32.mrf.mxu2 }
 0x246   : > { %3711 = vmatpush.bf16.msrb.mxu1 %v9876_v7  ;;  %v3377_v52 = vadd.f32 %v3376_v57, %v3364_v20  ;;  %v3389_v3 = vpop.f32.mrf.mxu3  ;;  %v3352_v7 = vpop.f32.mrf.mxu0  ;;  %v9894_v20 = vld [vmem:[#allocation129_spill] sm:$0xff]  ;;  %v9895_v57 = vld [vmem:[#allocation130_spill] sm:$0xff] }
 0x247   : > { %3724 = vmatpush.bf16.msrb.mxu2 %v9877_v8  ;;  %v9887_v8 = vld [vmem:[#allocation122_spill] sm:$0xff] }
 0x248   : > { %3737 = vmatpush.bf16.msrb.mxu3 %v9878_v12  ;;  %v3365_v12 = vpop.f32.mrf.mxu1  ;;  %v3390_v38 = vadd.f32 %v3389_v3, %v3377_v52  ;;  %v9897_v52 = vld [vmem:[#allocation132_spill] sm:$0xff] }
 0x249   : > { %3699 = vmatpush.bf16.msrb.mxu0 %v9879_v34  ;;  %v9889_v34 = vld [vmem:[#allocation124_spill] sm:$0xff] }
 0x24a   : > { %3712 = vmatpush.bf16.msrb.mxu1 %v9880_v50  ;;  %v9891_v50 = vld [vmem:[#allocation126_spill] sm:$0xff] }
 0x24b   : > { %3725 = vmatpush.bf16.msrb.mxu2 %v9881_v27  ;;  %v9892_v27 = vld [vmem:[#allocation127_spill] sm:$0xff] }
 0x24c   : > { %3738 = vmatpush.bf16.msrb.mxu3 %v9882_v22  ;;  %v9893_v22 = vld [vmem:[#allocation128_spill] sm:$0xff] }
 0x24d   : > { %3700 = vmatpush.bf16.msrb.mxu0 %v9883_v51  ;;  %v3451_v51 = vld [vmem:[%s7134_s30 + $0x30] sm:$0xff] }
 0x24e   : > { %3713 = vmatpush.bf16.msrb.mxu1 %v9884_v61  ;;  %v3452_v61 = vld [vmem:[%s7134_s30 + $0x38] sm:$0xff]  ;;  %v3481_v7 = vunpack.c.l.b16 %v3451_v51  ;;  %v3482_v12 = vunpack.c.h.b16 %v3451_v51 }
 0x24f   : > { %3726 = vmatpush.bf16.msrb.mxu2 %v9885_v32  ;;  %v3378_v32 = vpop.f32.mrf.mxu2  ;;  %v3483_v3 = vunpack.c.l.b16 %v3452_v61 }
 0x250   : > { %3739 = vmatpush.bf16.msrb.mxu3 %v9886_v9  ;;  %v3391_v9 = vpop.f32.mrf.mxu3  ;;  %v8617_v32 = vpack.c.b16 %v3482_v12, %v3482_v12  ;;  %v9909_v12 = vld [vmem:[#allocation144_spill] sm:$0xff] }
 0x251   : > { %3701 = vmatpush.bf16.msrb.mxu0 %v9887_v8  ;;  %v9896_v8 = vld [vmem:[#allocation131_spill] sm:$0xff]  ;;  %v9902_v9 = vld [vmem:[#allocation137_spill] sm:$0xff] }
 0x252   : > { %3714 = vmatpush.bf16.msrb.mxu1 %v9888_v17  ;;  %v9898_v17 = vld [vmem:[#allocation133_spill] sm:$0xff] }
 0x253   : > { %3727 = vmatpush.bf16.msrb.mxu2 %v9889_v34  ;;  %v3484_v34 = vunpack.c.h.b16 %v3452_v61  ;;  %v9905_v61 = vld [vmem:[#allocation140_spill] sm:$0xff] }
 0x254   : > { %3740 = vmatpush.bf16.msrb.mxu3 %v9890_v2  ;;  %v9899_v2 = vld [vmem:[#allocation134_spill] sm:$0xff] }
 0x255   : > { %3702 = vmatpush.bf16.msrb.mxu0 %v9891_v50  ;;  %v8611_v50 = vpack.c.b16 %v3481_v7, %v3481_v7  ;;  %v8621_v51 = vpack.c.b16 %v3484_v34, %v3484_v34  ;;  %v9906_v7 = vld [vmem:[#allocation141_spill] sm:$0xff] }
 0x256   : > { %3715 = vmatpush.bf16.msrb.mxu1 %v9892_v27  ;;  %v9900_v27 = vld [vmem:[#allocation135_spill] sm:$0xff] }
 0x257   : > { %3728 = vmatpush.bf16.msrb.mxu2 %v9893_v22  ;;  %v9901_v22 = vld [vmem:[#allocation136_spill] sm:$0xff] }
 0x258   : > { %3741 = vmatpush.bf16.msrb.mxu3 %v9894_v20  ;;  %v8615_v20 = vpack.c.b16 %v3483_v3, %v3483_v3  ;;  %v9908_v3 = vld [vmem:[#allocation143_spill] sm:$0xff] }
 0x259   : > { %3703 = vmatpush.bf16.msrb.mxu0 %v9895_v57  ;;  %v9903_v57 = vld [vmem:[#allocation138_spill] sm:$0xff] }
 0x25a   : > { %3716 = vmatpush.bf16.msrb.mxu1 %v9896_v8  ;;  %v9904_v8 = vld [vmem:[#allocation139_spill] sm:$0xff] }
 0x25b   : > { %3729 = vmatpush.bf16.msrb.mxu2 %v9897_v52  ;;  %v9907_v52 = vld [vmem:[#allocation142_spill] sm:$0xff] }
 0x25c   : > { %3742 = vmatpush.bf16.msrb.mxu3 %v9898_v17  ;;  %v9910_v17 = vld [vmem:[#allocation145_spill] sm:$0xff] }
 0x25d   : > { %3704 = vmatpush.bf16.msrb.mxu0 %v9899_v2  ;;  %v3402_v34 = vpop.f32.mrf.mxu0  ;;  %v9911_v2 = vld [vmem:[#allocation146_spill] sm:$0xff] }
 0x25e   : > { %3717 = vmatpush.bf16.msrb.mxu1 %v9900_v27  ;;  %v3403_v27 = vadd.f32 %v3402_v34, %v3390_v38 }
 0x25f   : > { %3730 = vmatpush.bf16.msrb.mxu2 %v9901_v22  ;;  %v3415_v22 = vpop.f32.mrf.mxu1 }
 0x260   : > { %3743 = vmatpush.bf16.msrb.mxu3 %v9902_v9  ;;  %3705 = vmatmul.bf16.vlgmr.msrb.gmra.mxu0 %v8611_v50  ;;  %v9912_v9 = vld [vmem:[#allocation147_spill] sm:$0xff] }
 0x261   : > { %3749 = vmatpush.bf16.msra.mxu0 %v9903_v57  ;;  %3718 = vmatmul.bf16.vlgmr.msrb.gmra.mxu1 %v8617_v32  ;;  %v9913_v57 = vld [vmem:[#allocation148_spill] sm:$0xff] }
 0x262   : > { %3762 = vmatpush.bf16.msra.mxu1 %v9904_v8  ;;  %3731 = vmatmul.bf16.vlgmr.msrb.gmra.mxu2 %v8615_v20  ;;  %v9914_v8 = vld [vmem:[#allocation149_spill] sm:$0xff] }
 0x263   : > { %3775 = vmatpush.bf16.msra.mxu2 %v9905_v61  ;;  %3744 = vmatmul.bf16.vlgmr.msrb.gmra.mxu3 %v8621_v51  ;;  %v3416_v61 = vadd.f32 %v3415_v22, %v3403_v27  ;;  %v9921_v27 = vld [vmem:[#allocation156_spill] sm:$0xff] }
 0x264   : > { %3788 = vmatpush.bf16.msra.mxu3 %v9906_v7  ;;  %v9915_v7 = vld [vmem:[#allocation150_spill] sm:$0xff] }
 0x265   : > { %3750 = vmatpush.bf16.msra.mxu0 %v9907_v52  ;;  %v9916_v52 = vld [vmem:[#allocation151_spill] sm:$0xff] }
 0x266   : > { %3763 = vmatpush.bf16.msra.mxu1 %v9908_v3  ;;  %v9917_v3 = vld [vmem:[#allocation152_spill] sm:$0xff]  ;;  %v3441_v34 = vpop.f32.mrf.mxu3 }
 0x267   : > { %3776 = vmatpush.bf16.msra.mxu2 %v9909_v12  ;;  %v9918_v12 = vld [vmem:[#allocation153_spill] sm:$0xff] }
 0x268   : > { %3789 = vmatpush.bf16.msra.mxu3 %v9910_v17  ;;  %v3428_v17 = vpop.f32.mrf.mxu2 }
 0x269   : > { %3751 = vmatpush.bf16.msra.mxu0 %v9911_v2  ;;  %v3429_v38 = vadd.f32 %v3428_v17, %v3416_v61  ;;  %v3404_v2 = vpop.f32.mrf.mxu0  ;;  %v3453_v61 = vld [vmem:[%s7134_s30 + $0x40] sm:$0xff]  ;;  %v3454_v17 = vld [vmem:[%s7134_s30 + $0x48] sm:$0xff] }
 0x26a   : > { %3764 = vmatpush.bf16.msra.mxu1 %v9912_v9  ;;  %v9919_v9 = vld [vmem:[#allocation154_spill] sm:$0xff] }
 0x26b   : > { %3777 = vmatpush.bf16.msra.mxu2 %v9913_v57  ;;  %v3417_v57 = vpop.f32.mrf.mxu1  ;;  %v8645_v22 = vadd.f32 %v3441_v34, %v3429_v38  ;;  %v9930_v38 = vld [vmem:[#allocation164_spill] sm:$0xff]  ;;  %v3487_v34 = vunpack.c.l.b16 %v3454_v17 }
 0x26c   : > { %3790 = vmatpush.bf16.msra.mxu3 %v9914_v8  ;;  %v9923_v8 = vld [vmem:[#allocation157_spill] sm:$0xff]  ;;  %v9928_v57 = vld [vmem:[#allocation162_spill] sm:$0xff] }
 0x26d   : > { %3752 = vmatpush.bf16.msra.mxu0 %v9915_v7  ;;  %9922 = vst [vmem:[#allocation23_spill] sm:$0xff] %v8645_v22  ;;  %v9924_v7 = vld [vmem:[#allocation158_spill] sm:$0xff] }
 0x26e   : > { %3765 = vmatpush.bf16.msra.mxu1 %v9916_v52  ;;  %v9925_v52 = vld [vmem:[#allocation159_spill] sm:$0xff]  ;;  %v9965_v22 = vld [vmem:[#allocation198_spill] sm:$0xff] }
 0x26f   : > { %3778 = vmatpush.bf16.msra.mxu2 %v9917_v3  ;;  %v9926_v3 = vld [vmem:[#allocation160_spill] sm:$0xff] }
 0x270   : > { %3791 = vmatpush.bf16.msra.mxu3 %v9918_v12  ;;  %v9927_v12 = vld [vmem:[#allocation161_spill] sm:$0xff]  ;;  %v3430_v2 = vpop.f32.mrf.mxu2 }
 0x271   : > { %3753 = vmatpush.bf16.msra.mxu0 %v9919_v9  ;;  %v3443_v9 = vpop.f32.mrf.mxu3  ;;  %v9934_v2 = vld [vmem:[#allocation168_spill] sm:$0xff] }
 0x272   : > { %3766 = vmatpush.bf16.msra.mxu1 %v9920_v41  ;;  %v3485_v41 = vunpack.c.l.b16 %v3453_v61  ;;  %v8663_v9 = vpack.c.b16 %v3487_v34, %v3487_v34  ;;  %v9941_v34 = vld [vmem:[#allocation175_spill] sm:$0xff] }
 0x273   : > { %3779 = vmatpush.bf16.msra.mxu2 %v9921_v27  ;;  %v9929_v27 = vld [vmem:[#allocation163_spill] sm:$0xff] }
 0x274   : > { %3792 = vmatpush.bf16.msra.mxu3 %v9923_v8  ;;  %v3486_v8 = vunpack.c.h.b16 %v3453_v61 }
 0x275   : > { %3754 = vmatpush.bf16.msra.mxu0 %v9924_v7  ;;  %v9931_v7 = vld [vmem:[#allocation165_spill] sm:$0xff] }
 0x276   : > { %3767 = vmatpush.bf16.msra.mxu1 %v9925_v52  ;;  %v3488_v52 = vunpack.c.h.b16 %v3454_v17  ;;  %v9938_v17 = vld [vmem:[#allocation172_spill] sm:$0xff] }
 0x277   : > { %3780 = vmatpush.bf16.msra.mxu2 %v9926_v3  ;;  %v8659_v3 = vpack.c.b16 %v3485_v41, %v3485_v41  ;;  %v9940_v41 = vld [vmem:[#allocation174_spill] sm:$0xff] }
 0x278   : > { %3793 = vmatpush.bf16.msra.mxu3 %v9927_v12  ;;  %v9933_v12 = vld [vmem:[#allocation167_spill] sm:$0xff]  ;;  %v8669_v61 = vpack.c.b16 %v3488_v52, %v3488_v52  ;;  %v9943_v52 = vld [vmem:[#allocation177_spill] sm:$0xff] }
 0x279   : > { %3755 = vmatpush.bf16.msra.mxu0 %v9928_v57  ;;  %v8665_v57 = vpack.c.b16 %v3486_v8, %v3486_v8  ;;  %v9942_v8 = vld [vmem:[#allocation176_spill] sm:$0xff] }
 0x27a   : > { %3768 = vmatpush.bf16.msra.mxu1 %v9929_v27  ;;  %v9935_v27 = vld [vmem:[#allocation169_spill] sm:$0xff] }
 0x27b   : > { %3781 = vmatpush.bf16.msra.mxu2 %v9930_v38  ;;  %v9936_v38 = vld [vmem:[#allocation170_spill] sm:$0xff] }
 0x27c   : > { %3794 = vmatpush.bf16.msra.mxu3 %v9931_v7  ;;  %v9937_v7 = vld [vmem:[#allocation171_spill] sm:$0xff] }
 0x27d   : > { %3756 = vmatpush.bf16.msra.mxu0 %v9932_v30  ;;  %v9939_v30 = vld [vmem:[#allocation173_spill] sm:$0xff] }
 0x27e   : > { %3769 = vmatpush.bf16.msra.mxu1 %v9933_v12  ;;  %v9944_v12 = vld [vmem:[#allocation178_spill] sm:$0xff] }
 0x27f   : > { %3782 = vmatpush.bf16.msra.mxu2 %v9934_v2  ;;  %v3550_v2 = vpop.f32.mrf.mxu0 }
 0x280   : > { %3795 = vmatpush.bf16.msra.mxu3 %v9935_v27  ;;  %3757 = vmatmul.bf16.vlgmr.msra.gmra.mxu0 %v8659_v3  ;;  %v9945_v27 = vld [vmem:[#allocation179_spill] sm:$0xff] }
 0x281   : > { %3801 = vmatpush.bf16.msrb.mxu0 %v9936_v38  ;;  %3770 = vmatmul.bf16.vlgmr.msra.gmra.mxu1 %v8665_v57  ;;  %v9946_v38 = vld [vmem:[#allocation180_spill] sm:$0xff] }
 0x282   : > { %3814 = vmatpush.bf16.msrb.mxu1 %v9937_v7  ;;  %3783 = vmatmul.bf16.vlgmr.msra.gmra.mxu2 %v8663_v9  ;;  %v3563_v7 = vpop.f32.mrf.mxu1 }
 0x283   : > { %3827 = vmatpush.bf16.msrb.mxu2 %v9938_v17  ;;  %3796 = vmatmul.bf16.vlgmr.msra.gmra.mxu3 %v8669_v61  ;;  %v9947_v17 = vld [vmem:[#allocation181_spill] sm:$0xff] }
 0x284   : > { %3840 = vmatpush.bf16.msrb.mxu3 %v9939_v30  ;;  %v9948_v30 = vld [vmem:[#allocation182_spill] sm:$0xff] }
 0x285   : > { %3802 = vmatpush.bf16.msrb.mxu0 %v9940_v41  ;;  %v9949_v41 = vld [vmem:[#allocation183_spill] sm:$0xff] }
 0x286   : > { %3815 = vmatpush.bf16.msrb.mxu1 %v9941_v34  ;;  %v9950_v34 = vld [vmem:[#allocation184_spill] sm:$0xff] }
 0x287   : > { %3828 = vmatpush.bf16.msrb.mxu2 %v9942_v8  ;;  %v3576_v8 = vpop.f32.mrf.mxu2 }
 0x288   : > { %3841 = vmatpush.bf16.msrb.mxu3 %v9943_v52  ;;  %v9951_v52 = vld [vmem:[#allocation185_spill] sm:$0xff] }
 0x289   : > { %3803 = vmatpush.bf16.msrb.mxu0 %v9944_v12  ;;  %v3589_v12 = vpop.f32.mrf.mxu3 }
 0x28a   : > { %3816 = vmatpush.bf16.msrb.mxu1 %v9945_v27  ;;  %v3552_v27 = vpop.f32.mrf.mxu0 }
 0x28b   : > { %3829 = vmatpush.bf16.msrb.mxu2 %v9946_v38  ;;  %v9954_v38 = vld [vmem:[#allocation189_spill] sm:$0xff]  ;;  %v9960_v27 = vld [vmem:[#allocation186_spill] sm:$0xff] }
 0x28c   : > { %3842 = vmatpush.bf16.msrb.mxu3 %v9947_v17  ;;  %v3565_v17 = vpop.f32.mrf.mxu1  ;;  %v9961_v18 = vperm.slane %v9960_v27, 0  ;;  %v9969_v27 = vld [vmem:[#allocation202_spill] sm:$0xff] }
 0x28d   : > { %3804 = vmatpush.bf16.msrb.mxu0 %v9948_v30  ;;  %v9956_v30 = vld [vmem:[#allocation191_spill] sm:$0xff]  ;;  %v9963_v17 = vld [vmem:[#allocation196_spill] sm:$0xff] }
 0x28e   : > { %3817 = vmatpush.bf16.msrb.mxu1 %v9949_v41  ;;  %v9957_v41 = vld [vmem:[#allocation192_spill] sm:$0xff] }
 0x28f   : > { %3830 = vmatpush.bf16.msrb.mxu2 %v9950_v34  ;;  %v9958_v34 = vld [vmem:[#allocation193_spill] sm:$0xff]  ;;  %v3578_v53 = vpop.f32.mrf.mxu2 }
 0x290   : > { %3843 = vmatpush.bf16.msrb.mxu3 %v9951_v52  ;;  %v9959_v52 = vld [vmem:[#allocation194_spill] sm:$0xff] }
 0x291   : > { %3805 = vmatpush.bf16.msrb.mxu0 %v9952_v0  ;;  %v3591_v0 = vpop.f32.mrf.mxu3 }
 0x292   : > { %3818 = vmatpush.bf16.msrb.mxu1 %v9953_v11  ;;  %v3551_v11 = vadd.f32 %v3550_v2, %v9961_v18  ;;  %v9967_v0 = vld [vmem:[#allocation200_spill] sm:$0xff]  ;;  %v9968_v18 = vld [vmem:[#allocation201_spill] sm:$0xff] }
 0x293   : > { %3831 = vmatpush.bf16.msrb.mxu2 %v9954_v38  ;;  %v3489_v38 = vunpack.c.l.b16 %v3455_v60 }
 0x294   : > { %3844 = vmatpush.bf16.msrb.mxu3 %v9955_v55  ;;  %v9964_v55 = vld [vmem:[#allocation197_spill] sm:$0xff]  ;;  %v3564_v53 = vadd.f32 %v3563_v7, %v3551_v11  ;;  %v9973_v7 = vld [vmem:[#allocation206_spill] sm:$0xff]  ;;  %v9974_v11 = vld [vmem:[#allocation207_spill] sm:$0xff] }
 0x295   : > { %3806 = vmatpush.bf16.msrb.mxu0 %v9956_v30  ;;  %v3491_v30 = vunpack.c.l.b16 %v3456_v48 }
 0x296   : > { %3819 = vmatpush.bf16.msrb.mxu1 %v9957_v41  ;;  %v3490_v41 = vunpack.c.h.b16 %v3455_v60 }
 0x297   : > { %3832 = vmatpush.bf16.msrb.mxu2 %v9958_v34  ;;  %v3492_v34 = vunpack.c.h.b16 %v3456_v48  ;;  %v9971_v48 = vld [vmem:[#allocation204_spill] sm:$0xff] }
 0x298   : > { %3845 = vmatpush.bf16.msrb.mxu3 %v9959_v52  ;;  %v8707_v52 = vpack.c.b16 %v3489_v38, %v3489_v38  ;;  %v8713_v2 = vpack.c.b16 %v3490_v41, %v3490_v41  ;;  %v9975_v38 = vld [vmem:[#allocation208_spill] sm:$0xff]  ;;  %v9977_v41 = vld [vmem:[#allocation210_spill] sm:$0xff] }
 0x299   : > { %3807 = vmatpush.bf16.msrb.mxu0 %v9962_v39  ;;  %v8711_v39 = vpack.c.b16 %v3491_v30, %v3491_v30  ;;  %v8717_v60 = vpack.c.b16 %v3492_v34, %v3492_v34 }
 0x29a   : > { %3820 = vmatpush.bf16.msrb.mxu1 %v9963_v17  ;;  %v9970_v17 = vld [vmem:[#allocation203_spill] sm:$0xff] }
 0x29b   : > { %3833 = vmatpush.bf16.msrb.mxu2 %v9964_v55  ;;  %v9976_v55 = vld [vmem:[#allocation209_spill] sm:$0xff] }
 0x29c   : > { %3846 = vmatpush.bf16.msrb.mxu3 %v9965_v22  ;;  %v9972_v22 = vld [vmem:[#allocation205_spill] sm:$0xff] }
 0x29d   : > { %3808 = vmatpush.bf16.msrb.mxu0 %v9966_v13  ;;  %v3577_v13 = vadd.f32 %v3576_v8, %v3564_v53  ;;  %v9978_v8 = vld [vmem:[#allocation211_spill] sm:$0xff]  ;;  %v3602_v34 = vpop.f32.mrf.mxu0  ;;  %v9979_v53 = vld [vmem:[#allocation212_spill] sm:$0xff] }
 0x29e   : > { %3821 = vmatpush.bf16.msrb.mxu1 %v9967_v0  ;;  %v9980_v0 = vld [vmem:[#allocation213_spill] sm:$0xff] }
 0x29f   : > { %3834 = vmatpush.bf16.msrb.mxu2 %v9968_v18  ;;  %v3590_v30 = vadd.f32 %v3589_v12, %v3577_v13  ;;  %v9985_v13 = vld [vmem:[#allocation218_spill] sm:$0xff] }
 0x2a0   : > { %3847 = vmatpush.bf16.msrb.mxu3 %v9969_v27  ;;  %3809 = vmatmul.bf16.vlgmr.msrb.gmra.mxu0 %v8707_v52  ;;  %v3615_v27 = vpop.f32.mrf.mxu1 }
 0x2a1   : > { %3853 = vmatpush.bf16.msra.mxu0 %v9970_v17  ;;  %3822 = vmatmul.bf16.vlgmr.msrb.gmra.mxu1 %v8713_v2  ;;  %v3603_v18 = vadd.f32 %v3602_v34, %v3590_v30  ;;  %v9981_v17 = vld [vmem:[#allocation214_spill] sm:$0xff]  ;;  %v9987_v30 = vld [vmem:[#allocation220_spill] sm:$0xff]  ;;  %v9988_v34 = vld [vmem:[#allocation221_spill] sm:$0xff] }
 0x2a2   : > { %3866 = vmatpush.bf16.msra.mxu1 %v9971_v48  ;;  %3835 = vmatmul.bf16.vlgmr.msrb.gmra.mxu2 %v8711_v39 }
 0x2a3   : > { %3879 = vmatpush.bf16.msra.mxu2 %v9972_v22  ;;  %3848 = vmatmul.bf16.vlgmr.msrb.gmra.mxu3 %v8717_v60  ;;  %v3616_v48 = vadd.f32 %v3615_v27, %v3603_v18  ;;  %v9982_v22 = vld [vmem:[#allocation215_spill] sm:$0xff]  ;;  %v9989_v18 = vld [vmem:[#allocation222_spill] sm:$0xff] }
 0x2a4   : > { %3892 = vmatpush.bf16.msra.mxu3 %v9973_v7  ;;  %v9983_v7 = vld [vmem:[#allocation216_spill] sm:$0xff]  ;;  %v9990_v27 = vld [vmem:[#allocation223_spill] sm:$0xff] }
 0x2a5   : > { %3854 = vmatpush.bf16.msra.mxu0 %v9974_v11  ;;  %v9984_v11 = vld [vmem:[#allocation217_spill] sm:$0xff]  ;;  %v3628_v12 = vpop.f32.mrf.mxu2 }
 0x2a6   : > { %3867 = vmatpush.bf16.msra.mxu1 %v9975_v38  ;;  %v3629_v38 = vadd.f32 %v3628_v12, %v3616_v48  ;;  %v9993_v48 = vld [vmem:[#allocation226_spill] sm:$0xff]  ;;  %v9994_v12 = vld [vmem:[#allocation227_spill] sm:$0xff] }
 0x2a7   : > { %3880 = vmatpush.bf16.msra.mxu2 %v9976_v55  ;;  %v3641_v55 = vpop.f32.mrf.mxu3 }
 0x2a8   : > { %3893 = vmatpush.bf16.msra.mxu3 %v9977_v41  ;;  %v9986_v41 = vld [vmem:[#allocation219_spill] sm:$0xff] }
 0x2a9   : > { %3855 = vmatpush.bf16.msra.mxu0 %v9978_v8  ;;  %v3642_v8 = vadd.f32 %v3641_v55, %v3629_v38  ;;  %v9996_v38 = vld [vmem:[#allocation229_spill] sm:$0xff]  ;;  %v9997_v55 = vld [vmem:[#allocation230_spill] sm:$0xff] }
 0x2aa   : > { %3868 = vmatpush.bf16.msra.mxu1 %v9979_v53  ;;  %v3604_v53 = vpop.f32.mrf.mxu0 }
 0x2ab   : > { %3881 = vmatpush.bf16.msra.mxu2 %v9980_v0  ;;  %v3617_v0 = vpop.f32.mrf.mxu1  ;;  %v9999_v53 = vld [vmem:[#allocation232_spill] sm:$0xff] }
 0x2ac   : > { %3894 = vmatpush.bf16.msra.mxu3 %v9981_v17  ;;  %v9991_v17 = vld [vmem:[#allocation224_spill] sm:$0xff] }
 0x2ad   : > { %3856 = vmatpush.bf16.msra.mxu0 %v9982_v22  ;;  %v9992_v22 = vld [vmem:[#allocation225_spill] sm:$0xff] }
 0x2ae   : > { %3869 = vmatpush.bf16.msra.mxu1 %v9983_v7  ;;  %v3630_v7 = vpop.f32.mrf.mxu2 }
 0x2af   : > { %3882 = vmatpush.bf16.msra.mxu2 %v9984_v11  ;;  %v3643_v11 = vpop.f32.mrf.mxu3  ;;  %v10010_v7 = vld [vmem:[#allocation243_spill] sm:$0xff] }
 0x2b0   : > { %3895 = vmatpush.bf16.msra.mxu3 %v9985_v13  ;;  %v9995_v13 = vld [vmem:[#allocation228_spill] sm:$0xff]  ;;  %v10013_v11 = vld [vmem:[#allocation246_spill] sm:$0xff] }
 0x2b1   : > { %3857 = vmatpush.bf16.msra.mxu0 %v9986_v41  ;;  %v9998_v41 = vld [vmem:[#allocation231_spill] sm:$0xff] }
 0x2b2   : > { %3870 = vmatpush.bf16.msra.mxu1 %v9987_v30  ;;  %v10000_v30 = vld [vmem:[#allocation233_spill] sm:$0xff] }
 0x2b3   : > { %3883 = vmatpush.bf16.msra.mxu2 %v9988_v34  ;;  %v10001_v34 = vld [vmem:[#allocation234_spill] sm:$0xff] }
 0x2b4   : > { %3896 = vmatpush.bf16.msra.mxu3 %v9989_v18  ;;  %v10006_v18 = vld [vmem:[#allocation239_spill] sm:$0xff] }
 0x2b5   : > { %3858 = vmatpush.bf16.msra.mxu0 %v9990_v27 }
 0x2b6   : > { %3871 = vmatpush.bf16.msra.mxu1 %v9991_v17 }
 0x2b7   : > { %3884 = vmatpush.bf16.msra.mxu2 %v9992_v22 }
 0x2b8   : > { %3897 = vmatpush.bf16.msra.mxu3 %v9993_v48  ;;  %v10012_v48 = vld [vmem:[#allocation245_spill] sm:$0xff] }
 0x2b9   : > { %3859 = vmatpush.bf16.msra.mxu0 %v9994_v12 }
 0x2ba   : > { %3872 = vmatpush.bf16.msra.mxu1 %v9995_v13 }
 0x2bb   : > { %3885 = vmatpush.bf16.msra.mxu2 %v7897_v58  ;;  %v10003_v58 = vld [vmem:[#allocation236_spill] sm:$0xff] }
 0x2bc   : > { %3898 = vmatpush.bf16.msra.mxu3 %v7900_v46  ;;  %v10002_v46 = vld [vmem:[#allocation235_spill] sm:$0xff] }
 0x2bd   : > { %3860 = vmatpush.bf16.msra.mxu0 %v7903_v63  ;;  %v10004_v63 = vld [vmem:[#allocation237_spill] sm:$0xff]  ;;  %v3654_v0 = vpop.f32.mrf.mxu0 }
 0x2be   : > { %3873 = vmatpush.bf16.msra.mxu1 %v7907_v40  ;;  %v10005_v40 = vld [vmem:[#allocation238_spill] sm:$0xff]  ;;  %v3655_v27 = vadd.f32 %v3654_v0, %v3642_v8  ;;  %v3667_v17 = vpop.f32.mrf.mxu1 }
 0x2bf   : > { %3886 = vmatpush.bf16.msra.mxu2 %v9996_v38  ;;  %v10021_v0 = vld [vmem:[#allocation254_spill] sm:$0xff] }
 0x2c0   : > { %3899 = vmatpush.bf16.msra.mxu3 %v9997_v55  ;;  %3861 = vmatmul.bf16.vlgmr.msra.gmra.mxu0 %v8477_v25  ;;  %v10008_v25 = vld [vmem:[#allocation241_spill] sm:$0xff]  ;;  %v3668_v22 = vadd.f32 %v3667_v17, %v3655_v27  ;;  %v10014_v55 = vld [vmem:[#allocation247_spill] sm:$0xff] }
 0x2c1   : > { %3905 = vmatpush.bf16.msrb.mxu0 %v9998_v41  ;;  %3874 = vmatmul.bf16.vlgmr.msra.gmra.mxu1 %v8483_v56  ;;  %v10011_v56 = vld [vmem:[#allocation244_spill] sm:$0xff]  ;;  %v10022_v17 = vld [vmem:[#allocation255_spill] sm:$0xff] }
 0x2c2   : > { %3918 = vmatpush.bf16.msrb.mxu1 %v9999_v53  ;;  %3887 = vmatmul.bf16.vlgmr.msra.gmra.mxu2 %v8473_v16  ;;  %v10007_v16 = vld [vmem:[#allocation240_spill] sm:$0xff] }
 0x2c3   : > { %3931 = vmatpush.bf16.msrb.mxu2 %v10000_v30  ;;  %3900 = vmatmul.bf16.vlgmr.msra.gmra.mxu3 %v8479_v29  ;;  %v10009_v29 = vld [vmem:[#allocation242_spill] sm:$0xff]  ;;  %v10015_v53 = vld [vmem:[#allocation248_spill] sm:$0xff]  ;;  %v10016_v30 = vld [vmem:[#allocation249_spill] sm:$0xff] }
 0x2c4   : > { %3944 = vmatpush.bf16.msrb.mxu3 %v10001_v34 }
 0x2c5   : > { %3906 = vmatpush.bf16.msrb.mxu0 %v10002_v46  ;;  %v3680_v12 = vpop.f32.mrf.mxu2  ;;  %v3656_v8 = vpop.f32.mrf.mxu0  ;;  %v10017_v46 = vld [vmem:[#allocation250_spill] sm:$0xff] }
 0x2c6   : > { %3919 = vmatpush.bf16.msrb.mxu1 %v10003_v58  ;;  %v3681_v13 = vadd.f32 %v3680_v12, %v3668_v22  ;;  %v3693_v38 = vpop.f32.mrf.mxu3  ;;  %v3669_v41 = vpop.f32.mrf.mxu1  ;;  %v10018_v58 = vld [vmem:[#allocation251_spill] sm:$0xff] }
 0x2c7   : > { %3932 = vmatpush.bf16.msrb.mxu2 %v10004_v63  ;;  %v10019_v63 = vld [vmem:[#allocation252_spill] sm:$0xff]  ;;  %v10026_v22 = vld [vmem:[#allocation259_spill] sm:$0xff]  ;;  %v10040_v41 = vld [vmem:[#allocation273_spill] sm:$0xff] }
 0x2c8   : > { %3945 = vmatpush.bf16.msrb.mxu3 %v10005_v40  ;;  %v3694_v34 = vadd.f32 %v3693_v38, %v3681_v13  ;;  %v10020_v40 = vld [vmem:[#allocation253_spill] sm:$0xff]  ;;  %v10034_v12 = vld [vmem:[#allocation267_spill] sm:$0xff] }
 0x2c9   : > { %3907 = vmatpush.bf16.msrb.mxu0 %v10006_v18 }
 0x2ca   : > { %3920 = vmatpush.bf16.msrb.mxu1 %v10007_v16  ;;  %v10023_v16 = vld [vmem:[#allocation256_spill] sm:$0xff] }
 0x2cb   : > { %3933 = vmatpush.bf16.msrb.mxu2 %v10008_v25  ;;  %v10024_v25 = vld [vmem:[#allocation257_spill] sm:$0xff] }
 0x2cc   : > { %3946 = vmatpush.bf16.msrb.mxu3 %v10009_v29  ;;  %v10025_v29 = vld [vmem:[#allocation258_spill] sm:$0xff] }
 0x2cd   : > { %3908 = vmatpush.bf16.msrb.mxu0 %v10010_v7  ;;  %v3682_v18 = vpop.f32.mrf.mxu2  ;;  %v10027_v7 = vld [vmem:[#allocation260_spill] sm:$0xff] }
 0x2ce   : > { %3921 = vmatpush.bf16.msrb.mxu1 %v10011_v56  ;;  %v3695_v27 = vpop.f32.mrf.mxu3  ;;  %v10028_v56 = vld [vmem:[#allocation261_spill] sm:$0xff] }
 0x2cf   : > { %3934 = vmatpush.bf16.msrb.mxu2 %v10012_v48  ;;  %v10029_v48 = vld [vmem:[#allocation262_spill] sm:$0xff]  ;;  %v10044_v18 = vld [vmem:[#allocation277_spill] sm:$0xff] }
 0x2d0   : > { %3947 = vmatpush.bf16.msrb.mxu3 %v10013_v11 }
 0x2d1   : > { %3909 = vmatpush.bf16.msrb.mxu0 %v10014_v55  ;;  %v10038_v55 = vld [vmem:[#allocation271_spill] sm:$0xff] }
 0x2d2   : > { %3922 = vmatpush.bf16.msrb.mxu1 %v10015_v53  ;;  %v10041_v53 = vld [vmem:[#allocation274_spill] sm:$0xff] }
 0x2d3   : > { %3935 = vmatpush.bf16.msrb.mxu2 %v10016_v30 }
 0x2d4   : > { %3948 = vmatpush.bf16.msrb.mxu3 %v10017_v46 }
 0x2d5   : > { %3910 = vmatpush.bf16.msrb.mxu0 %v10018_v58 }
 0x2d6   : > { %3923 = vmatpush.bf16.msrb.mxu1 %v10019_v63  ;;  %v10042_v63 = vld [vmem:[#allocation275_spill] sm:$0xff] }
 0x2d7   : > { %3936 = vmatpush.bf16.msrb.mxu2 %v10020_v40 }
 0x2d8   : > { %3949 = vmatpush.bf16.msrb.mxu3 %v10021_v0  ;;  %v10043_v0 = vld [vmem:[#allocation276_spill] sm:$0xff] }
 0x2d9   : > { %3911 = vmatpush.bf16.msrb.mxu0 %v10022_v17  ;;  %v10045_v17 = vld [vmem:[#allocation278_spill] sm:$0xff] }
 0x2da   : > { %3924 = vmatpush.bf16.msrb.mxu1 %v10023_v16  ;;  %v10046_v16 = vld [vmem:[#allocation279_spill] sm:$0xff] }
 0x2db   : > { %3937 = vmatpush.bf16.msrb.mxu2 %v8000_v4  ;;  %v10031_v4 = vld [vmem:[#allocation264_spill] sm:$0xff] }
 0x2dc   : > { %3950 = vmatpush.bf16.msrb.mxu3 %v8003_v42  ;;  %v10030_v42 = vld [vmem:[#allocation263_spill] sm:$0xff] }
 0x2dd   : > { %3912 = vmatpush.bf16.msrb.mxu0 %v8006_v62  ;;  %v10032_v62 = vld [vmem:[#allocation265_spill] sm:$0xff]  ;;  %v3706_v11 = vpop.f32.mrf.mxu0 }
 0x2de   : > { %3925 = vmatpush.bf16.msrb.mxu1 %v8010_v23  ;;  %v10033_v23 = vld [vmem:[#allocation266_spill] sm:$0xff]  ;;  %v3707_v13 = vadd.f32 %v3706_v11, %v3694_v34  ;;  %v3719_v38 = vpop.f32.mrf.mxu1  ;;  %v10055_v11 = vld [vmem:[#allocation288_spill] sm:$0xff] }
 0x2df   : > { %3938 = vmatpush.bf16.msrb.mxu2 %v10024_v25  ;;  %v10047_v25 = vld [vmem:[#allocation280_spill] sm:$0xff] }
 0x2e0   : > { %3951 = vmatpush.bf16.msrb.mxu3 %v10025_v29  ;;  %3913 = vmatmul.bf16.vlgmr.msrb.gmra.mxu0 %v8523_v21  ;;  %v10036_v21 = vld [vmem:[#allocation269_spill] sm:$0xff]  ;;  %v3720_v8 = vadd.f32 %v3719_v38, %v3707_v13  ;;  %v10057_v13 = vld [vmem:[#allocation290_spill] sm:$0xff] }
 0x2e1   : > { %3957 = vmatpush.bf16.msra.mxu0 %v10026_v22  ;;  %3926 = vmatmul.bf16.vlgmr.msrb.gmra.mxu1 %v8529_v44  ;;  %v10039_v44 = vld [vmem:[#allocation272_spill] sm:$0xff]  ;;  %v10048_v29 = vld [vmem:[#allocation281_spill] sm:$0xff]  ;;  %v10049_v22 = vld [vmem:[#allocation282_spill] sm:$0xff] }
 0x2e2   : > { %3970 = vmatpush.bf16.msra.mxu1 %v10027_v7  ;;  %3939 = vmatmul.bf16.vlgmr.msrb.gmra.mxu2 %v8519_v19  ;;  %v10035_v19 = vld [vmem:[#allocation268_spill] sm:$0xff] }
 0x2e3   : > { %3983 = vmatpush.bf16.msra.mxu2 %v10028_v56  ;;  %3952 = vmatmul.bf16.vlgmr.msrb.gmra.mxu3 %v8525_v33  ;;  %v10037_v33 = vld [vmem:[#allocation270_spill] sm:$0xff] }
 0x2e4   : > { %3996 = vmatpush.bf16.msra.mxu3 %v10029_v48  ;;  %v10050_v48 = vld [vmem:[#allocation283_spill] sm:$0xff] }
 0x2e5   : > { %3958 = vmatpush.bf16.msra.mxu0 %v10030_v42  ;;  %v3732_v30 = vpop.f32.mrf.mxu2  ;;  %v3708_v34 = vpop.f32.mrf.mxu0  ;;  %v10051_v42 = vld [vmem:[#allocation284_spill] sm:$0xff] }
 0x2e6   : > { %3971 = vmatpush.bf16.msra.mxu1 %v10031_v4  ;;  %v3733_v46 = vadd.f32 %v3732_v30, %v3720_v8  ;;  %v3745_v58 = vpop.f32.mrf.mxu3  ;;  %v3721_v40 = vpop.f32.mrf.mxu1  ;;  %v10052_v4 = vld [vmem:[#allocation285_spill] sm:$0xff]  ;;  %v10066_v8 = vld [vmem:[#allocation299_spill] sm:$0xff] }
 0x2e7   : > { %3984 = vmatpush.bf16.msra.mxu2 %v10032_v62  ;;  %v10053_v62 = vld [vmem:[#allocation286_spill] sm:$0xff]  ;;  %v10070_v34 = vld [vmem:[#allocation303_spill] sm:$0xff]  ;;  %v10071_v40 = vld [vmem:[#allocation304_spill] sm:$0xff] }
 0x2e8   : > { %3997 = vmatpush.bf16.msra.mxu3 %v10033_v23  ;;  %v3746_v27 = vadd.f32 %v3745_v58, %v3733_v46  ;;  %v10054_v23 = vld [vmem:[#allocation287_spill] sm:$0xff] }
 0x2e9   : > { %3959 = vmatpush.bf16.msra.mxu0 %v10034_v12  ;;  %v10056_v12 = vld [vmem:[#allocation289_spill] sm:$0xff] }
 0x2ea   : > { %3972 = vmatpush.bf16.msra.mxu1 %v10035_v19  ;;  %v10062_v19 = vld [vmem:[#allocation295_spill] sm:$0xff] }
 0x2eb   : > { %3985 = vmatpush.bf16.msra.mxu2 %v10036_v21 }
 0x2ec   : > { %3998 = vmatpush.bf16.msra.mxu3 %v10037_v33 }
 0x2ed   : > { %3960 = vmatpush.bf16.msra.mxu0 %v10038_v55  ;;  %v3734_v7 = vpop.f32.mrf.mxu2  ;;  %v10067_v55 = vld [vmem:[#allocation300_spill] sm:$0xff] }
 0x2ee   : > { %3973 = vmatpush.bf16.msra.mxu1 %v10039_v44  ;;  %v3747_v56 = vpop.f32.mrf.mxu3  ;;  %v10068_v44 = vld [vmem:[#allocation301_spill] sm:$0xff] }
 0x2ef   : > { %3986 = vmatpush.bf16.msra.mxu2 %v10040_v41  ;;  %v10069_v41 = vld [vmem:[#allocation302_spill] sm:$0xff]  ;;  %v10078_v56 = vld [vmem:[#allocation311_spill] sm:$0xff] }
 0x2f0   : > { %3999 = vmatpush.bf16.msra.mxu3 %v10041_v53 }
 0x2f1   : > { %3961 = vmatpush.bf16.msra.mxu0 %v10042_v63 }
 0x2f2   : > { %3974 = vmatpush.bf16.msra.mxu1 %v10043_v0  ;;  %v10072_v0 = vld [vmem:[#allocation305_spill] sm:$0xff] }
 0x2f3   : > { %3987 = vmatpush.bf16.msra.mxu2 %v10044_v18 }
 0x2f4   : > { %4000 = vmatpush.bf16.msra.mxu3 %v10045_v17  ;;  %v10074_v17 = vld [vmem:[#allocation307_spill] sm:$0xff] }
 0x2f5   : > { %3962 = vmatpush.bf16.msra.mxu0 %v10046_v16  ;;  %v10075_v16 = vld [vmem:[#allocation308_spill] sm:$0xff] }
 0x2f6   : > { %3975 = vmatpush.bf16.msra.mxu1 %v10047_v25  ;;  %v10076_v25 = vld [vmem:[#allocation309_spill] sm:$0xff] }
 0x2f7   : > { %3988 = vmatpush.bf16.msra.mxu2 %v10048_v29  ;;  %v10077_v29 = vld [vmem:[#allocation310_spill] sm:$0xff] }
 0x2f8   : > { %4001 = vmatpush.bf16.msra.mxu3 %v10049_v22 }
 0x2f9   : > { %3963 = vmatpush.bf16.msra.mxu0 %v10050_v48  ;;  %v10079_v48 = vld [vmem:[#allocation312_spill] sm:$0xff] }
 0x2fa   : > { %3976 = vmatpush.bf16.msra.mxu1 %v10051_v42  ;;  %v10080_v42 = vld [vmem:[#allocation313_spill] sm:$0xff] }
 0x2fb   : > { %3989 = vmatpush.bf16.msra.mxu2 %v8103_v45  ;;  %v10059_v45 = vld [vmem:[#allocation292_spill] sm:$0xff] }
 0x2fc   : > { %4002 = vmatpush.bf16.msra.mxu3 %v8106_v15  ;;  %v10058_v15 = vld [vmem:[#allocation291_spill] sm:$0xff] }
 0x2fd   : > { %3964 = vmatpush.bf16.msra.mxu0 %v8109_v5  ;;  %v10060_v5 = vld [vmem:[#allocation293_spill] sm:$0xff]  ;;  %v3758_v38 = vpop.f32.mrf.mxu0 }
 0x2fe   : > { %3977 = vmatpush.bf16.msra.mxu1 %v8113_v6  ;;  %v10061_v6 = vld [vmem:[#allocation294_spill] sm:$0xff]  ;;  %v3759_v21 = vadd.f32 %v3758_v38, %v3746_v27  ;;  %v3771_v33 = vpop.f32.mrf.mxu1 }
 0x2ff   : > { %3990 = vmatpush.bf16.msra.mxu2 %v10052_v4  ;;  %v10073_v27 = vld [vmem:[#allocation306_spill] sm:$0xff] }
 0x300   : > { %4003 = vmatpush.bf16.msra.mxu3 %v10053_v62  ;;  %3965 = vmatmul.bf16.vlgmr.msra.gmra.mxu0 %v8565_v49  ;;  %v10063_v49 = vld [vmem:[#allocation296_spill] sm:$0xff]  ;;  %v10081_v4 = vld [vmem:[#allocation314_spill] sm:$0xff]  ;;  %v10082_v62 = vld [vmem:[#allocation315_spill] sm:$0xff] }
 0x301   : > { %4009 = vmatpush.bf16.msrb.mxu0 %v10054_v23  ;;  %3978 = vmatmul.bf16.vlgmr.msra.gmra.mxu1 %v8571_v31  ;;  %v10065_v31 = vld [vmem:[#allocation298_spill] sm:$0xff]  ;;  %v10083_v23 = vld [vmem:[#allocation316_spill] sm:$0xff] }
 0x302   : > { %4022 = vmatpush.bf16.msrb.mxu1 %v10055_v11  ;;  %3991 = vmatmul.bf16.vlgmr.msra.gmra.mxu2 %v8569_v59  ;;  %v10064_v59 = vld [vmem:[#allocation297_spill] sm:$0xff] }
 0x303   : > { %4035 = vmatpush.bf16.msrb.mxu2 %v10056_v12  ;;  %4004 = vmatmul.bf16.vlgmr.msra.gmra.mxu3 %v8575_v28  ;;  %v3772_v28 = vadd.f32 %v3771_v33, %v3759_v21  ;;  %v10084_v11 = vld [vmem:[#allocation317_spill] sm:$0xff]  ;;  %v10089_v12 = vld [vmem:[#allocation322_spill] sm:$0xff] }
 0x304   : > { %4048 = vmatpush.bf16.msrb.mxu3 %v10057_v13  ;;  %v10097_v21 = vld [vmem:[#allocation330_spill] sm:$0xff] }
 0x305   : > { %4010 = vmatpush.bf16.msrb.mxu0 %v10058_v15  ;;  %v3784_v53 = vpop.f32.mrf.mxu2  ;;  %v3760_v58 = vpop.f32.mrf.mxu0  ;;  %v10090_v15 = vld [vmem:[#allocation323_spill] sm:$0xff] }
 0x306   : > { %4023 = vmatpush.bf16.msrb.mxu1 %v10059_v45  ;;  %v3785_v30 = vadd.f32 %v3784_v53, %v3772_v28  ;;  %v3797_v46 = vpop.f32.mrf.mxu3  ;;  %v3773_v63 = vpop.f32.mrf.mxu1  ;;  %v10095_v45 = vld [vmem:[#allocation328_spill] sm:$0xff]  ;;  %v10101_v28 = vld [vmem:[#allocation334_spill] sm:$0xff] }
 0x307   : > { %4036 = vmatpush.bf16.msrb.mxu2 %v10060_v5  ;;  %v10096_v5 = vld [vmem:[#allocation329_spill] sm:$0xff]  ;;  %v10108_v63 = vld [vmem:[#allocation342_spill] sm:$0xff] }
 0x308   : > { %4049 = vmatpush.bf16.msrb.mxu3 %v10061_v6  ;;  %v3798_v18 = vadd.f32 %v3797_v46, %v3785_v30  ;;  %v10105_v30 = vld [vmem:[#allocation339_spill] sm:$0xff]  ;;  %v10106_v46 = vld [vmem:[#allocation340_spill] sm:$0xff] }
 0x309   : > { %4011 = vmatpush.bf16.msrb.mxu0 %v10062_v19 }
 0x30a   : > { %4024 = vmatpush.bf16.msrb.mxu1 %v10063_v49  ;;  %v10098_v49 = vld [vmem:[#allocation331_spill] sm:$0xff] }
 0x30b   : > { %4037 = vmatpush.bf16.msrb.mxu2 %v10064_v59  ;;  %v10099_v59 = vld [vmem:[#allocation332_spill] sm:$0xff] }
 0x30c   : > { %4050 = vmatpush.bf16.msrb.mxu3 %v10065_v31  ;;  %v10100_v31 = vld [vmem:[#allocation333_spill] sm:$0xff] }
 0x30d   : > { %4012 = vmatpush.bf16.msrb.mxu0 %v10066_v8  ;;  %v3786_v22 = vpop.f32.mrf.mxu2  ;;  %v10102_v8 = vld [vmem:[#allocation336_spill] sm:$0xff] }
 0x30e   : > { %4025 = vmatpush.bf16.msrb.mxu1 %v10067_v55  ;;  %v3799_v7 = vpop.f32.mrf.mxu3  ;;  %v10103_v55 = vld [vmem:[#allocation337_spill] sm:$0xff] }
 0x30f   : > { %4038 = vmatpush.bf16.msrb.mxu2 %v10068_v44  ;;  %v10104_v44 = vld [vmem:[#allocation338_spill] sm:$0xff]  ;;  %v10121_v7 = vld [vmem:[#allocation335_spill] sm:$0xff] }
 0x310   : > { %4051 = vmatpush.bf16.msrb.mxu3 %v10069_v41 }
 0x311   : > { %4013 = vmatpush.bf16.msrb.mxu0 %v10070_v34  ;;  %v10107_v34 = vld [vmem:[#allocation341_spill] sm:$0xff] }
 0x312   : > { %4026 = vmatpush.bf16.msrb.mxu1 %v10071_v40  ;;  %v10109_v40 = vld [vmem:[#allocation343_spill] sm:$0xff] }
 0x313   : > { %4039 = vmatpush.bf16.msrb.mxu2 %v10072_v0  ;;  %v10110_v0 = vld [vmem:[#allocation344_spill] sm:$0xff] }
 0x314   : > { %4052 = vmatpush.bf16.msrb.mxu3 %v10073_v27 }
 0x315   : > { %4014 = vmatpush.bf16.msrb.mxu0 %v10074_v17  ;;  %v10116_v17 = vld [vmem:[#allocation350_spill] sm:$0xff] }
 0x316   : > { %4027 = vmatpush.bf16.msrb.mxu1 %v10075_v16 }
 0x317   : > { %4040 = vmatpush.bf16.msrb.mxu2 %v10076_v25 }
 0x318   : > { %4053 = vmatpush.bf16.msrb.mxu3 %v10077_v29  ;;  %v10120_v29 = vld [vmem:[#allocation353_spill] sm:$0xff] }
 0x319   : > { %4015 = vmatpush.bf16.msrb.mxu0 %v10078_v56  ;;  %v6123_v56 = vmul.f32 -1.442695, %v10121_v7 }
 0x31a   : > { %4028 = vmatpush.bf16.msrb.mxu1 %v10079_v48  ;;  %v10122_v48 = vld [vmem:[#allocation354_spill] sm:$0xff] }
 0x31b   : > { %4041 = vmatpush.bf16.msrb.mxu2 %v8206_v10  ;;  %v10086_v10 = vld [vmem:[#allocation319_spill] sm:$0xff]  ;;  %6626 = vpow2.f32 %v6123_v56 }
 0x31c   : > { %4054 = vmatpush.bf16.msrb.mxu3 %v8209_v26  ;;  %v10085_v26 = vld [vmem:[#allocation318_spill] sm:$0xff] }
 0x31d   : > { %4016 = vmatpush.bf16.msrb.mxu0 %v8212_v36  ;;  %v10087_v36 = vld [vmem:[#allocation320_spill] sm:$0xff] }
 0x31e   : > { %4029 = vmatpush.bf16.msrb.mxu1 %v8216_v24  ;;  %v10088_v24 = vld [vmem:[#allocation321_spill] sm:$0xff]  ;;  %v3823_v13 = vpop.f32.mrf.mxu1 }
 0x31f   : > { %4042 = vmatpush.bf16.msrb.mxu2 %v8218_v37  ;;  %v3810_v37 = vpop.f32.mrf.mxu0 }
 0x320   : > { %4055 = vmatpush.bf16.msrb.mxu3 %v10080_v42  ;;  %4017 = vmatmul.bf16.vlgmr.msrb.gmra.mxu0 %v8611_v50  ;;  %v10091_v50 = vld [vmem:[#allocation324_spill] sm:$0xff]  ;;  %v3811_v58 = vadd.f32 %v3810_v37, %v3798_v18  ;;  %v10115_v18 = vld [vmem:[#allocation349_spill] sm:$0xff]  ;;  %v10127_v37 = vld [vmem:[#allocation358_spill] sm:$0xff] }
 0x321   : > { %4061 = vmatpush.bf16.msra.mxu0 %v10081_v4  ;;  %4030 = vmatmul.bf16.vlgmr.msrb.gmra.mxu1 %v8617_v32  ;;  %v10093_v32 = vld [vmem:[#allocation326_spill] sm:$0xff]  ;;  %v10123_v4 = vld [vmem:[#allocation355_spill] sm:$0xff] }
 0x322   : > { %4074 = vmatpush.bf16.msra.mxu1 %v10082_v62  ;;  %4043 = vmatmul.bf16.vlgmr.msrb.gmra.mxu2 %v8615_v20  ;;  %v10092_v20 = vld [vmem:[#allocation325_spill] sm:$0xff]  ;;  %v10124_v62 = vld [vmem:[#allocation356_spill] sm:$0xff] }
 0x323   : > { %4087 = vmatpush.bf16.msra.mxu2 %v10083_v23  ;;  %4056 = vmatmul.bf16.vlgmr.msrb.gmra.mxu3 %v8621_v51  ;;  %v10094_v51 = vld [vmem:[#allocation327_spill] sm:$0xff] }
 0x324   : > { %4100 = vmatpush.bf16.msra.mxu3 %v10084_v11  ;;  %v10125_v11 = vld [vmem:[#allocation23_spill] sm:$0xff] }
 0x325   : > { %4062 = vmatpush.bf16.msra.mxu0 %v10085_v26  ;;  %v3836_v6 = vpop.f32.mrf.mxu2  ;;  %v6124_v26 = vmul.f32 -1.442695, %v10125_v11 }
 0x326   : > { %4075 = vmatpush.bf16.msra.mxu1 %v10086_v10  ;;  %v3849_v38 = vpop.f32.mrf.mxu3  ;;  %v3825_v33 = vpop.f32.mrf.mxu1  ;;  %v10126_v10 = vld [vmem:[#allocation357_spill] sm:$0xff] }
 0x327   : > { %4088 = vmatpush.bf16.msra.mxu2 %v10087_v36  ;;  %v3812_v19 = vpop.f32.mrf.mxu0 }
 0x328   : > { %4101 = vmatpush.bf16.msra.mxu3 %v10088_v24  ;;  %v10134_v19 = vld [vmem:[#allocation365_spill] sm:$0xff] }
 0x329   : > { %4063 = vmatpush.bf16.msra.mxu0 %v10089_v12 }
 0x32a   : > { %4076 = vmatpush.bf16.msra.mxu1 %v10090_v15  ;;  %v10128_v15 = vld [vmem:[#allocation359_spill] sm:$0xff] }
 0x32b   : > { %4089 = vmatpush.bf16.msra.mxu2 %v10091_v50  ;;  %v10129_v50 = vld [vmem:[#allocation360_spill] sm:$0xff] }
 0x32c   : > { %4102 = vmatpush.bf16.msra.mxu3 %v10092_v20 }
 0x32d   : > { %4064 = vmatpush.bf16.msra.mxu0 %v10093_v32  ;;  %v3838_v41 = vpop.f32.mrf.mxu2  ;;  %v10130_v32 = vld [vmem:[#allocation361_spill] sm:$0xff] }
 0x32e   : > { %4077 = vmatpush.bf16.msra.mxu1 %v10094_v51  ;;  %v3851_v53 = vpop.f32.mrf.mxu3  ;;  %v10131_v51 = vld [vmem:[#allocation362_spill] sm:$0xff] }
 0x32f   : > { %4090 = vmatpush.bf16.msra.mxu2 %v10095_v45  ;;  %v10132_v45 = vld [vmem:[#allocation363_spill] sm:$0xff] }
 0x330   : > { %4103 = vmatpush.bf16.msra.mxu3 %v10096_v5  ;;  %v10133_v5 = vld [vmem:[#allocation364_spill] sm:$0xff] }
 0x331   : > { %4065 = vmatpush.bf16.msra.mxu0 %v10097_v21  ;;  %v4292_v53 = vld [vmem:[#allocation11 + $0x78] sm:$0xff] }
 0x332   : > { %4078 = vmatpush.bf16.msra.mxu1 %v10098_v49 }
 0x333   : > { %4091 = vmatpush.bf16.msra.mxu2 %v10099_v59  ;;  %v10135_v59 = vld [vmem:[#allocation366_spill] sm:$0xff] }
 0x334   : > { %4104 = vmatpush.bf16.msra.mxu3 %v10100_v31 }
 0x335   : > { %4066 = vmatpush.bf16.msra.mxu0 %v10101_v28  ;;  %v10136_v28 = vld [vmem:[#allocation367_spill] sm:$0xff] }
 0x336   : > { %4079 = vmatpush.bf16.msra.mxu1 %v10102_v8  ;;  %v10137_v8 = vld [vmem:[#allocation368_spill] sm:$0xff] }
 0x337   : > { %4092 = vmatpush.bf16.msra.mxu2 %v10103_v55 }
 0x338   : > { %4105 = vmatpush.bf16.msra.mxu3 %v10104_v44  ;;  %v10138_v44 = vld [vmem:[#allocation369_spill] sm:$0xff] }
 0x339   : > { %4067 = vmatpush.bf16.msra.mxu0 %v10105_v30  ;;  %v10139_v30 = vld [vmem:[#allocation370_spill] sm:$0xff] }
 0x33a   : > { %4080 = vmatpush.bf16.msra.mxu1 %v10106_v46  ;;  %v4260_v46 = vld [vmem:[#allocation10 + $0x78] sm:$0xff] }
 0x33b   : > { %4093 = vmatpush.bf16.msra.mxu2 %v8309_v43  ;;  %v10111_v43 = vld [vmem:[#allocation345_spill] sm:$0xff] }
 0x33c   : > { %4106 = vmatpush.bf16.msra.mxu3 %v8312_v47  ;;  %v3824_v47 = vadd.f32 %v3823_v13, %v3811_v58  ;;  %v4276_v58 = vld [vmem:[#allocation10 + $0xf8] sm:$0xff] }
 0x33d   : > { %4068 = vmatpush.bf16.msra.mxu0 %v8315_v14  ;;  %v3862_v27 = vpop.f32.mrf.mxu0 }
 0x33e   : > { %4081 = vmatpush.bf16.msra.mxu1 %v8319_v35  ;;  %v3837_v14 = vadd.f32 %v3836_v6, %v3824_v47  ;;  %v10112_v35 = vld [vmem:[#allocation346_spill] sm:$0xff]  ;;  %v3875_v25 = vpop.f32.mrf.mxu1 }
 0x33f   : > { %4094 = vmatpush.bf16.msra.mxu2 %v8321_v1  ;;  %v10113_v1 = vld [vmem:[#allocation347_spill] sm:$0xff] }
 0x340   : > { %4107 = vmatpush.bf16.msra.mxu3 %v8324_v54  ;;  %4069 = vmatmul.bf16.vlgmr.msra.gmra.mxu0 %v8659_v3  ;;  %v10114_v54 = vld [vmem:[#allocation348_spill] sm:$0xff]  ;;  %v8911_v3 = vadd.f32 %v3849_v38, %v3837_v14  ;;  %v6627_v38 = vpop.eup %6626  ;;  %v4259_v47 = vld [vmem:[#allocation10 + $0x70] sm:$0xff]  ;;  %v4290_v14 = vld [vmem:[#allocation11 + $0x68] sm:$0xff] }
 0x341   : > { %4113 = vmatpush.bf16.msrb.mxu0 %v10107_v34  ;;  %4082 = vmatmul.bf16.vlgmr.msra.gmra.mxu1 %v8665_v57  ;;  %v10118_v57 = vld [vmem:[#allocation352_spill] sm:$0xff]  ;;  %v8936_v31 = vadd.f32 1.0, %v6627_v38  ;;  %v10140_v34 = vld [vmem:[#allocation371_spill] sm:$0xff] }
 0x342   : > { %4126 = vmatpush.bf16.msrb.mxu1 %v10108_v63  ;;  %4095 = vmatmul.bf16.vlgmr.msra.gmra.mxu2 %v8663_v9  ;;  %v10117_v9 = vld [vmem:[#allocation351_spill] sm:$0xff]  ;;  %v6125_v42 = vmul.f32 -1.442695, %v8911_v3  ;;  %v10141_v63 = vld [vmem:[#allocation372_spill] sm:$0xff] }
 0x343   : > { %4139 = vmatpush.bf16.msrb.mxu2 %v10109_v40  ;;  %4108 = vmatmul.bf16.vlgmr.msra.gmra.mxu3 %v8669_v61  ;;  %v10119_v61 = vperm.slane %v10118_v57, 1  ;;  %v10142_v40 = vld [vmem:[#allocation373_spill] sm:$0xff]  ;;  %vm4178_vm1 = vweird.f32 %v8936_v31 }
 0x344   : > { %4152 = vmatpush.bf16.msrb.mxu3 %v10110_v0  ;;  %6628 = vpow2.f32 %v6125_v42  ;;  %v4291_v0 = vld [vmem:[#allocation11 + $0x70] sm:$0xff] }
 0x345   : > { %4114 = vmatpush.bf16.msrb.mxu0 %v10111_v43  ;;  %v3863_v16 = vadd.f32 %v3862_v27, %v10119_v61  ;;  %v3888_v23 = vpop.f32.mrf.mxu2  ;;  %v3864_v13 = vpop.f32.mrf.mxu0  ;;  %6630 = vpow2.f32 %v6124_v26  ;;  %v4275_v43 = vld [vmem:[#allocation10 + $0xf0] sm:$0xff]  ;;  %v4257_v27 = vld [vmem:[#allocation10 + $0x60] sm:$0xff]  ;;  %v4270_v26 = vld [vmem:[#allocation10 + $0xc8] sm:$0xff] }
 0x346   : > { %4127 = vmatpush.bf16.msrb.mxu1 %v10112_v35  ;;  %v3901_v24 = vpop.f32.mrf.mxu3  ;;  %v3877_v20 = vpop.f32.mrf.mxu1  ;;  %6632 = vrcp.f32 %v8936_v31  ;;  %v4258_v35 = vld [vmem:[#allocation10 + $0x68] sm:$0xff]  ;;  %v4271_v42 = vld [vmem:[#allocation10 + $0xd0] sm:$0xff] }
 0x347   : > { %4140 = vmatpush.bf16.msrb.mxu2 %v10113_v1  ;;  %v3876_v22 = vadd.f32 %v3875_v25, %v3863_v16  ;;  %v4274_v1 = vld [vmem:[#allocation10 + $0xe8] sm:$0xff]  ;;  %v4287_v16 = vld [vmem:[#allocation11 + $0x50] sm:$0xff] }
 0x348   : > { %4153 = vmatpush.bf16.msrb.mxu3 %v10114_v54  ;;  %v4255_v25 = vld [vmem:[#allocation10 + $0x50] sm:$0xff] }
 0x349   : > { %4115 = vmatpush.bf16.msrb.mxu0 %v10115_v18  ;;  %v3889_v36 = vadd.f32 %v3888_v23, %v3876_v22  ;;  %v4289_v18 = vld [vmem:[#allocation11 + $0x60] sm:$0xff] }
 0x34a   : > { %4128 = vmatpush.bf16.msrb.mxu1 %v10116_v17  ;;  %v6629_v33 = vpop.eup %6628 }
 0x34b   : > { %4141 = vmatpush.bf16.msrb.mxu2 %v10117_v9  ;;  %v8926_v12 = vadd.f32 %v3901_v24, %v3889_v36  ;;  %v6631_v49 = vpop.eup %6630  ;;  %v8940_v55 = vadd.f32 1.0, %v6629_v33  ;;  %v4272_v9 = vld [vmem:[#allocation10 + $0xd8] sm:$0xff]  ;;  %v4285_v36 = vld [vmem:[#allocation11 + $0x40] sm:$0xff] }
 0x34c   : > { %4154 = vmatpush.bf16.msrb.mxu3 %v10120_v29  ;;  %v8943_v41 = vadd.f32 1.0, %v6631_v49  ;;  %v8956_v54 = vpop.eup %6632  ;;  %v4253_v24 = vld [vmem:[#allocation10 + $0x40] sm:$0xff] }
 0x34d   : > { %4116 = vmatpush.bf16.msrb.mxu0 %v10122_v48  ;;  %v3890_v6 = vpop.f32.mrf.mxu2  ;;  %6634 = vrcp.f32 %v8940_v55  ;;  %v4174_v56 = vmul.f32 %v8956_v54, %v8936_v31  ;;  %vm4179_vm0 = vweird.f32 %v8956_v54  ;;  %vm4218_vm5 = vweird.f32 %v8940_v55 }
 0x34e   : > { %4129 = vmatpush.bf16.msrb.mxu1 %v10123_v4  ;;  %v3903_v21 = vpop.f32.mrf.mxu3  ;;  %6636 = vrcp.f32 %v8943_v41  ;;  %v4286_v4 = vld [vmem:[#allocation11 + $0x48] sm:$0xff]  ;;  %vm8986_vm4 = vmor %vm4178_vm1, %vm4179_vm0  ;;  %vm4193_vm6 = vweird.f32 %v8943_v41 }
 0x34f   : > { %4142 = vmatpush.bf16.msrb.mxu2 %v10124_v62  ;;  %v4254_v62 = vld [vmem:[#allocation10 + $0x48] sm:$0xff]  ;;  %v4251_v21 = vld [vmem:[#allocation10 + $0x30] sm:$0xff] }
 0x350   : > { %4155 = vmatpush.bf16.msrb.mxu3 %v10126_v10 }
 0x351   : > { %4117 = vmatpush.bf16.msrb.mxu0 %v10127_v37 }
 0x352   : > { %4130 = vmatpush.bf16.msrb.mxu1 %v10128_v15  ;;  %v4269_v15 = vld [vmem:[#allocation10 + $0xc0] sm:$0xff] }
 0x353   : > { %4143 = vmatpush.bf16.msrb.mxu2 %v10129_v50  ;;  %v8958_v17 = vpop.eup %6634 }
 0x354   : > { %4156 = vmatpush.bf16.msrb.mxu3 %v10130_v32  ;;  %v4214_v61 = vmul.f32 %v8958_v17, %v8940_v55  ;;  %v4284_v32 = vld [vmem:[#allocation11 + $0x38] sm:$0xff]  ;;  %vm4219_vm2 = vweird.f32 %v8958_v17 }
 0x355   : > { %4118 = vmatpush.bf16.msrb.mxu0 %v10131_v51  ;;  %v4252_v51 = vld [vmem:[#allocation10 + $0x38] sm:$0xff]  ;;  %vm8999_vm7 = vmor %vm4218_vm5, %vm4219_vm2 }
 0x356   : > { %4131 = vmatpush.bf16.msrb.mxu1 %v10132_v45  ;;  %v4215_v10 = vsub.f32 1.0, %v4214_v61  ;;  %v4268_v45 = vld [vmem:[#allocation10 + $0xb8] sm:$0xff]  ;;  %v4247_v61 = vld [vmem:[#allocation10 + $0x10] sm:$0xff] }
 0x357   : > { %4144 = vmatpush.bf16.msrb.mxu2 %v10133_v5 }
 0x358   : > { %4157 = vmatpush.bf16.msrb.mxu3 %v10134_v19  ;;  %v4216_v38 = vmul.f32 %v8958_v17, %v4215_v10  ;;  %v4283_v19 = vld [vmem:[#allocation11 + $0x30] sm:$0xff]  ;;  %v4261_v10 = vld [vmem:[#allocation10 + $0x80] sm:$0xff] }
 0x359   : > { %4119 = vmatpush.bf16.msrb.mxu0 %v10135_v59 }
 0x35a   : > { %4132 = vmatpush.bf16.msrb.mxu1 %v10136_v28  ;;  %v4267_v28 = vld [vmem:[#allocation10 + $0xb0] sm:$0xff] }
 0x35b   : > { %4145 = vmatpush.bf16.msrb.mxu2 %v10137_v8  ;;  %v4282_v8 = vld [vmem:[#allocation11 + $0x28] sm:$0xff] }
 0x35c   : > { %4158 = vmatpush.bf16.msrb.mxu3 %v10138_v44  ;;  %v4250_v44 = vld [vmem:[#allocation10 + $0x28] sm:$0xff] }
 0x35d   : > { %4120 = vmatpush.bf16.msrb.mxu0 %v10139_v30  ;;  %v3914_v57 = vpop.f32.mrf.mxu0  ;;  %v4217_v30 = vadd.f32 %v8958_v17, %v4216_v38 }
 0x35e   : > { %4133 = vmatpush.bf16.msrb.mxu1 %v10140_v34  ;;  %v3915_v29 = vadd.f32 %v3914_v57, %v8926_v12  ;;  %v3927_v22 = vpop.f32.mrf.mxu1  ;;  %v4175_v12 = vsub.f32 1.0, %v4174_v56  ;;  %v4264_v57 = vld [vmem:[#allocation10 + $0x98] sm:$0xff] }
 0x35f   : > { %4146 = vmatpush.bf16.msrb.mxu2 %v10141_v63 }
 0x360   : > { %4159 = vmatpush.bf16.msrb.mxu3 %v10142_v40  ;;  %4121 = vmatmul.bf16.vlgmr.msrb.gmra.mxu0 %v8707_v52  ;;  %v4273_v52 = vld [vmem:[#allocation10 + $0xe0] sm:$0xff]  ;;  %v3928_v23 = vadd.f32 %v3927_v22, %v3915_v29  ;;  %v4176_v49 = vmul.f32 %v8956_v54, %v4175_v12  ;;  %v4263_v22 = vld [vmem:[#allocation10 + $0x90] sm:$0xff] }
 0x361   : > { %4309 = vmatpush.msra.mxu0 %v4292_v53  ;;  %4134 = vmatmul.bf16.vlgmr.msrb.gmra.mxu1 %v8713_v2  ;;  %v8960_v2 = vpop.eup %6636  ;;  %v4266_v53 = vld [vmem:[#allocation10 + $0xa8] sm:$0xff] }
 0x362   : > { %4147 = vmatmul.bf16.vlgmr.msrb.gmra.mxu2 %v8711_v39  ;;  %v4288_v39 = vld [vmem:[#allocation11 + $0x58] sm:$0xff]  ;;  %v4189_v48 = vmul.f32 %v8960_v2, %v8943_v41  ;;  %v4177_v63 = vadd.f32 %v8956_v54, %v4176_v49  ;;  %vm4194_vm3 = vweird.f32 %v8960_v2 }
 0x363   : > { %4349 = vmatpush.msra.mxu2 %v4260_v46  ;;  %4160 = vmatmul.bf16.vlgmr.msrb.gmra.mxu3 %v8717_v60  ;;  %v4256_v60 = vld [vmem:[#allocation10 + $0x58] sm:$0xff]  ;;  %v4281_v46 = vld [vmem:[#allocation11 + $0x20] sm:$0xff]  ;;  %vm9005_vm8 = vmor %vm4193_vm6, %vm4194_vm3 }
 0x364   : > { %4369 = vmatpush.msra.mxu3 %v4276_v58  ;;  %4310 = vmatpush.msra.mxu0 %v4291_v0  ;;  %v4190_v13 = vsub.f32 1.0, %v4189_v48  ;;  %v4249_v58 = vld [vmem:[#allocation10 + $0x20] sm:$0xff]  ;;  %v4224_v0 = vand.u32 2147483648, %v8940_v55 }
 0x365   : > { %4350 = vmatpush.msra.mxu2 %v4259_v47  ;;  %v3940_v37 = vpop.f32.mrf.mxu2  ;;  %v3916_v6 = vpop.f32.mrf.mxu0  ;;  %v4265_v47 = vld [vmem:[#allocation10 + $0xa0] sm:$0xff] }
 0x366   : > { %4370 = vmatpush.msra.mxu3 %v4275_v43  ;;  %4311 = vmatpush.msra.mxu0 %v4290_v14  ;;  %v3941_v50 = vadd.f32 %v3940_v37, %v3928_v23  ;;  %v3953_v20 = vpop.f32.mrf.mxu3  ;;  %v3929_v33 = vpop.f32.mrf.mxu1  ;;  %v4191_v59 = vmul.f32 %v8960_v2, %v4190_v13  ;;  %v4225_v29 = vor.u32 1.1754944e-38, %v4224_v0  ;;  %v4307_v0 = vld [vmem:[#allocation11 + $0xf0] sm:$0xff] }
 0x367   : > { %4351 = vmatpush.msra.mxu2 %v4258_v35  ;;  %v4184_v35 = vand.u32 2147483648, %v8936_v31 }
 0x368   : > { %4371 = vmatpush.msra.mxu3 %v4274_v1  ;;  %4312 = vmatpush.msra.mxu0 %v4289_v18  ;;  %v8969_v5 = vadd.f32 %v3953_v20, %v3941_v50  ;;  %v4192_v40 = vadd.f32 %v8960_v2, %v4191_v59  ;;  %v4199_v1 = vand.u32 2147483648, %v8943_v41  ;;  %v4222_v18 = vand.u32 2147483647, %v8940_v55 }
 0x369   : > { %4352 = vmatpush.msra.mxu2 %v4257_v27  ;;  %v4280_v27 = vld [vmem:[#allocation11 + $0x18] sm:$0xff]  ;;  %v4185_v56 = vor.u32 1.1754944e-38, %v4184_v35 }
 0x36a   : > { %4372 = vmatpush.msra.mxu3 %v4273_v52  ;;  %4313 = vmatpush.msra.mxu0 %v4288_v39  ;;  %v4248_v52 = vld [vmem:[#allocation10 + $0x18] sm:$0xff]  ;;  %v4182_v39 = vand.u32 2147483647, %v8936_v31  ;;  %v4221_v31 = vsel %vm8999_vm7, %v8958_v17, %v4217_v30  ;;  %v4200_v48 = vor.u32 1.1754944e-38, %v4199_v1  ;;  %vm4223_vm9 = vcmp.eq.f32.partialorder %v4222_v18, 8.507059e+37  ;;  %v4278_v17 = vld [vmem:[#allocation11 + $0x8] sm:$0xff] }
 0x36b   : > { %4353 = vmatpush.msra.mxu2 %v4256_v60  ;;  %v4197_v60 = vand.u32 2147483647, %v8943_v41  ;;  %v4279_v41 = vld [vmem:[#allocation11 + $0x10] sm:$0xff]  ;;  %v4305_v1 = vld [vmem:[#allocation11 + $0xe0] sm:$0xff] }
 0x36c   : > { %4373 = vmatpush.msra.mxu3 %v4272_v9  ;;  %4314 = vmatpush.msra.mxu0 %v4287_v16  ;;  %v4181_v16 = vsel %vm8986_vm4, %v8956_v54, %v4177_v63  ;;  %vm4183_vm10 = vcmp.eq.f32.partialorder %v4182_v39, 8.507059e+37  ;;  %v4262_v54 = vld [vmem:[#allocation10 + $0x88] sm:$0xff]  ;;  %v4308_v63 = vld [vmem:[#allocation11 + $0xf8] sm:$0xff]  ;;  %v4303_v39 = vld [vmem:[#allocation11 + $0xd0] sm:$0xff] }
 0x36d   : > { %4354 = vmatpush.msra.mxu2 %v4255_v25  ;;  %v3942_v34 = vpop.f32.mrf.mxu2  ;;  %v4196_v25 = vsel %vm9005_vm8, %v8960_v2, %v4192_v40  ;;  %vm4198_vm11 = vcmp.eq.f32.partialorder %v4197_v60, 8.507059e+37  ;;  %v4277_v2 = vld [vmem:[#allocation11] sm:$0xff]  ;;  %4329 = vmatpush.msra.mxu1 %v4308_v63  ;;  %v4302_v60 = vld [vmem:[#allocation11 + $0xc8] sm:$0xff] }
 0x36e   : > { %4374 = vmatpush.msra.mxu3 %v4271_v42  ;;  %4315 = vmatpush.msra.mxu0 %v4286_v4  ;;  %v3955_v43 = vpop.f32.mrf.mxu3  ;;  %v4246_v42 = vld [vmem:[#allocation10 + $0x8] sm:$0xff]  ;;  %v4226_v4 = vsel %vm4223_vm9, %v4225_v29, %v4221_v31  ;;  %v4201_v23 = vsel %vm4198_vm11, %v4200_v48, %v4196_v25  ;;  %v4300_v31 = vld [vmem:[#allocation11 + $0xb8] sm:$0xff] }
 0x36f   : > { %4355 = vmatpush.msra.mxu2 %v4254_v62  ;;  %v4186_v62 = vsel %vm4183_vm10, %v4185_v56, %v4181_v16  ;;  %v4204_v37 = vmul.f32 %v4201_v23, %v10125_v11  ;;  %4330 = vmatpush.msra.mxu1 %v4307_v0  ;;  %v4306_v43 = vld [vmem:[#allocation11 + $0xe8] sm:$0xff]  ;;  %v4297_v56 = vld [vmem:[#allocation11 + $0xa0] sm:$0xff]  ;;  %v4296_v48 = vld [vmem:[#allocation11 + $0x98] sm:$0xff] }
 0x370   : > { %4375 = vmatpush.msra.mxu3 %v4270_v26  ;;  %4316 = vmatpush.msra.mxu0 %v4285_v36  ;;  %v4245_v26 = vld [vmem:[#allocation10] sm:$0xff]  ;;  %v4243_v36 = vmul.f32 %v4226_v4, %v8911_v3  ;;  %v4298_v29 = vld [vmem:[#allocation11 + $0xa8] sm:$0xff] }
 0x371   : > { %4356 = vmatpush.msra.mxu2 %v4253_v24  ;;  %v4203_v24 = vmul.f32 %v4186_v62, %v10121_v7  ;;  %4331 = vmatpush.msra.mxu1 %v4306_v43 }
 0x372   : > { %4376 = vmatpush.msra.mxu3 %v4269_v15  ;;  %4317 = vmatpush.msra.mxu0 %v4284_v32 }
 0x373   : > { %4357 = vmatpush.msra.mxu2 %v4252_v51  ;;  %4332 = vmatpush.msra.mxu1 %v4305_v1 }
 0x374   : > { %4377 = vmatpush.msra.mxu3 %v4268_v45  ;;  %4318 = vmatpush.msra.mxu0 %v4283_v19 }
 0x375   : > { %4358 = vmatpush.msra.mxu2 %v4251_v21 }
 0x376   : > { %4378 = vmatpush.msra.mxu3 %v4267_v28  ;;  %4319 = vmatpush.msra.mxu0 %v4282_v8 }
 0x377   : > { %4359 = vmatpush.msra.mxu2 %v4250_v44 }
 0x378   : > { %4379 = vmatpush.msra.mxu3 %v4266_v53  ;;  %4320 = vmatpush.msra.mxu0 %v4281_v46 }
 0x379   : > { %4360 = vmatpush.msra.mxu2 %v4249_v58 }
 0x37a   : > { %4380 = vmatpush.msra.mxu3 %v4265_v47  ;;  %4321 = vmatpush.msra.mxu0 %v4280_v27  ;;  %v4304_v27 = vld [vmem:[#allocation11 + $0xd8] sm:$0xff] }
 0x37b   : > { %4361 = vmatpush.msra.mxu2 %v4248_v52  ;;  %4333 = vmatpush.msra.mxu1 %v4304_v27 }
 0x37c   : > { %4381 = vmatpush.msra.mxu3 %v4264_v57  ;;  %4322 = vmatpush.msra.mxu0 %v4279_v41  ;;  %v4301_v57 = vld [vmem:[#allocation11 + $0xc0] sm:$0xff]  ;;  %v4299_v41 = vld [vmem:[#allocation11 + $0xb0] sm:$0xff] }
 0x37d   : > { %4362 = vmatpush.msra.mxu2 %v4247_v61  ;;  %v3966_v12 = vpop.f32.mrf.mxu0  ;;  %4334 = vmatpush.msra.mxu1 %v4303_v39 }
 0x37e   : > { %4382 = vmatpush.msra.mxu3 %v4263_v22  ;;  %4323 = vmatpush.msra.mxu0 %v4278_v17  ;;  %v3967_v13 = vadd.f32 %v3966_v12, %v8969_v5  ;;  %v3979_v15 = vpop.f32.mrf.mxu1 }
 0x37f   : > { %4363 = vmatpush.msra.mxu2 %v4246_v42  ;;  %4335 = vmatpush.msra.mxu1 %v4302_v60  ;;  %v4295_v42 = vld [vmem:[#allocation11 + $0x90] sm:$0xff] }
 0x380   : > { %4383 = vmatpush.msra.mxu3 %v4262_v54  ;;  %4324 = vmatpush.msra.mxu0 %v4277_v2  ;;  %v3980_v50 = vadd.f32 %v3979_v15, %v3967_v13 }
 0x381   : > { %4364 = vmatpush.msra.mxu2 %v4245_v26  ;;  %4325 = vmatmul.f32.vlgmr.msra.gmra.mxu0 %v4243_v36  ;;  %v4294_v26 = vld [vmem:[#allocation11 + $0x88] sm:$0xff] }
 0x382   : > { %4384 = vmatpush.msra.mxu3 %v4261_v10  ;;  %4365 = vmatmul.f32.vlgmr.msra.gmra.mxu2 %v4203_v24  ;;  %v4293_v10 = vld [vmem:[#allocation11 + $0x80] sm:$0xff] }
 0x383   : > { %4385 = vmatmul.f32.vlgmr.msra.gmra.mxu3 %v4204_v37  ;;  %4336 = vmatpush.msra.mxu1 %v4301_v57 }
 0x385   : > { %v3992_v20 = vpop.f32.mrf.mxu2  ;;  %v3968_v3 = vpop.f32.mrf.mxu0  ;;  %4337 = vmatpush.msra.mxu1 %v4300_v31 }
 0x386   : > { %v3993_v32 = vadd.f32 %v3992_v20, %v3980_v50  ;;  %v4005_v51 = vpop.f32.mrf.mxu3  ;;  %v3981_v45 = vpop.f32.mrf.mxu1 }
 0x387   : > { %4338 = vmatpush.msra.mxu1 %v4299_v41 }
 0x388   : > { %v4006_v6 = vadd.f32 %v4005_v51, %v3993_v32 }
 0x389   : > { %4339 = vmatpush.msra.mxu1 %v4298_v29 }
 0x38b   : > { %4340 = vmatpush.msra.mxu1 %v4297_v56 }
 0x38d   : > { %v3994_v7 = vpop.f32.mrf.mxu2  ;;  %4341 = vmatpush.msra.mxu1 %v4296_v48 }
 0x38e   : > { %v4007_v38 = vpop.f32.mrf.mxu3 }
 0x38f   : > { %4342 = vmatpush.msra.mxu1 %v4295_v42 }
 0x391   : > { %4343 = vmatpush.msra.mxu1 %v4294_v26 }
 0x393   : > { %4344 = vmatpush.msra.mxu1 %v4293_v10 }
 0x39d   : > { %v4018_v11 = vpop.f32.mrf.mxu0 }
 0x39e   : > { %v4031_v19 = vpop.f32.mrf.mxu1  ;;  %v4019_v30 = vadd.f32 %v4018_v11, %v4006_v6 }
 0x3a0   : > { %v4032_v40 = vadd.f32 %v4031_v19, %v4019_v30 }
 0x3a5   : > { %v4044_v21 = vpop.f32.mrf.mxu2  ;;  %v4020_v49 = vpop.f32.mrf.mxu0 }
 0x3a6   : > { %v4057_v33 = vpop.f32.mrf.mxu3  ;;  %v4033_v59 = vpop.f32.mrf.mxu1  ;;  %v4045_v47 = vadd.f32 %v4044_v21, %v4032_v40 }
 0x3a8   : > { %v4058_v18 = vadd.f32 %v4057_v33, %v4045_v47 }
 0x3ad   : > { %v4046_v28 = vpop.f32.mrf.mxu2 }
 0x3ae   : > { %v4059_v8 = vpop.f32.mrf.mxu3 }
 0x3af   : > { %v6625_v8 = vld [vmem:[#allocation13] ss:$0 sm:$0xff] }
 0x3bd   : > { %v4070_v44 = vpop.f32.mrf.mxu0 }
 0x3be   : > { %v4083_v5 = vpop.f32.mrf.mxu1  ;;  %v4071_v52 = vadd.f32 %v4070_v44, %v4058_v18 }
 0x3c0   : > { %v4084_v9 = vadd.f32 %v4083_v5, %v4071_v52 }
 0x3c5   : > { %v4096_v53 = vpop.f32.mrf.mxu2  ;;  %v4072_v58 = vpop.f32.mrf.mxu0 }
 0x3c6   : > { %v4109_v46 = vpop.f32.mrf.mxu3  ;;  %v4085_v34 = vpop.f32.mrf.mxu1  ;;  %v4097_v55 = vadd.f32 %v4096_v53, %v4084_v9 }
 0x3c8   : > { %v4110_v61 = vadd.f32 %v4109_v46, %v4097_v55 }
 0x3cd   : > { %v4098_v14 = vpop.f32.mrf.mxu2 }
 0x3ce   : > { %v4111_v35 = vpop.f32.mrf.mxu3 }
 0x3dd   : > { %v4122_v16 = vpop.f32.mrf.mxu0 }
 0x3de   : > { %v4135_v25 = vpop.f32.mrf.mxu1  ;;  %v4123_v22 = vadd.f32 %v4122_v16, %v4110_v61 }
 0x3e0   : > { %v4136_v17 = vadd.f32 %v4135_v25, %v4123_v22 }
 0x3e5   : > { %v4148_v4 = vpop.f32.mrf.mxu2  ;;  %v4124_v23 = vpop.f32.mrf.mxu0 }
 0x3e6   : > { %v4161_v54 = vpop.f32.mrf.mxu3  ;;  %v4149_v62 = vadd.f32 %v4148_v4, %v4136_v17  ;;  %v4137_v2 = vpop.f32.mrf.mxu1 }
 0x3e8   : > { %v4162_v36 = vadd.f32 %v4161_v54, %v4149_v62 }
 0x3ea   : > { %v6126_v24 = vmul.f32 -1.442695, %v4162_v36 }
 0x3ec   : > { %6638 = vpow2.f32 %v6126_v24 }
 0x3ed   : > { %v4150_v37 = vpop.f32.mrf.mxu2 }
 0x3ee   : > { %v4163_v12 = vpop.f32.mrf.mxu3 }
 0x3f2   : > { %v6639_v13 = vpop.eup %6638 }
 0x3f3   : > { %v4212_v15 = vadd.f32 1.0, %v6639_v13 }
 0x3f5   : > { %6640 = vrcp.f32 %v4212_v15  ;;  %v4239_v51 = vand.u32 2147483648, %v4212_v15  ;;  %v4237_v45 = vand.u32 2147483647, %v4212_v15  ;;  %vm4233_vm13 = vweird.f32 %v4212_v15 }
 0x3f7   : > { %v4240_v7 = vor.u32 1.1754944e-38, %v4239_v51  ;;  %vm4238_vm15 = vcmp.eq.f32.partialorder %v4237_v45, 8.507059e+37 }
 0x3fb   : > { %v6641_v50 = vpop.eup %6640 }
 0x3fc   : > { %v4229_v20 = vmul.f32 %v6641_v50, %v4212_v15  ;;  %vm4234_vm12 = vweird.f32 %v6641_v50 }
 0x3fd   : > { %vm4235_vm14 = vmor %vm4233_vm13, %vm4234_vm12 }
 0x3fe   : > { %v4230_v32 = vsub.f32 1.0, %v4229_v20  ;;  %v4326_v21 = vpop.f32.mrf.mxu0 }
 0x400   : > { %v4231_v3 = vmul.f32 %v6641_v50, %v4230_v32 }
 0x402   : > { %v4232_v6 = vadd.f32 %v6641_v50, %v4231_v3 }
 0x404   : > { %v4236_v38 = vsel %vm4235_vm14, %v6641_v50, %v4232_v6 }
 0x405   : > { %v4241_v11 = vsel %vm4238_vm15, %v4240_v7, %v4236_v38  ;;  %v4366_v59 = vpop.f32.mrf.mxu2 }
 0x406   : > { %v4244_v19 = vmul.f32 %v4241_v11, %v4162_v36  ;;  %v4386_v44 = vpop.f32.mrf.mxu3 }
 0x408   : > { %4345 = vmatmul.f32.vlgmr.msra.gmra.mxu1 %v4244_v19 }
 0x485   : > { %v4346_v33 = vpop.f32.mrf.mxu1 }
 0x486   : > { %v4347_v49 = vadd.f32 %v4346_v33, %v4326_v21 }
 0x488   : > { %v4367_v28 = vadd.f32 %v4366_v59, %v4347_v49 }
 0x48a   : > { %v4387_v5 = vadd.f32 %v4386_v44, %v4367_v28 }
 0x48c   : > { %v4393_v53 = vadd.f32 %v6625_v8, %v4387_v5 }
 0x48e   : > { %v6127_v30 = vmul.f32 -1.442695, %v4393_v53 }
 0x490   : > { %6642 = vpow2.f32 %v6127_v30 }
 0x496   : > { %v6643_v46 = vpop.eup %6642 }
 0x497   : > { %v4397_v58 = vadd.f32 1.0, %v6643_v46 }
 0x499   : > { %6644 = vrcp.f32 %v4397_v58  ;;  %v4409_v0 = vand.u32 2147483648, %v4397_v58  ;;  %v4407_v43 = vand.u32 2147483647, %v4397_v58  ;;  %vm4403_vm1 = vweird.f32 %v4397_v58 }
 0x49b   : > { %v4410_v35 = vor.u32 1.1754944e-38, %v4409_v0  ;;  %vm4408_vm3 = vcmp.eq.f32.partialorder %v4407_v43, 8.507059e+37 }
 0x49f   : > { %v6645_v34 = vpop.eup %6644 }
 0x4a0   : > { %v4399_v63 = vmul.f32 %v6645_v34, %v4397_v58  ;;  %vm4404_vm0 = vweird.f32 %v6645_v34 }
 0x4a1   : > { %vm4405_vm2 = vmor %vm4403_vm1, %vm4404_vm0 }
 0x4a2   : > { %v4400_v40 = vsub.f32 1.0, %v4399_v63 }
 0x4a4   : > { %v4401_v47 = vmul.f32 %v6645_v34, %v4400_v40 }
 0x4a6   : > { %v4402_v14 = vadd.f32 %v6645_v34, %v4401_v47 }
 0x4a8   : > { %v4406_v1 = vsel %vm4405_vm2, %v6645_v34, %v4402_v14 }
 0x4a9   : > { %v4411_v18 = vsel %vm4408_vm3, %v4410_v35, %v4406_v1 }
 0x4aa   : > { %4413 = vst [vmem:[%s414_s4] sm:$0xff] %v4411_v18 }
 0x4ab   : > { %6884 = shalt.err (!%p6881_p5)
}
 0x4ac   : > { %6545 = dma.vmem_to_hbm [thread:$0]  (%p7074_p0), %s4428_s5, 128, %s4430_s16, %s4415_s8  }
 0x4ad PF: > { %s4441_s6 = sand.u32 1, %s6927_s24   ;;  %p10149_p10 = scmp.ge.s32.totalorder %s6939_s27, 2 }
 0x4ae   : > { %s4442_s12 = scalar_lea.sflag [#allocation4], %s4441_s6 }
 0x4af   : > { %p6571_p11 = pnand %p10149_p10, %p7080_p6 }
 0x4b1   : > { %p6572_p12 = pneg %p6571_p11 }
 0x4b3   : > { %6922 = dma.done.wait (%p6572_p12), %s4442_s12, 128  }
 0x4b4   : > { %6924 = vsyncadd (%p6572_p12), %s4442_s12, 4294967168  ;;  %s10150_s13 = sld [smem:[#allocation21_spill]]  ;;  %p25_p2 = scmp.ge.s32.totalorder %s7054_s20, 4  }
 0x4b5   : > { %s10151_s26 = sld [smem:[#allocation22_spill]]  ;;  %s10152_s24 = smov %s6931_s25 }
 0x4b6   : > { %s10154_s27 = smov %s7054_s20  ;;  %27 = sbr.rel (!%p25_p2) target bundleno = 15 (0xf), region = 126 }
 0x4ba   : > { %s10153_s25 = smov %s10150_s13 }
 0x4bb   :  { %4448 = vsyncpa [#allocation3], 1 }
 0x4bc   :  { %4450 = vsyncpa [#allocation3 + $0x1], 1 }
 0x4bd   :  { %4451 = vsyncpa [#allocation6], 1 }
 0x4be   :  { %4453 = vsyncpa [#allocation6 + $0x1], 1 }
 0x4bf   :  { %4454 = vsyncpa [#allocation9], 1 }
 0x4c0   :  { %4455 = vsyncpa [#allocation12], 1 }
 0x4c1   :  { %4456 = vsyncpa [#allocation4], 1 }
 0x4c2   :  { %4458 = vsyncpa [#allocation4 + $0x1], 1 }

</bundles_post_ra>
